<compile_context>
chip_gen: v7x
topology: tpu7x:2x2x1
jax: 0.10.0
libtpu: 0.0.40
codegen_flags: <defaults>
</compile_context>

<pallas_src>
import numpy as np
import jax
import jax.numpy as jnp
from jax.experimental import pallas as pl
from jax.experimental.pallas import tpu as pltpu

# ----- small synthetic BERT config (HF default 768/12/12/3072 scaled down) -----
VOCAB_SIZE   = 128            # tokenizer: ord(char) % VOCAB_SIZE
HIDDEN       = 128            # lane-aligned (multiple of 128)
NUM_HEADS    = 2
HEAD_DIM     = HIDDEN // NUM_HEADS   # 64, the standard BERT head dim
INTERMEDIATE = 4 * HIDDEN            # 512, BERT's 4x ratio
NUM_LAYERS   = 2
MAX_POS      = 64
LN_EPS       = 1e-12          # BERT LayerNorm eps


# ----------------------------- shared math helpers ----------------------------
def _layer_norm(x, gamma, beta, eps=LN_EPS):
    mu = jnp.mean(x, axis=-1, keepdims=True)
    var = jnp.mean((x - mu) ** 2, axis=-1, keepdims=True)
    return (x - mu) * jax.lax.rsqrt(var + eps) * gamma + beta


def _gelu(x):
    # TODO(synk): HF BERT default hidden_act is exact erf-GELU; tanh approximation
    # used since erf has no guaranteed Mosaic lowering (max abs err ~1e-3).
    c = float(np.sqrt(2.0 / np.pi))
    return 0.5 * x * (1.0 + jnp.tanh(c * (x + 0.044715 * x * x * x)))


# --------------------------------- kernel ------------------------------------
def bert_forward_kernel(emb_ref, pe_ref, te_ref, eg_ref, eb_ref,
                        wqkv_ref, bqkv_ref, wo_ref, bo_ref,
                        g1_ref, be1_ref, w1_ref, b1_ref, w2_ref, b2_ref,
                        g2_ref, be2_ref, out_ref):
    B, S, H = emb_ref.shape

    # --- embeddings: word(gathered) + position + token_type(0)  ->  LayerNorm ---
    x = emb_ref[...] + pe_ref[...] + te_ref[...]                      # (B,S,H)
    h = _layer_norm(x, eg_ref[...], eb_ref[...]).reshape(B * S, H)    # (B*S,H)

    # --- encoder layers (statically unrolled); activation stays resident in VMEM ---
    # NOTE: like the reference module (no attention_mask passed to BertModel),
    # all key positions participate in softmax.
    for l in range(NUM_LAYERS):
        # Fused QKV projection; 1/sqrt(HEAD_DIM) is pre-folded into Wq/bq.
        qkv = jnp.dot(h, wqkv_ref[l], preferred_element_type=jnp.float32) + bqkv_ref[l]

        heads = []
        for hd in range(NUM_HEADS):                    # static unroll over heads
            lo = hd * HEAD_DIM
            q_h = qkv[:, lo:lo + HEAD_DIM].reshape(B, S, HEAD_DIM)
            k_h = qkv[:, H + lo:H + lo + HEAD_DIM].reshape(B, S, HEAD_DIM)
            v_h = qkv[:, 2 * H + lo:2 * H + lo + HEAD_DIM].reshape(B, S, HEAD_DIM)
            s = jnp.einsum('bqd,bkd->bqk', q_h, k_h,
                           preferred_element_type=jnp.float32)        # (B,S,S)
            s = s - jnp.max(s, axis=-1, keepdims=True)
            p = jnp.exp(s)
            p = p * pl.reciprocal(jnp.sum(p, axis=-1, keepdims=True), approx=True)
            heads.append(jnp.einsum('bqk,bkd->bqd', p, v_h,
                                    preferred_element_type=jnp.float32))
        # concat over heads, single output projection
        ctx = jnp.concatenate(heads, axis=-1).reshape(B * S, H)
        attn = jnp.dot(ctx, wo_ref[l], preferred_element_type=jnp.float32) + bo_ref[l]

        h1 = _layer_norm(h + attn, g1_ref[l], be1_ref[l])
        ff = jnp.dot(h1, w1_ref[l], preferred_element_type=jnp.float32) + b1_ref[l]
        ff = _gelu(ff)
        ff = jnp.dot(ff, w2_ref[l], preferred_element_type=jnp.float32) + b2_ref[l]
        h = _layer_norm(h1 + ff, g2_ref[l], be2_ref[l])

    out_ref[...] = h.reshape(B, S, H)


# ------------------------------ pallas wrapper --------------------------------
def bert_encoder_pallas(emb, pe, te, eg, eb, stacked):
    B, S, H = emb.shape
    # Single grid point: every operand fits comfortably in VMEM at this config
    # (activations a few KB, all stacked weights ~2 MB).
    return pl.pallas_call(
        bert_forward_kernel,
        out_shape=jax.ShapeDtypeStruct((B, S, H), jnp.float32),
        compiler_params=pltpu.CompilerParams(vmem_limit_bytes=64 * 1024 * 1024),
    )(emb, pe, te, eg, eb,
      stacked["wqkv"], stacked["bqkv"], stacked["wo"], stacked["bo"],
      stacked["g1"], stacked["be1"], stacked["w_in"], stacked["b_in"],
      stacked["w_out"], stacked["b_out"], stacked["g2"], stacked["be2"])


# ------------------------------ model / tokenizer ------------------------------
def tokenize(texts, vocab_size=VOCAB_SIZE):
    # RandomBertTokenizer: token id = ord(char) % vocab_size, pad with 0 to max length.
    ids = [[ord(c) % vocab_size for c in t] for t in texts]
    max_len = max(len(s) for s in ids)
    ids = [s + [0] * (max_len - len(s)) for s in ids]
    return jnp.asarray(ids, dtype=jnp.int32)


def init_params(key):
    std = 0.02
    def nrm(k, shape):
        return jax.random.normal(k, shape, jnp.float32) * std
    keys = jax.random.split(key, 3 + NUM_LAYERS)
    params = {
        "word_emb": nrm(keys[0], (VOCAB_SIZE, HIDDEN)),
        "pos_emb":  nrm(keys[1], (MAX_POS, HIDDEN)),
        "type_emb": nrm(keys[2], (2, HIDDEN)),
        "emb_gamma": jnp.ones((1, HIDDEN), jnp.float32),
        "emb_beta":  jnp.zeros((1, HIDDEN), jnp.float32),
        "layers": [],
    }
    for l in range(NUM_LAYERS):
        lk = jax.random.split(keys[3 + l], 6)
        params["layers"].append({
            "wq": nrm(lk[0], (HIDDEN, HIDDEN)),        "bq": jnp.zeros((1, HIDDEN), jnp.float32),
            "wk": nrm(lk[1], (HIDDEN, HIDDEN)),        "bk": jnp.zeros((1, HIDDEN), jnp.float32),
            "wv": nrm(lk[2], (HIDDEN, HIDDEN)),        "bv": jnp.zeros((1, HIDDEN), jnp.float32),
            "wo": nrm(lk[3], (HIDDEN, HIDDEN)),        "bo": jnp.zeros((1, HIDDEN), jnp.float32),
            "g1": jnp.ones((1, HIDDEN), jnp.float32),  "be1": jnp.zeros((1, HIDDEN), jnp.float32),
            "w_in":  nrm(lk[4], (HIDDEN, INTERMEDIATE)),
            "b_in":  jnp.zeros((1, INTERMEDIATE), jnp.float32),
            "w_out": nrm(lk[5], (INTERMEDIATE, HIDDEN)),
            "b_out": jnp.zeros((1, HIDDEN), jnp.float32),
            "g2": jnp.ones((1, HIDDEN), jnp.float32),  "be2": jnp.zeros((1, HIDDEN), jnp.float32),
        })
    return params


def prepare_stacked(params):
    # Stack per-layer weights with a leading layer axis; fuse Wq|Wk|Wv -> (H, 3H)
    # and fold the attention scale 1/sqrt(HEAD_DIM) into Wq/bq.
    scale = 1.0 / float(np.sqrt(HEAD_DIM))
    layers = params["layers"]
    def st(fn):
        return jnp.stack([fn(lp) for lp in layers], axis=0)
    return {
        "wqkv": st(lambda lp: jnp.concatenate([lp["wq"] * scale, lp["wk"], lp["wv"]], axis=1)),
        "bqkv": st(lambda lp: jnp.concatenate([lp["bq"] * scale, lp["bk"], lp["bv"]], axis=1)),
        "wo":    st(lambda lp: lp["wo"]),    "bo":    st(lambda lp: lp["bo"]),
        "g1":    st(lambda lp: lp["g1"]),    "be1":   st(lambda lp: lp["be1"]),
        "w_in":  st(lambda lp: lp["w_in"]),  "b_in":  st(lambda lp: lp["b_in"]),
        "w_out": st(lambda lp: lp["w_out"]), "b_out": st(lambda lp: lp["b_out"]),
        "g2":    st(lambda lp: lp["g2"]),    "be2":   st(lambda lp: lp["be2"]),
    }


def bert_encoder_forward(texts, params, stacked):
    token_ids = tokenize(texts)                                   # (B, S) int32
    B, S = token_ids.shape
    # Embedding-table gather is glue (plain JAX); the entire rest of the forward
    # (embed sum + LN + all encoder layers) runs in one Pallas call.
    we = jnp.take(params["word_emb"], token_ids, axis=0)          # (B, S, H)
    pe = params["pos_emb"][:S, :]                                 # (S, H)
    te = params["type_emb"][0:1, :]                               # (1, H) token_type_id = 0
    out = bert_encoder_pallas(we, pe, te,
                              params["emb_gamma"], params["emb_beta"], stacked)
    # module returns last_hidden_state[0, :, :]
    return out[0, :, :]


# -------------------------- pure-JAX reference (unstacked) --------------------
def reference_forward(we, pe, te, params):
    B, S, H = we.shape
    scale = 1.0 / float(np.sqrt(HEAD_DIM))
    x = we + pe + te
    h = _layer_norm(x, params["emb_gamma"], params["emb_beta"])          # (B,S,H)
    for lp in params["layers"]:
        q = (h @ lp["wq"] + lp["bq"]).reshape(B, S, NUM_HEADS, HEAD_DIM)
        k = (h @ lp["wk"] + lp["bk"]).reshape(B, S, NUM_HEADS, HEAD_DIM)
        v = (h @ lp["wv"] + lp["bv"]).reshape(B, S, NUM_HEADS, HEAD_DIM)
        s = jnp.einsum('bqhd,bkhd->bhqk', q, k) * scale
        p = jax.nn.softmax(s, axis=-1)
        ctx = jnp.einsum('bhqk,bkhd->bqhd', p, v).reshape(B, S, H)
        attn = ctx @ lp["wo"] + lp["bo"]
        h1 = _layer_norm(h + attn, lp["g1"], lp["be1"])
        ff = _gelu(h1 @ lp["w_in"] + lp["b_in"]) @ lp["w_out"] + lp["b_out"]
        h = _layer_norm(h1 + ff, lp["g2"], lp["be2"])
    return h[0, :, :]


if __name__ == "__main__":
    # Deterministic params; deterministic example text inputs (the module's forward
    # takes a list of strings and tokenizes them itself).
    key = jax.random.PRNGKey(0)
    params = init_params(key)
    stacked = prepare_stacked(params)

    texts = ["hello pallas tpu", "bert encoder ok!"]   # batch=2, seq=16
    out = bert_encoder_forward(texts, params, stacked)
    out = jax.block_until_ready(out)

    assert out.shape == (16, HIDDEN), out.shape
    assert bool(jnp.all(jnp.isfinite(out)))

    # Cross-check against a plain-JAX reference built from the unstacked params
    # (loose tolerance: kernel uses approximate EUP reciprocal in softmax).
    token_ids = tokenize(texts)
    we = jnp.take(params["word_emb"], token_ids, axis=0)
    pe = params["pos_emb"][:token_ids.shape[1], :]
    te = params["type_emb"][0:1, :]
    ref = reference_forward(we, pe, te, params)
    max_err = float(jnp.max(jnp.abs(out - ref)))
    assert max_err < 5e-2, max_err

    print("KERNEL_OK")
</pallas_src>

<mosaic_0001>
module attributes {stable_mosaic.version = 11 : i64} {
  func.func @bert_forward_kernel(%arg0: memref<2x16x128xf32, #tpu.memory_space<vmem>>, %arg1: memref<16x128xf32, #tpu.memory_space<vmem>>, %arg2: memref<1x128xf32, #tpu.memory_space<vmem>>, %arg3: memref<1x128xf32, #tpu.memory_space<vmem>>, %arg4: memref<1x128xf32, #tpu.memory_space<vmem>>, %arg5: memref<2x128x384xf32, #tpu.memory_space<vmem>>, %arg6: memref<2x1x384xf32, #tpu.memory_space<vmem>>, %arg7: memref<2x128x128xf32, #tpu.memory_space<vmem>>, %arg8: memref<2x1x128xf32, #tpu.memory_space<vmem>>, %arg9: memref<2x1x128xf32, #tpu.memory_space<vmem>>, %arg10: memref<2x1x128xf32, #tpu.memory_space<vmem>>, %arg11: memref<2x128x512xf32, #tpu.memory_space<vmem>>, %arg12: memref<2x1x512xf32, #tpu.memory_space<vmem>>, %arg13: memref<2x512x128xf32, #tpu.memory_space<vmem>>, %arg14: memref<2x1x128xf32, #tpu.memory_space<vmem>>, %arg15: memref<2x1x128xf32, #tpu.memory_space<vmem>>, %arg16: memref<2x1x128xf32, #tpu.memory_space<vmem>>, %arg17: memref<2x16x128xf32, #tpu.memory_space<vmem>>) attributes {dimension_semantics = [], scalar_prefetch = 0 : i64, scratch_operands = 0 : i64, tpu.core_type = #tpu.core_type<tc>} {
    %c0 = arith.constant 0 : index
    %c0_0 = arith.constant 0 : index
    %c0_1 = arith.constant 0 : index
    %0 = vector.load %arg0[%c0, %c0_0, %c0_1] : memref<2x16x128xf32, #tpu.memory_space<vmem>>, vector<2x16x128xf32>
    %c0_2 = arith.constant 0 : index
    %c0_3 = arith.constant 0 : index
    %1 = vector.load %arg1[%c0_2, %c0_3] : memref<16x128xf32, #tpu.memory_space<vmem>>, vector<16x128xf32>
    %2 = vector.shape_cast %1 : vector<16x128xf32> to vector<1x16x128xf32>
    %3 = vector.broadcast %2 : vector<1x16x128xf32> to vector<2x16x128xf32>
    %4 = arith.addf %0, %3 : vector<2x16x128xf32>
    %c0_4 = arith.constant 0 : index
    %c0_5 = arith.constant 0 : index
    %5 = vector.load %arg2[%c0_4, %c0_5] : memref<1x128xf32, #tpu.memory_space<vmem>>, vector<1x128xf32>
    %6 = vector.shape_cast %5 : vector<1x128xf32> to vector<1x1x128xf32>
    %7 = vector.broadcast %6 : vector<1x1x128xf32> to vector<2x16x128xf32>
    %8 = arith.addf %4, %7 : vector<2x16x128xf32>
    %c0_6 = arith.constant 0 : index
    %c0_7 = arith.constant 0 : index
    %9 = vector.load %arg3[%c0_6, %c0_7] : memref<1x128xf32, #tpu.memory_space<vmem>>, vector<1x128xf32>
    %c0_8 = arith.constant 0 : index
    %c0_9 = arith.constant 0 : index
    %10 = vector.load %arg4[%c0_8, %c0_9] : memref<1x128xf32, #tpu.memory_space<vmem>>, vector<1x128xf32>
    %cst = arith.constant dense<0.000000e+00> : vector<2x16xf32>
    %11 = vector.multi_reduction <add>, %8, %cst [2] : vector<2x16x128xf32> to vector<2x16xf32>
    %12 = vector.shape_cast %11 : vector<2x16xf32> to vector<2x16x1xf32>
    %cst_10 = arith.constant 1.280000e+02 : f32
    %13 = vector.broadcast %cst_10 : f32 to vector<2x16x1xf32>
    %14 = arith.divf %12, %13 : vector<2x16x1xf32>
    %15 = vector.broadcast %14 : vector<2x16x1xf32> to vector<2x16x128xf32>
    %16 = arith.subf %8, %15 : vector<2x16x128xf32>
    %17 = arith.mulf %16, %16 : vector<2x16x128xf32>
    %cst_11 = arith.constant dense<0.000000e+00> : vector<2x16xf32>
    %18 = vector.multi_reduction <add>, %17, %cst_11 [2] : vector<2x16x128xf32> to vector<2x16xf32>
    %19 = vector.shape_cast %18 : vector<2x16xf32> to vector<2x16x1xf32>
    %cst_12 = arith.constant 1.280000e+02 : f32
    %20 = vector.broadcast %cst_12 : f32 to vector<2x16x1xf32>
    %21 = arith.divf %19, %20 : vector<2x16x1xf32>
    %22 = vector.broadcast %14 : vector<2x16x1xf32> to vector<2x16x128xf32>
    %23 = arith.subf %8, %22 : vector<2x16x128xf32>
    %cst_13 = arith.constant 9.99999996E-13 : f32
    %24 = vector.broadcast %cst_13 : f32 to vector<2x16x1xf32>
    %25 = arith.addf %21, %24 : vector<2x16x1xf32>
    %26 = math.rsqrt %25 : vector<2x16x1xf32>
    %27 = vector.broadcast %26 : vector<2x16x1xf32> to vector<2x16x128xf32>
    %28 = arith.mulf %23, %27 : vector<2x16x128xf32>
    %29 = vector.shape_cast %9 : vector<1x128xf32> to vector<1x1x128xf32>
    %30 = vector.broadcast %29 : vector<1x1x128xf32> to vector<2x16x128xf32>
    %31 = arith.mulf %28, %30 : vector<2x16x128xf32>
    %32 = vector.shape_cast %10 : vector<1x128xf32> to vector<1x1x128xf32>
    %33 = vector.broadcast %32 : vector<1x1x128xf32> to vector<2x16x128xf32>
    %34 = arith.addf %31, %33 : vector<2x16x128xf32>
    %35 = vector.shape_cast %34 : vector<2x16x128xf32> to vector<32x128xf32>
    %c0_14 = arith.constant 0 : index
    %c0_15 = arith.constant 0 : index
    %c0_16 = arith.constant 0 : index
    %36 = vector.load %arg5[%c0_14, %c0_15, %c0_16] : memref<2x128x384xf32, #tpu.memory_space<vmem>>, vector<1x128x384xf32>
    %37 = vector.shape_cast %36 : vector<1x128x384xf32> to vector<128x384xf32>
    %cst_17 = arith.constant dense<0.000000e+00> : vector<32x384xf32>
    %38 = tpu.matmul %35, %37, %cst_17 {dimension_numbers = #tpu.dot_dimension_numbers<[1], [0], [0], [1], [0, 0, 1, 1], [], []>} : vector<32x128xf32>, vector<128x384xf32>, vector<32x384xf32> -> vector<32x384xf32>
    %c0_18 = arith.constant 0 : index
    %c0_19 = arith.constant 0 : index
    %c0_20 = arith.constant 0 : index
    %39 = vector.load %arg6[%c0_18, %c0_19, %c0_20] : memref<2x1x384xf32, #tpu.memory_space<vmem>>, vector<1x1x384xf32>
    %40 = vector.shape_cast %39 : vector<1x1x384xf32> to vector<1x384xf32>
    %41 = vector.broadcast %40 : vector<1x384xf32> to vector<32x384xf32>
    %42 = arith.addf %38, %41 : vector<32x384xf32>
    %43 = vector.extract_strided_slice %42 {offsets = [0, 0], sizes = [32, 64], strides = [1, 1]} : vector<32x384xf32> to vector<32x64xf32>
    %44 = vector.shape_cast %43 : vector<32x64xf32> to vector<2x16x64xf32>
    %45 = vector.extract_strided_slice %42 {offsets = [0, 128], sizes = [32, 64], strides = [1, 1]} : vector<32x384xf32> to vector<32x64xf32>
    %46 = vector.shape_cast %45 : vector<32x64xf32> to vector<2x16x64xf32>
    %47 = vector.extract_strided_slice %42 {offsets = [0, 256], sizes = [32, 64], strides = [1, 1]} : vector<32x384xf32> to vector<32x64xf32>
    %48 = vector.shape_cast %47 : vector<32x64xf32> to vector<2x16x64xf32>
    "tpu.trace_start"() <{level = 10 : i32, message = "bqd,bkd->bqk"}> : () -> ()
    %cst_21 = arith.constant dense<0.000000e+00> : vector<2x16x16xf32>
    %49 = tpu.matmul %44, %46, %cst_21 {dimension_numbers = #tpu.dot_dimension_numbers<[2], [2], [1], [1], [0, 0, 0, 1, 1, 1], [0], [0]>} : vector<2x16x64xf32>, vector<2x16x64xf32>, vector<2x16x16xf32> -> vector<2x16x16xf32>
    "tpu.trace_stop"() : () -> ()
    %cst_22 = arith.constant dense<0xFF800000> : vector<2x16xf32>
    %50 = vector.multi_reduction <maximumf>, %49, %cst_22 [2] : vector<2x16x16xf32> to vector<2x16xf32>
    %51 = vector.shape_cast %50 : vector<2x16xf32> to vector<2x16x1xf32>
    %52 = vector.broadcast %51 : vector<2x16x1xf32> to vector<2x16x16xf32>
    %53 = arith.subf %49, %52 : vector<2x16x16xf32>
    %54 = math.exp %53 : vector<2x16x16xf32>
    %cst_23 = arith.constant dense<0.000000e+00> : vector<2x16xf32>
    %55 = vector.multi_reduction <add>, %54, %cst_23 [2] : vector<2x16x16xf32> to vector<2x16xf32>
    %56 = vector.shape_cast %55 : vector<2x16xf32> to vector<2x16x1xf32>
    %57 = tpu.reciprocal %56 {approx = true} : vector<2x16x1xf32> -> vector<2x16x1xf32>
    %58 = vector.broadcast %57 : vector<2x16x1xf32> to vector<2x16x16xf32>
    %59 = arith.mulf %54, %58 : vector<2x16x16xf32>
    "tpu.trace_start"() <{level = 10 : i32, message = "bqk,bkd->bqd"}> : () -> ()
    %cst_24 = arith.constant dense<0.000000e+00> : vector<2x16x64xf32>
    %60 = tpu.matmul %59, %48, %cst_24 {dimension_numbers = #tpu.dot_dimension_numbers<[2], [1], [1], [2], [0, 0, 0, 1, 1, 2], [0], [0]>} : vector<2x16x16xf32>, vector<2x16x64xf32>, vector<2x16x64xf32> -> vector<2x16x64xf32>
    "tpu.trace_stop"() : () -> ()
    %61 = vector.extract_strided_slice %42 {offsets = [0, 64], sizes = [32, 64], strides = [1, 1]} : vector<32x384xf32> to vector<32x64xf32>
    %62 = vector.shape_cast %61 : vector<32x64xf32> to vector<2x16x64xf32>
    %63 = vector.extract_strided_slice %42 {offsets = [0, 192], sizes = [32, 64], strides = [1, 1]} : vector<32x384xf32> to vector<32x64xf32>
    %64 = vector.shape_cast %63 : vector<32x64xf32> to vector<2x16x64xf32>
    %65 = vector.extract_strided_slice %42 {offsets = [0, 320], sizes = [32, 64], strides = [1, 1]} : vector<32x384xf32> to vector<32x64xf32>
    %66 = vector.shape_cast %65 : vector<32x64xf32> to vector<2x16x64xf32>
    "tpu.trace_start"() <{level = 10 : i32, message = "bqd,bkd->bqk"}> : () -> ()
    %cst_25 = arith.constant dense<0.000000e+00> : vector<2x16x16xf32>
    %67 = tpu.matmul %62, %64, %cst_25 {dimension_numbers = #tpu.dot_dimension_numbers<[2], [2], [1], [1], [0, 0, 0, 1, 1, 1], [0], [0]>} : vector<2x16x64xf32>, vector<2x16x64xf32>, vector<2x16x16xf32> -> vector<2x16x16xf32>
    "tpu.trace_stop"() : () -> ()
    %cst_26 = arith.constant dense<0xFF800000> : vector<2x16xf32>
    %68 = vector.multi_reduction <maximumf>, %67, %cst_26 [2] : vector<2x16x16xf32> to vector<2x16xf32>
    %69 = vector.shape_cast %68 : vector<2x16xf32> to vector<2x16x1xf32>
    %70 = vector.broadcast %69 : vector<2x16x1xf32> to vector<2x16x16xf32>
    %71 = arith.subf %67, %70 : vector<2x16x16xf32>
    %72 = math.exp %71 : vector<2x16x16xf32>
    %cst_27 = arith.constant dense<0.000000e+00> : vector<2x16xf32>
    %73 = vector.multi_reduction <add>, %72, %cst_27 [2] : vector<2x16x16xf32> to vector<2x16xf32>
    %74 = vector.shape_cast %73 : vector<2x16xf32> to vector<2x16x1xf32>
    %75 = tpu.reciprocal %74 {approx = true} : vector<2x16x1xf32> -> vector<2x16x1xf32>
    %76 = vector.broadcast %75 : vector<2x16x1xf32> to vector<2x16x16xf32>
    %77 = arith.mulf %72, %76 : vector<2x16x16xf32>
    "tpu.trace_start"() <{level = 10 : i32, message = "bqk,bkd->bqd"}> : () -> ()
    %cst_28 = arith.constant dense<0.000000e+00> : vector<2x16x64xf32>
    %78 = tpu.matmul %77, %66, %cst_28 {dimension_numbers = #tpu.dot_dimension_numbers<[2], [1], [1], [2], [0, 0, 0, 1, 1, 2], [0], [0]>} : vector<2x16x16xf32>, vector<2x16x64xf32>, vector<2x16x64xf32> -> vector<2x16x64xf32>
    "tpu.trace_stop"() : () -> ()
    %79 = tpu.concatenate %60, %78 in 2 : vector<2x16x64xf32>, vector<2x16x64xf32> -> vector<2x16x128xf32>
    %80 = vector.shape_cast %79 : vector<2x16x128xf32> to vector<32x128xf32>
    %c0_29 = arith.constant 0 : index
    %c0_30 = arith.constant 0 : index
    %c0_31 = arith.constant 0 : index
    %81 = vector.load %arg7[%c0_29, %c0_30, %c0_31] : memref<2x128x128xf32, #tpu.memory_space<vmem>>, vector<1x128x128xf32>
    %82 = vector.shape_cast %81 : vector<1x128x128xf32> to vector<128x128xf32>
    %cst_32 = arith.constant dense<0.000000e+00> : vector<32x128xf32>
    %83 = tpu.matmul %80, %82, %cst_32 {dimension_numbers = #tpu.dot_dimension_numbers<[1], [0], [0], [1], [0, 0, 1, 1], [], []>} : vector<32x128xf32>, vector<128x128xf32>, vector<32x128xf32> -> vector<32x128xf32>
    %c0_33 = arith.constant 0 : index
    %c0_34 = arith.constant 0 : index
    %c0_35 = arith.constant 0 : index
    %84 = vector.load %arg8[%c0_33, %c0_34, %c0_35] : memref<2x1x128xf32, #tpu.memory_space<vmem>>, vector<1x1x128xf32>
    %85 = vector.shape_cast %84 : vector<1x1x128xf32> to vector<1x128xf32>
    %86 = vector.broadcast %85 : vector<1x128xf32> to vector<32x128xf32>
    %87 = arith.addf %83, %86 : vector<32x128xf32>
    %88 = arith.addf %35, %87 : vector<32x128xf32>
    %c0_36 = arith.constant 0 : index
    %c0_37 = arith.constant 0 : index
    %c0_38 = arith.constant 0 : index
    %89 = vector.load %arg9[%c0_36, %c0_37, %c0_38] : memref<2x1x128xf32, #tpu.memory_space<vmem>>, vector<1x1x128xf32>
    %90 = vector.shape_cast %89 : vector<1x1x128xf32> to vector<1x128xf32>
    %c0_39 = arith.constant 0 : index
    %c0_40 = arith.constant 0 : index
    %c0_41 = arith.constant 0 : index
    %91 = vector.load %arg10[%c0_39, %c0_40, %c0_41] : memref<2x1x128xf32, #tpu.memory_space<vmem>>, vector<1x1x128xf32>
    %92 = vector.shape_cast %91 : vector<1x1x128xf32> to vector<1x128xf32>
    %cst_42 = arith.constant dense<0.000000e+00> : vector<32xf32>
    %93 = vector.multi_reduction <add>, %88, %cst_42 [1] : vector<32x128xf32> to vector<32xf32>
    %94 = vector.shape_cast %93 : vector<32xf32> to vector<32x1xf32>
    %cst_43 = arith.constant 1.280000e+02 : f32
    %95 = vector.broadcast %cst_43 : f32 to vector<32x1xf32>
    %96 = arith.divf %94, %95 : vector<32x1xf32>
    %97 = vector.broadcast %96 : vector<32x1xf32> to vector<32x128xf32>
    %98 = arith.subf %88, %97 : vector<32x128xf32>
    %99 = arith.mulf %98, %98 : vector<32x128xf32>
    %cst_44 = arith.constant dense<0.000000e+00> : vector<32xf32>
    %100 = vector.multi_reduction <add>, %99, %cst_44 [1] : vector<32x128xf32> to vector<32xf32>
    %101 = vector.shape_cast %100 : vector<32xf32> to vector<32x1xf32>
    %cst_45 = arith.constant 1.280000e+02 : f32
    %102 = vector.broadcast %cst_45 : f32 to vector<32x1xf32>
    %103 = arith.divf %101, %102 : vector<32x1xf32>
    %104 = vector.broadcast %96 : vector<32x1xf32> to vector<32x128xf32>
    %105 = arith.subf %88, %104 : vector<32x128xf32>
    %cst_46 = arith.constant 9.99999996E-13 : f32
    %106 = vector.broadcast %cst_46 : f32 to vector<32x1xf32>
    %107 = arith.addf %103, %106 : vector<32x1xf32>
    %108 = math.rsqrt %107 : vector<32x1xf32>
    %109 = vector.broadcast %108 : vector<32x1xf32> to vector<32x128xf32>
    %110 = arith.mulf %105, %109 : vector<32x128xf32>
    %111 = vector.broadcast %90 : vector<1x128xf32> to vector<32x128xf32>
    %112 = arith.mulf %110, %111 : vector<32x128xf32>
    %113 = vector.broadcast %92 : vector<1x128xf32> to vector<32x128xf32>
    %114 = arith.addf %112, %113 : vector<32x128xf32>
    %c0_47 = arith.constant 0 : index
    %c0_48 = arith.constant 0 : index
    %c0_49 = arith.constant 0 : index
    %115 = vector.load %arg11[%c0_47, %c0_48, %c0_49] : memref<2x128x512xf32, #tpu.memory_space<vmem>>, vector<1x128x512xf32>
    %116 = vector.shape_cast %115 : vector<1x128x512xf32> to vector<128x512xf32>
    %cst_50 = arith.constant dense<0.000000e+00> : vector<32x512xf32>
    %117 = tpu.matmul %114, %116, %cst_50 {dimension_numbers = #tpu.dot_dimension_numbers<[1], [0], [0], [1], [0, 0, 1, 1], [], []>} : vector<32x128xf32>, vector<128x512xf32>, vector<32x512xf32> -> vector<32x512xf32>
    %c0_51 = arith.constant 0 : index
    %c0_52 = arith.constant 0 : index
    %c0_53 = arith.constant 0 : index
    %118 = vector.load %arg12[%c0_51, %c0_52, %c0_53] : memref<2x1x512xf32, #tpu.memory_space<vmem>>, vector<1x1x512xf32>
    %119 = vector.shape_cast %118 : vector<1x1x512xf32> to vector<1x512xf32>
    %120 = vector.broadcast %119 : vector<1x512xf32> to vector<32x512xf32>
    %121 = arith.addf %117, %120 : vector<32x512xf32>
    %cst_54 = arith.constant 5.000000e-01 : f32
    %122 = vector.broadcast %cst_54 : f32 to vector<32x512xf32>
    %123 = arith.mulf %122, %121 : vector<32x512xf32>
    %cst_55 = arith.constant 4.471500e-02 : f32
    %124 = vector.broadcast %cst_55 : f32 to vector<32x512xf32>
    %125 = arith.mulf %124, %121 : vector<32x512xf32>
    %126 = arith.mulf %125, %121 : vector<32x512xf32>
    %127 = arith.mulf %126, %121 : vector<32x512xf32>
    %128 = arith.addf %121, %127 : vector<32x512xf32>
    %cst_56 = arith.constant 0.797884583 : f32
    %129 = vector.broadcast %cst_56 : f32 to vector<32x512xf32>
    %130 = arith.mulf %129, %128 : vector<32x512xf32>
    %131 = math.tanh %130 : vector<32x512xf32>
    %cst_57 = arith.constant 1.000000e+00 : f32
    %132 = vector.broadcast %cst_57 : f32 to vector<32x512xf32>
    %133 = arith.addf %132, %131 : vector<32x512xf32>
    %134 = arith.mulf %123, %133 : vector<32x512xf32>
    %c0_58 = arith.constant 0 : index
    %c0_59 = arith.constant 0 : index
    %c0_60 = arith.constant 0 : index
    %135 = vector.load %arg13[%c0_58, %c0_59, %c0_60] : memref<2x512x128xf32, #tpu.memory_space<vmem>>, vector<1x512x128xf32>
    %136 = vector.shape_cast %135 : vector<1x512x128xf32> to vector<512x128xf32>
    %cst_61 = arith.constant dense<0.000000e+00> : vector<32x128xf32>
    %137 = tpu.matmul %134, %136, %cst_61 {dimension_numbers = #tpu.dot_dimension_numbers<[1], [0], [0], [1], [0, 0, 1, 1], [], []>} : vector<32x512xf32>, vector<512x128xf32>, vector<32x128xf32> -> vector<32x128xf32>
    %c0_62 = arith.constant 0 : index
    %c0_63 = arith.constant 0 : index
    %c0_64 = arith.constant 0 : index
    %138 = vector.load %arg14[%c0_62, %c0_63, %c0_64] : memref<2x1x128xf32, #tpu.memory_space<vmem>>, vector<1x1x128xf32>
    %139 = vector.shape_cast %138 : vector<1x1x128xf32> to vector<1x128xf32>
    %140 = vector.broadcast %139 : vector<1x128xf32> to vector<32x128xf32>
    %141 = arith.addf %137, %140 : vector<32x128xf32>
    %142 = arith.addf %114, %141 : vector<32x128xf32>
    %c0_65 = arith.constant 0 : index
    %c0_66 = arith.constant 0 : index
    %c0_67 = arith.constant 0 : index
    %143 = vector.load %arg15[%c0_65, %c0_66, %c0_67] : memref<2x1x128xf32, #tpu.memory_space<vmem>>, vector<1x1x128xf32>
    %144 = vector.shape_cast %143 : vector<1x1x128xf32> to vector<1x128xf32>
    %c0_68 = arith.constant 0 : index
    %c0_69 = arith.constant 0 : index
    %c0_70 = arith.constant 0 : index
    %145 = vector.load %arg16[%c0_68, %c0_69, %c0_70] : memref<2x1x128xf32, #tpu.memory_space<vmem>>, vector<1x1x128xf32>
    %146 = vector.shape_cast %145 : vector<1x1x128xf32> to vector<1x128xf32>
    %cst_71 = arith.constant dense<0.000000e+00> : vector<32xf32>
    %147 = vector.multi_reduction <add>, %142, %cst_71 [1] : vector<32x128xf32> to vector<32xf32>
    %148 = vector.shape_cast %147 : vector<32xf32> to vector<32x1xf32>
    %cst_72 = arith.constant 1.280000e+02 : f32
    %149 = vector.broadcast %cst_72 : f32 to vector<32x1xf32>
    %150 = arith.divf %148, %149 : vector<32x1xf32>
    %151 = vector.broadcast %150 : vector<32x1xf32> to vector<32x128xf32>
    %152 = arith.subf %142, %151 : vector<32x128xf32>
    %153 = arith.mulf %152, %152 : vector<32x128xf32>
    %cst_73 = arith.constant dense<0.000000e+00> : vector<32xf32>
    %154 = vector.multi_reduction <add>, %153, %cst_73 [1] : vector<32x128xf32> to vector<32xf32>
    %155 = vector.shape_cast %154 : vector<32xf32> to vector<32x1xf32>
    %cst_74 = arith.constant 1.280000e+02 : f32
    %156 = vector.broadcast %cst_74 : f32 to vector<32x1xf32>
    %157 = arith.divf %155, %156 : vector<32x1xf32>
    %158 = vector.broadcast %150 : vector<32x1xf32> to vector<32x128xf32>
    %159 = arith.subf %142, %158 : vector<32x128xf32>
    %cst_75 = arith.constant 9.99999996E-13 : f32
    %160 = vector.broadcast %cst_75 : f32 to vector<32x1xf32>
    %161 = arith.addf %157, %160 : vector<32x1xf32>
    %162 = math.rsqrt %161 : vector<32x1xf32>
    %163 = vector.broadcast %162 : vector<32x1xf32> to vector<32x128xf32>
    %164 = arith.mulf %159, %163 : vector<32x128xf32>
    %165 = vector.broadcast %144 : vector<1x128xf32> to vector<32x128xf32>
    %166 = arith.mulf %164, %165 : vector<32x128xf32>
    %167 = vector.broadcast %146 : vector<1x128xf32> to vector<32x128xf32>
    %168 = arith.addf %166, %167 : vector<32x128xf32>
    %c1 = arith.constant 1 : index
    %c0_76 = arith.constant 0 : index
    %c0_77 = arith.constant 0 : index
    %169 = vector.load %arg5[%c1, %c0_76, %c0_77] : memref<2x128x384xf32, #tpu.memory_space<vmem>>, vector<1x128x384xf32>
    %170 = vector.shape_cast %169 : vector<1x128x384xf32> to vector<128x384xf32>
    %cst_78 = arith.constant dense<0.000000e+00> : vector<32x384xf32>
    %171 = tpu.matmul %168, %170, %cst_78 {dimension_numbers = #tpu.dot_dimension_numbers<[1], [0], [0], [1], [0, 0, 1, 1], [], []>} : vector<32x128xf32>, vector<128x384xf32>, vector<32x384xf32> -> vector<32x384xf32>
    %c1_79 = arith.constant 1 : index
    %c0_80 = arith.constant 0 : index
    %c0_81 = arith.constant 0 : index
    %172 = vector.load %arg6[%c1_79, %c0_80, %c0_81] : memref<2x1x384xf32, #tpu.memory_space<vmem>>, vector<1x1x384xf32>
    %173 = vector.shape_cast %172 : vector<1x1x384xf32> to vector<1x384xf32>
    %174 = vector.broadcast %173 : vector<1x384xf32> to vector<32x384xf32>
    %175 = arith.addf %171, %174 : vector<32x384xf32>
    %176 = vector.extract_strided_slice %175 {offsets = [0, 0], sizes = [32, 64], strides = [1, 1]} : vector<32x384xf32> to vector<32x64xf32>
    %177 = vector.shape_cast %176 : vector<32x64xf32> to vector<2x16x64xf32>
    %178 = vector.extract_strided_slice %175 {offsets = [0, 128], sizes = [32, 64], strides = [1, 1]} : vector<32x384xf32> to vector<32x64xf32>
    %179 = vector.shape_cast %178 : vector<32x64xf32> to vector<2x16x64xf32>
    %180 = vector.extract_strided_slice %175 {offsets = [0, 256], sizes = [32, 64], strides = [1, 1]} : vector<32x384xf32> to vector<32x64xf32>
    %181 = vector.shape_cast %180 : vector<32x64xf32> to vector<2x16x64xf32>
    "tpu.trace_start"() <{level = 10 : i32, message = "bqd,bkd->bqk"}> : () -> ()
    %cst_82 = arith.constant dense<0.000000e+00> : vector<2x16x16xf32>
    %182 = tpu.matmul %177, %179, %cst_82 {dimension_numbers = #tpu.dot_dimension_numbers<[2], [2], [1], [1], [0, 0, 0, 1, 1, 1], [0], [0]>} : vector<2x16x64xf32>, vector<2x16x64xf32>, vector<2x16x16xf32> -> vector<2x16x16xf32>
    "tpu.trace_stop"() : () -> ()
    %cst_83 = arith.constant dense<0xFF800000> : vector<2x16xf32>
    %183 = vector.multi_reduction <maximumf>, %182, %cst_83 [2] : vector<2x16x16xf32> to vector<2x16xf32>
    %184 = vector.shape_cast %183 : vector<2x16xf32> to vector<2x16x1xf32>
    %185 = vector.broadcast %184 : vector<2x16x1xf32> to vector<2x16x16xf32>
    %186 = arith.subf %182, %185 : vector<2x16x16xf32>
    %187 = math.exp %186 : vector<2x16x16xf32>
    %cst_84 = arith.constant dense<0.000000e+00> : vector<2x16xf32>
    %188 = vector.multi_reduction <add>, %187, %cst_84 [2] : vector<2x16x16xf32> to vector<2x16xf32>
    %189 = vector.shape_cast %188 : vector<2x16xf32> to vector<2x16x1xf32>
    %190 = tpu.reciprocal %189 {approx = true} : vector<2x16x1xf32> -> vector<2x16x1xf32>
    %191 = vector.broadcast %190 : vector<2x16x1xf32> to vector<2x16x16xf32>
    %192 = arith.mulf %187, %191 : vector<2x16x16xf32>
    "tpu.trace_start"() <{level = 10 : i32, message = "bqk,bkd->bqd"}> : () -> ()
    %cst_85 = arith.constant dense<0.000000e+00> : vector<2x16x64xf32>
    %193 = tpu.matmul %192, %181, %cst_85 {dimension_numbers = #tpu.dot_dimension_numbers<[2], [1], [1], [2], [0, 0, 0, 1, 1, 2], [0], [0]>} : vector<2x16x16xf32>, vector<2x16x64xf32>, vector<2x16x64xf32> -> vector<2x16x64xf32>
    "tpu.trace_stop"() : () -> ()
    %194 = vector.extract_strided_slice %175 {offsets = [0, 64], sizes = [32, 64], strides = [1, 1]} : vector<32x384xf32> to vector<32x64xf32>
    %195 = vector.shape_cast %194 : vector<32x64xf32> to vector<2x16x64xf32>
    %196 = vector.extract_strided_slice %175 {offsets = [0, 192], sizes = [32, 64], strides = [1, 1]} : vector<32x384xf32> to vector<32x64xf32>
    %197 = vector.shape_cast %196 : vector<32x64xf32> to vector<2x16x64xf32>
    %198 = vector.extract_strided_slice %175 {offsets = [0, 320], sizes = [32, 64], strides = [1, 1]} : vector<32x384xf32> to vector<32x64xf32>
    %199 = vector.shape_cast %198 : vector<32x64xf32> to vector<2x16x64xf32>
    "tpu.trace_start"() <{level = 10 : i32, message = "bqd,bkd->bqk"}> : () -> ()
    %cst_86 = arith.constant dense<0.000000e+00> : vector<2x16x16xf32>
    %200 = tpu.matmul %195, %197, %cst_86 {dimension_numbers = #tpu.dot_dimension_numbers<[2], [2], [1], [1], [0, 0, 0, 1, 1, 1], [0], [0]>} : vector<2x16x64xf32>, vector<2x16x64xf32>, vector<2x16x16xf32> -> vector<2x16x16xf32>
    "tpu.trace_stop"() : () -> ()
    %cst_87 = arith.constant dense<0xFF800000> : vector<2x16xf32>
    %201 = vector.multi_reduction <maximumf>, %200, %cst_87 [2] : vector<2x16x16xf32> to vector<2x16xf32>
    %202 = vector.shape_cast %201 : vector<2x16xf32> to vector<2x16x1xf32>
    %203 = vector.broadcast %202 : vector<2x16x1xf32> to vector<2x16x16xf32>
    %204 = arith.subf %200, %203 : vector<2x16x16xf32>
    %205 = math.exp %204 : vector<2x16x16xf32>
    %cst_88 = arith.constant dense<0.000000e+00> : vector<2x16xf32>
    %206 = vector.multi_reduction <add>, %205, %cst_88 [2] : vector<2x16x16xf32> to vector<2x16xf32>
    %207 = vector.shape_cast %206 : vector<2x16xf32> to vector<2x16x1xf32>
    %208 = tpu.reciprocal %207 {approx = true} : vector<2x16x1xf32> -> vector<2x16x1xf32>
    %209 = vector.broadcast %208 : vector<2x16x1xf32> to vector<2x16x16xf32>
    %210 = arith.mulf %205, %209 : vector<2x16x16xf32>
    "tpu.trace_start"() <{level = 10 : i32, message = "bqk,bkd->bqd"}> : () -> ()
    %cst_89 = arith.constant dense<0.000000e+00> : vector<2x16x64xf32>
    %211 = tpu.matmul %210, %199, %cst_89 {dimension_numbers = #tpu.dot_dimension_numbers<[2], [1], [1], [2], [0, 0, 0, 1, 1, 2], [0], [0]>} : vector<2x16x16xf32>, vector<2x16x64xf32>, vector<2x16x64xf32> -> vector<2x16x64xf32>
    "tpu.trace_stop"() : () -> ()
    %212 = tpu.concatenate %193, %211 in 2 : vector<2x16x64xf32>, vector<2x16x64xf32> -> vector<2x16x128xf32>
    %213 = vector.shape_cast %212 : vector<2x16x128xf32> to vector<32x128xf32>
    %c1_90 = arith.constant 1 : index
    %c0_91 = arith.constant 0 : index
    %c0_92 = arith.constant 0 : index
    %214 = vector.load %arg7[%c1_90, %c0_91, %c0_92] : memref<2x128x128xf32, #tpu.memory_space<vmem>>, vector<1x128x128xf32>
    %215 = vector.shape_cast %214 : vector<1x128x128xf32> to vector<128x128xf32>
    %cst_93 = arith.constant dense<0.000000e+00> : vector<32x128xf32>
    %216 = tpu.matmul %213, %215, %cst_93 {dimension_numbers = #tpu.dot_dimension_numbers<[1], [0], [0], [1], [0, 0, 1, 1], [], []>} : vector<32x128xf32>, vector<128x128xf32>, vector<32x128xf32> -> vector<32x128xf32>
    %c1_94 = arith.constant 1 : index
    %c0_95 = arith.constant 0 : index
    %c0_96 = arith.constant 0 : index
    %217 = vector.load %arg8[%c1_94, %c0_95, %c0_96] : memref<2x1x128xf32, #tpu.memory_space<vmem>>, vector<1x1x128xf32>
    %218 = vector.shape_cast %217 : vector<1x1x128xf32> to vector<1x128xf32>
    %219 = vector.broadcast %218 : vector<1x128xf32> to vector<32x128xf32>
    %220 = arith.addf %216, %219 : vector<32x128xf32>
    %221 = arith.addf %168, %220 : vector<32x128xf32>
    %c1_97 = arith.constant 1 : index
    %c0_98 = arith.constant 0 : index
    %c0_99 = arith.constant 0 : index
    %222 = vector.load %arg9[%c1_97, %c0_98, %c0_99] : memref<2x1x128xf32, #tpu.memory_space<vmem>>, vector<1x1x128xf32>
    %223 = vector.shape_cast %222 : vector<1x1x128xf32> to vector<1x128xf32>
    %c1_100 = arith.constant 1 : index
    %c0_101 = arith.constant 0 : index
    %c0_102 = arith.constant 0 : index
    %224 = vector.load %arg10[%c1_100, %c0_101, %c0_102] : memref<2x1x128xf32, #tpu.memory_space<vmem>>, vector<1x1x128xf32>
    %225 = vector.shape_cast %224 : vector<1x1x128xf32> to vector<1x128xf32>
    %cst_103 = arith.constant dense<0.000000e+00> : vector<32xf32>
    %226 = vector.multi_reduction <add>, %221, %cst_103 [1] : vector<32x128xf32> to vector<32xf32>
    %227 = vector.shape_cast %226 : vector<32xf32> to vector<32x1xf32>
    %cst_104 = arith.constant 1.280000e+02 : f32
    %228 = vector.broadcast %cst_104 : f32 to vector<32x1xf32>
    %229 = arith.divf %227, %228 : vector<32x1xf32>
    %230 = vector.broadcast %229 : vector<32x1xf32> to vector<32x128xf32>
    %231 = arith.subf %221, %230 : vector<32x128xf32>
    %232 = arith.mulf %231, %231 : vector<32x128xf32>
    %cst_105 = arith.constant dense<0.000000e+00> : vector<32xf32>
    %233 = vector.multi_reduction <add>, %232, %cst_105 [1] : vector<32x128xf32> to vector<32xf32>
    %234 = vector.shape_cast %233 : vector<32xf32> to vector<32x1xf32>
    %cst_106 = arith.constant 1.280000e+02 : f32
    %235 = vector.broadcast %cst_106 : f32 to vector<32x1xf32>
    %236 = arith.divf %234, %235 : vector<32x1xf32>
    %237 = vector.broadcast %229 : vector<32x1xf32> to vector<32x128xf32>
    %238 = arith.subf %221, %237 : vector<32x128xf32>
    %cst_107 = arith.constant 9.99999996E-13 : f32
    %239 = vector.broadcast %cst_107 : f32 to vector<32x1xf32>
    %240 = arith.addf %236, %239 : vector<32x1xf32>
    %241 = math.rsqrt %240 : vector<32x1xf32>
    %242 = vector.broadcast %241 : vector<32x1xf32> to vector<32x128xf32>
    %243 = arith.mulf %238, %242 : vector<32x128xf32>
    %244 = vector.broadcast %223 : vector<1x128xf32> to vector<32x128xf32>
    %245 = arith.mulf %243, %244 : vector<32x128xf32>
    %246 = vector.broadcast %225 : vector<1x128xf32> to vector<32x128xf32>
    %247 = arith.addf %245, %246 : vector<32x128xf32>
    %c1_108 = arith.constant 1 : index
    %c0_109 = arith.constant 0 : index
    %c0_110 = arith.constant 0 : index
    %248 = vector.load %arg11[%c1_108, %c0_109, %c0_110] : memref<2x128x512xf32, #tpu.memory_space<vmem>>, vector<1x128x512xf32>
    %249 = vector.shape_cast %248 : vector<1x128x512xf32> to vector<128x512xf32>
    %cst_111 = arith.constant dense<0.000000e+00> : vector<32x512xf32>
    %250 = tpu.matmul %247, %249, %cst_111 {dimension_numbers = #tpu.dot_dimension_numbers<[1], [0], [0], [1], [0, 0, 1, 1], [], []>} : vector<32x128xf32>, vector<128x512xf32>, vector<32x512xf32> -> vector<32x512xf32>
    %c1_112 = arith.constant 1 : index
    %c0_113 = arith.constant 0 : index
    %c0_114 = arith.constant 0 : index
    %251 = vector.load %arg12[%c1_112, %c0_113, %c0_114] : memref<2x1x512xf32, #tpu.memory_space<vmem>>, vector<1x1x512xf32>
    %252 = vector.shape_cast %251 : vector<1x1x512xf32> to vector<1x512xf32>
    %253 = vector.broadcast %252 : vector<1x512xf32> to vector<32x512xf32>
    %254 = arith.addf %250, %253 : vector<32x512xf32>
    %cst_115 = arith.constant 5.000000e-01 : f32
    %255 = vector.broadcast %cst_115 : f32 to vector<32x512xf32>
    %256 = arith.mulf %255, %254 : vector<32x512xf32>
    %cst_116 = arith.constant 4.471500e-02 : f32
    %257 = vector.broadcast %cst_116 : f32 to vector<32x512xf32>
    %258 = arith.mulf %257, %254 : vector<32x512xf32>
    %259 = arith.mulf %258, %254 : vector<32x512xf32>
    %260 = arith.mulf %259, %254 : vector<32x512xf32>
    %261 = arith.addf %254, %260 : vector<32x512xf32>
    %cst_117 = arith.constant 0.797884583 : f32
    %262 = vector.broadcast %cst_117 : f32 to vector<32x512xf32>
    %263 = arith.mulf %262, %261 : vector<32x512xf32>
    %264 = math.tanh %263 : vector<32x512xf32>
    %cst_118 = arith.constant 1.000000e+00 : f32
    %265 = vector.broadcast %cst_118 : f32 to vector<32x512xf32>
    %266 = arith.addf %265, %264 : vector<32x512xf32>
    %267 = arith.mulf %256, %266 : vector<32x512xf32>
    %c1_119 = arith.constant 1 : index
    %c0_120 = arith.constant 0 : index
    %c0_121 = arith.constant 0 : index
    %268 = vector.load %arg13[%c1_119, %c0_120, %c0_121] : memref<2x512x128xf32, #tpu.memory_space<vmem>>, vector<1x512x128xf32>
    %269 = vector.shape_cast %268 : vector<1x512x128xf32> to vector<512x128xf32>
    %cst_122 = arith.constant dense<0.000000e+00> : vector<32x128xf32>
    %270 = tpu.matmul %267, %269, %cst_122 {dimension_numbers = #tpu.dot_dimension_numbers<[1], [0], [0], [1], [0, 0, 1, 1], [], []>} : vector<32x512xf32>, vector<512x128xf32>, vector<32x128xf32> -> vector<32x128xf32>
    %c1_123 = arith.constant 1 : index
    %c0_124 = arith.constant 0 : index
    %c0_125 = arith.constant 0 : index
    %271 = vector.load %arg14[%c1_123, %c0_124, %c0_125] : memref<2x1x128xf32, #tpu.memory_space<vmem>>, vector<1x1x128xf32>
    %272 = vector.shape_cast %271 : vector<1x1x128xf32> to vector<1x128xf32>
    %273 = vector.broadcast %272 : vector<1x128xf32> to vector<32x128xf32>
    %274 = arith.addf %270, %273 : vector<32x128xf32>
    %275 = arith.addf %247, %274 : vector<32x128xf32>
    %c1_126 = arith.constant 1 : index
    %c0_127 = arith.constant 0 : index
    %c0_128 = arith.constant 0 : index
    %276 = vector.load %arg15[%c1_126, %c0_127, %c0_128] : memref<2x1x128xf32, #tpu.memory_space<vmem>>, vector<1x1x128xf32>
    %277 = vector.shape_cast %276 : vector<1x1x128xf32> to vector<1x128xf32>
    %c1_129 = arith.constant 1 : index
    %c0_130 = arith.constant 0 : index
    %c0_131 = arith.constant 0 : index
    %278 = vector.load %arg16[%c1_129, %c0_130, %c0_131] : memref<2x1x128xf32, #tpu.memory_space<vmem>>, vector<1x1x128xf32>
    %279 = vector.shape_cast %278 : vector<1x1x128xf32> to vector<1x128xf32>
    %cst_132 = arith.constant dense<0.000000e+00> : vector<32xf32>
    %280 = vector.multi_reduction <add>, %275, %cst_132 [1] : vector<32x128xf32> to vector<32xf32>
    %281 = vector.shape_cast %280 : vector<32xf32> to vector<32x1xf32>
    %cst_133 = arith.constant 1.280000e+02 : f32
    %282 = vector.broadcast %cst_133 : f32 to vector<32x1xf32>
    %283 = arith.divf %281, %282 : vector<32x1xf32>
    %284 = vector.broadcast %283 : vector<32x1xf32> to vector<32x128xf32>
    %285 = arith.subf %275, %284 : vector<32x128xf32>
    %286 = arith.mulf %285, %285 : vector<32x128xf32>
    %cst_134 = arith.constant dense<0.000000e+00> : vector<32xf32>
    %287 = vector.multi_reduction <add>, %286, %cst_134 [1] : vector<32x128xf32> to vector<32xf32>
    %288 = vector.shape_cast %287 : vector<32xf32> to vector<32x1xf32>
    %cst_135 = arith.constant 1.280000e+02 : f32
    %289 = vector.broadcast %cst_135 : f32 to vector<32x1xf32>
    %290 = arith.divf %288, %289 : vector<32x1xf32>
    %291 = vector.broadcast %283 : vector<32x1xf32> to vector<32x128xf32>
    %292 = arith.subf %275, %291 : vector<32x128xf32>
    %cst_136 = arith.constant 9.99999996E-13 : f32
    %293 = vector.broadcast %cst_136 : f32 to vector<32x1xf32>
    %294 = arith.addf %290, %293 : vector<32x1xf32>
    %295 = math.rsqrt %294 : vector<32x1xf32>
    %296 = vector.broadcast %295 : vector<32x1xf32> to vector<32x128xf32>
    %297 = arith.mulf %292, %296 : vector<32x128xf32>
    %298 = vector.broadcast %277 : vector<1x128xf32> to vector<32x128xf32>
    %299 = arith.mulf %297, %298 : vector<32x128xf32>
    %300 = vector.broadcast %279 : vector<1x128xf32> to vector<32x128xf32>
    %301 = arith.addf %299, %300 : vector<32x128xf32>
    %302 = vector.shape_cast %301 : vector<32x128xf32> to vector<2x16x128xf32>
    %c0_137 = arith.constant 0 : index
    %c0_138 = arith.constant 0 : index
    %c0_139 = arith.constant 0 : index
    %303 = vector.load %arg17[%c0_137, %c0_138, %c0_139] : memref<2x16x128xf32, #tpu.memory_space<vmem>>, vector<2x16x128xf32>
    tpu.vector_store %arg17[%c0_137, %c0_138, %c0_139], %302 {strides = array<i32>} : memref<2x16x128xf32, #tpu.memory_space<vmem>>, vector<2x16x128xf32>,
    return
  }
}

</mosaic_0001>

<bundles_post_ra>
// kernel: tpu_custom_call.1
= control target key start
LH: loop header
LB: loop body
LE: loop exit
PB: predicated region body
PF: predicated region fallthrough
CT: control target
= control target key end

     0   :  { %s7294_s0 = inlined_call_operand.hbm [shape: f32[2,16,128], index: 0, kind: input, shape index: {}]   ;;  %s7295_s1 = inlined_call_operand.hbm [shape: f32[16,128], index: 1, kind: input, shape index: {}]   ;;  %s7296_s2 = inlined_call_operand.hbm [shape: f32[1,128], index: 2, kind: input, shape index: {}]   ;;  %s7297_s3 = inlined_call_operand.hbm [shape: f32[1,128], index: 3, kind: input, shape index: {}]   ;;  %s7298_s4 = inlined_call_operand.hbm [shape: f32[1,128], index: 4, kind: input, shape index: {}]   ;;  %s7299_s5 = inlined_call_operand.hbm [shape: f32[2,128,384], index: 5, kind: input, shape index: {}]   ;;  %s7300_s6 = inlined_call_operand.hbm [shape: f32[2,1,384], index: 6, kind: input, shape index: {}]   ;;  %s7301_s7 = inlined_call_operand.hbm [shape: f32[2,128,128], index: 7, kind: input, shape index: {}]   ;;  %s7302_s8 = inlined_call_operand.hbm [shape: f32[2,1,128], index: 8, kind: input, shape index: {}]   ;;  %s7303_s9 = inlined_call_operand.hbm [shape: f32[2,1,128], index: 9, kind: input, shape index: {}]   ;;  %s7304_s10 = inlined_call_operand.hbm [shape: f32[2,1,128], index: 10, kind: input, shape index: {}]   ;;  %s7305_s11 = inlined_call_operand.hbm [shape: f32[2,128,512], index: 11, kind: input, shape index: {}]   ;;  %s7306_s12 = inlined_call_operand.hbm [shape: f32[2,1,512], index: 12, kind: input, shape index: {}]   ;;  %s7307_s13 = inlined_call_operand.hbm [shape: f32[2,512,128], index: 13, kind: input, shape index: {}]   ;;  %s7308_s14 = inlined_call_operand.hbm [shape: f32[2,1,128], index: 14, kind: input, shape index: {}]   ;;  %s7309_s15 = inlined_call_operand.hbm [shape: f32[2,1,128], index: 15, kind: input, shape index: {}]   ;;  %s7310_s16 = inlined_call_operand.hbm [shape: f32[2,1,128], index: 16, kind: input, shape index: {}]   ;;  %s7311_s17 = inlined_call_operand.hbm [shape: f32[2,16,128], index: 17, kind: output, shape index: {}]  }
   0x1   :  { %7318 = sst [smem:[#allocation40_spill]] %s7294_s0 }
   0x2   :  { %7319 = sst [smem:[#allocation41_spill]] %s7295_s1 }
   0x3   :  { %22 = vsyncpa [#allocation3], 0 }
   0x4   :  { %23 = vsyncpa [#allocation6], 0 }
   0x5   :  { %24 = vsyncpa [#allocation9], 0 }
   0x6   :  { %25 = vsyncpa [#allocation12], 0 }
   0x7   :  { %26 = vsyncpa [#allocation15], 0 }
   0x8   :  { %27 = vsyncpa [#allocation18], 0 }
   0x9   :  { %28 = vsyncpa [#allocation21], 0 }
   0xa   :  { %29 = vsyncpa [#allocation24], 0 }
   0xb   :  { %30 = vsyncpa [#allocation27], 0 }
   0xc   :  { %31 = vsyncpa [#allocation4], 0  ;;  %s6142_s24 = smov [#allocation5]   ;;  %s6143_s26 = smov [#allocation8]  }
   0xd   :  { %s49_s25 = sshll.u32 %s6142_s24, 4  ;;  %s72_s27 = sshll.u32 %s6143_s26, 4  ;;  %s50_s25 = int_to_ptr.vmem [resolvable:$true] %s49_s25  ;;  %s6263_s27 = int_to_ptr.vmem [resolvable:$true] %s72_s27 }
   0xe   :  { %s7320_s0 = sld [smem:[#allocation41_spill]] }
  0x14   :  { %s5726_s30 = scalar_lea.hbm %s7320_s0, 256 }
  0x15   :  { %p5727_p0 = scmp.ne.s32.totalorder %s7320_s0, %s5726_s30  ;;  %p5730_p1 = scmp.lt.u32.totalorder %s5726_s30, %s7320_s0 }
  0x17   :  { %p5732_p2 = pnand %p5730_p1, %p5727_p0 }
  0x19   :  { %5735 = shalt.err (!%p5732_p2)
}
  0x1a   :  { %s5736_s21 = scalar_lea.vmem %s50_s25, 256  ;;  %p5741_p4 = scmp.lt.s32.totalorder %s50_s25, %s50_s25 }
  0x1b   :  { %p5737_p3 = scmp.ne.s32.totalorder %s50_s25, %s5736_s21  ;;  %p5742_p5 = scmp.lt.s32.totalorder %s5736_s21, %s5736_s21 }
  0x1d   :  { %p5743_p6 = por %p5742_p5, %p5741_p4 }
  0x1f   :  { %p5744_p7 = pnand %p5743_p6, %p5737_p3 }
  0x21   :  { %5747 = shalt.err (!%p5744_p7)
}
  0x22   :  { %s7314_s22 = smov 128   ;;  %s6145_s23 = smov 8  }
  0x23   :  { %55 = dma.hbm_to_vmem [thread:$0]  %s7320_s0, 256, %s50_s25, [#allocation6], %s7314_s22, %s7314_s22, %s6145_s23  }
  0x24   :  { %s5748_s30 = scalar_lea.hbm %s7297_s3, 16 }
  0x25   :  { %p5749_p8 = scmp.ne.s32.totalorder %s7297_s3, %s5748_s30  ;;  %p5752_p9 = scmp.lt.u32.totalorder %s5748_s30, %s7297_s3 }
  0x27   :  { %p5754_p10 = pnand %p5752_p9, %p5749_p8 }
  0x29   :  { %5757 = shalt.err (!%p5754_p10)
}
  0x2a   :  { %s5758_s21 = scalar_lea.vmem %s6263_s27, 16  ;;  %s5762_s25 = scalar_lea.vmem %s6263_s27, 32 }
  0x2b   :  { %p5759_p11 = scmp.ne.s32.totalorder %s6263_s27, %s5758_s21  ;;  %p5763_p12 = scmp.lt.s32.totalorder %s6263_s27, %s6263_s27 }
  0x2c   :  { %p5764_p13 = scmp.lt.s32.totalorder %s5762_s25, %s5758_s21 }
  0x2e   :  { %p5765_p0 = por %p5764_p13, %p5763_p12 }
  0x30   :  { %p5766_p1 = pnand %p5765_p0, %p5759_p11 }
  0x32   :  { %5769 = shalt.err (!%p5766_p1)
}
  0x33   :  { %75 = dma.hbm_to_vmem [thread:$0]  %s7297_s3, 16, %s6263_s27, [#allocation9]  }
  0x34   :  { %s6146_s26 = smov [#allocation11]   ;;  %s5770_s18 = scalar_lea.hbm %s7299_s5, 12288 }
  0x35   :  { %s91_s28 = sshll.u32 %s6146_s26, 4  ;;  %p5771_p2 = scmp.ne.s32.totalorder %s7299_s5, %s5770_s18  ;;  %s92_s28 = int_to_ptr.vmem [resolvable:$true] %s91_s28 }
  0x36   :  { %p5774_p3 = scmp.lt.u32.totalorder %s5770_s18, %s7299_s5 }
  0x38   :  { %p5776_p4 = pnand %p5774_p3, %p5771_p2 }
  0x3a   :  { %5779 = shalt.err (!%p5776_p4)
}
  0x3b   :  { %s5780_s25 = scalar_lea.vmem %s92_s28, 12288  ;;  %p5785_p6 = scmp.lt.s32.totalorder %s92_s28, %s92_s28 }
  0x3c   :  { %p5781_p5 = scmp.ne.s32.totalorder %s92_s28, %s5780_s25  ;;  %p5786_p7 = scmp.lt.s32.totalorder %s5780_s25, %s5780_s25 }
  0x3e   :  { %p5787_p8 = por %p5786_p7, %p5785_p6 }
  0x40   :  { %p5788_p9 = pnand %p5787_p8, %p5781_p5 }
  0x42   :  { %5791 = shalt.err (!%p5788_p9)
}
  0x43   :  { %s6147_s3 = smov 384   ;;  %s6148_s27 = smov 24  }
  0x44   :  { %97 = dma.hbm_to_vmem [thread:$0]  %s7299_s5, 12288, %s92_s28, [#allocation12], %s6147_s3, %s6147_s3, %s6148_s27  }
  0x45   :  { %s6149_s26 = smov [#allocation14]   ;;  %s5792_s19 = scalar_lea.hbm %s7301_s7, 4096 }
  0x46   :  { %s115_s29 = sshll.u32 %s6149_s26, 4  ;;  %p5793_p10 = scmp.ne.s32.totalorder %s7301_s7, %s5792_s19  ;;  %s116_s29 = int_to_ptr.vmem [resolvable:$true] %s115_s29 }
  0x47   :  { %p5796_p11 = scmp.lt.u32.totalorder %s5792_s19, %s7301_s7 }
  0x49   :  { %p5798_p12 = pnand %p5796_p11, %p5793_p10 }
  0x4b   :  { %5801 = shalt.err (!%p5798_p12)
}
  0x4c   :  { %s5802_s22 = scalar_lea.vmem %s116_s29, 4096  ;;  %p5807_p0 = scmp.lt.s32.totalorder %s116_s29, %s116_s29 }
  0x4d   :  { %p5803_p13 = scmp.ne.s32.totalorder %s116_s29, %s5802_s22  ;;  %p5808_p1 = scmp.lt.s32.totalorder %s5802_s22, %s5802_s22 }
  0x4f   :  { %p5809_p2 = por %p5808_p1, %p5807_p0 }
  0x51   :  { %p5810_p3 = pnand %p5809_p2, %p5803_p13 }
  0x53   :  { %5813 = shalt.err (!%p5810_p3)
}
  0x54   :  { %s7321_s5 = smov 128   ;;  %s6150_s27 = smov [#allocation17]  }
  0x55   :  { %121 = dma.hbm_to_vmem [thread:$0]  %s7301_s7, 4096, %s116_s29, [#allocation15], %s7321_s5, %s7321_s5, %s6145_s23  }
  0x56   :  { %s139_s0 = sshll.u32 %s6150_s27, 4  ;;  %s6151_s24 = smov [#allocation20]   ;;  %s140_s0 = int_to_ptr.vmem [resolvable:$true] %s139_s0 }
  0x57   :  { %s163_s26 = sshll.u32 %s6151_s24, 4  ;;  %s5814_s22 = scalar_lea.hbm %s7303_s9, 32  ;;  %s6325_s26 = int_to_ptr.vmem [resolvable:$true] %s163_s26 }
  0x58   :  { %p5815_p4 = scmp.ne.s32.totalorder %s7303_s9, %s5814_s22  ;;  %p5818_p5 = scmp.lt.u32.totalorder %s5814_s22, %s7303_s9 }
  0x5a   :  { %p5820_p6 = pnand %p5818_p5, %p5815_p4 }
  0x5c   :  { %5823 = shalt.err (!%p5820_p6)
}
  0x5d   :  { %s5824_s7 = scalar_lea.vmem %s140_s0, 32  ;;  %p5829_p8 = scmp.lt.s32.totalorder %s140_s0, %s140_s0 }
  0x5e   :  { %p5825_p7 = scmp.ne.s32.totalorder %s140_s0, %s5824_s7  ;;  %p5830_p9 = scmp.lt.s32.totalorder %s5824_s7, %s5824_s7 }
  0x60   :  { %p5831_p10 = por %p5830_p9, %p5829_p8 }
  0x62   :  { %p5832_p11 = pnand %p5831_p10, %p5825_p7 }
  0x64   :  { %5835 = shalt.err (!%p5832_p11)
}
  0x65   :  { %s7316_s29 = smov 16   ;;  %s6153_s25 = smov 1  }
  0x66   :  { %145 = dma.hbm_to_vmem [thread:$0]  %s7303_s9, 32, %s140_s0, [#allocation18], %s7316_s29, %s7316_s29, %s6153_s25  }
  0x67   :  { %s5836_s30 = scalar_lea.hbm %s7305_s11, 16384 }
  0x68   :  { %p5837_p12 = scmp.ne.s32.totalorder %s7305_s11, %s5836_s30  ;;  %p5840_p13 = scmp.lt.u32.totalorder %s5836_s30, %s7305_s11 }
  0x6a   :  { %p5842_p0 = pnand %p5840_p13, %p5837_p12 }
  0x6c   :  { %5845 = shalt.err (!%p5842_p0)
}
  0x6d   :  { %s5846_s20 = scalar_lea.vmem %s6325_s26, 16384  ;;  %p5851_p2 = scmp.lt.s32.totalorder %s6325_s26, %s6325_s26 }
  0x6e   :  { %p5847_p1 = scmp.ne.s32.totalorder %s6325_s26, %s5846_s20  ;;  %p5852_p3 = scmp.lt.s32.totalorder %s5846_s20, %s5846_s20 }
  0x70   :  { %p5853_p4 = por %p5852_p3, %p5851_p2 }
  0x72   :  { %p5854_p5 = pnand %p5853_p4, %p5847_p1 }
  0x74   :  { %5857 = shalt.err (!%p5854_p5)
}
  0x75   :  { %s6154_s9 = smov 512   ;;  %s6155_s0 = smov 32  }
  0x76   :  { %169 = dma.hbm_to_vmem [thread:$0]  %s7305_s11, 16384, %s6325_s26, [#allocation21], %s6154_s9, %s6154_s9, %s6155_s0  }
  0x77   :  { %s6156_s28 = smov [#allocation23]   ;;  %s6157_s27 = smov [#allocation26]  }
  0x78   :  { %s187_s3 = sshll.u32 %s6156_s28, 4  ;;  %s211_s24 = sshll.u32 %s6157_s27, 4  ;;  %s188_s3 = int_to_ptr.vmem [resolvable:$true] %s187_s3  ;;  %s6359_s24 = int_to_ptr.vmem [resolvable:$true] %s211_s24 }
  0x79   :  { %s5858_s22 = scalar_lea.hbm %s7307_s13, 16384 }
  0x7a   :  { %p5859_p6 = scmp.ne.s32.totalorder %s7307_s13, %s5858_s22  ;;  %p5862_p7 = scmp.lt.u32.totalorder %s5858_s22, %s7307_s13 }
  0x7c   :  { %p5864_p8 = pnand %p5862_p7, %p5859_p6 }
  0x7e   :  { %5867 = shalt.err (!%p5864_p8)
}
  0x7f   :  { %s5868_s11 = scalar_lea.vmem %s188_s3, 16384  ;;  %p5873_p10 = scmp.lt.s32.totalorder %s188_s3, %s188_s3 }
  0x80   :  { %p5869_p9 = scmp.ne.s32.totalorder %s188_s3, %s5868_s11  ;;  %p5874_p11 = scmp.lt.s32.totalorder %s5868_s11, %s5868_s11 }
  0x82   :  { %p5875_p12 = por %p5874_p11, %p5873_p10 }
  0x84   :  { %p5876_p13 = pnand %p5875_p12, %p5869_p9 }
  0x86   :  { %5879 = shalt.err (!%p5876_p13)
}
  0x87   :  { %193 = dma.hbm_to_vmem [thread:$0]  %s7307_s13, 16384, %s188_s3, [#allocation24], %s7321_s5, %s7321_s5, %s6145_s23  }
  0x88   :  { %s5880_s29 = scalar_lea.hbm %s7309_s15, 32 }
  0x89   :  { %p5881_p0 = scmp.ne.s32.totalorder %s7309_s15, %s5880_s29  ;;  %p5884_p1 = scmp.lt.u32.totalorder %s5880_s29, %s7309_s15 }
  0x8b   :  { %p5886_p2 = pnand %p5884_p1, %p5881_p0 }
  0x8d   :  { %5889 = shalt.err (!%p5886_p2)
}
  0x8e   :  { %s5890_s18 = scalar_lea.vmem %s6359_s24, 32  ;;  %p5895_p4 = scmp.lt.s32.totalorder %s6359_s24, %s6359_s24 }
  0x8f   :  { %p5891_p3 = scmp.ne.s32.totalorder %s6359_s24, %s5890_s18  ;;  %p5896_p5 = scmp.lt.s32.totalorder %s5890_s18, %s5890_s18 }
  0x91   :  { %p5897_p6 = por %p5896_p5, %p5895_p4 }
  0x93   :  { %p5898_p7 = pnand %p5897_p6, %p5891_p3 }
  0x95   :  { %5901 = shalt.err (!%p5898_p7)
}
  0x96   :  { %s7322_s13 = smov 16   ;;  %s6158_s19 = smov [#allocation2]  }
  0x97   :  { %217 = dma.hbm_to_vmem [thread:$0]  %s7309_s15, 32, %s6359_s24, [#allocation27], %s7322_s13, %s7322_s13, %s6153_s25  }
  0x98   :  { %s37_s1 = sshll.u32 %s6158_s19, 4  ;;  %s6159_s20 = smov [#allocation7]   ;;  %s38_s1 = int_to_ptr.vmem [resolvable:$true] %s37_s1 }
  0x99   :  { %s62_s11 = sshll.u32 %s6159_s20, 4  ;;  %s7323_s0 = sld [smem:[#allocation40_spill]]  ;;  %s63_s11 = int_to_ptr.vmem [resolvable:$true] %s62_s11 }
  0x9f   :  { %s5902_s21 = scalar_lea.hbm %s7323_s0, 512 }
  0xa0   :  { %p5903_p8 = scmp.ne.s32.totalorder %s7323_s0, %s5902_s21  ;;  %p5906_p9 = scmp.lt.u32.totalorder %s5902_s21, %s7323_s0 }
  0xa2   :  { %p5908_p10 = pnand %p5906_p9, %p5903_p8 }
  0xa4   :  { %5911 = shalt.err (!%p5908_p10)
}
  0xa5   :  { %s5912_s15 = scalar_lea.vmem %s38_s1, 512  ;;  %p5917_p12 = scmp.lt.s32.totalorder %s38_s1, %s38_s1 }
  0xa6   :  { %p5913_p11 = scmp.ne.s32.totalorder %s38_s1, %s5912_s15  ;;  %p5918_p13 = scmp.lt.s32.totalorder %s5912_s15, %s5912_s15 }
  0xa8   :  { %p5919_p0 = por %p5918_p13, %p5917_p12 }
  0xaa   :  { %p5920_p1 = pnand %p5919_p0, %p5913_p11 }
  0xac   :  { %5923 = shalt.err (!%p5920_p1)
}
  0xad   :  { %43 = dma.hbm_to_vmem [thread:$0]  %s7323_s0, 512, %s38_s1, [#allocation3], %s7321_s5, %s7321_s5, %s6145_s23  }
  0xae   :  { %s5924_s22 = scalar_lea.hbm %s7296_s2, 16 }
  0xaf   :  { %p5925_p2 = scmp.ne.s32.totalorder %s7296_s2, %s5924_s22  ;;  %p5928_p3 = scmp.lt.u32.totalorder %s5924_s22, %s7296_s2 }
  0xb1   :  { %p5930_p4 = pnand %p5928_p3, %p5925_p2 }
  0xb3   :  { %5933 = shalt.err (!%p5930_p4)
}
  0xb4   :  { %s5934_s21 = scalar_lea.vmem %s63_s11, 16  ;;  %s5938_s29 = scalar_lea.vmem %s63_s11, 32 }
  0xb5   :  { %p5935_p5 = scmp.ne.s32.totalorder %s63_s11, %s5934_s21  ;;  %p5939_p6 = scmp.lt.s32.totalorder %s63_s11, %s63_s11 }
  0xb6   :  { %p5940_p7 = scmp.lt.s32.totalorder %s5938_s29, %s5934_s21 }
  0xb8   :  { %p5941_p8 = por %p5940_p7, %p5939_p6 }
  0xba   :  { %p5942_p9 = pnand %p5941_p8, %p5935_p5 }
  0xbc   :  { %5945 = shalt.err (!%p5942_p9)
}
  0xbd   :  { %65 = dma.hbm_to_vmem [thread:$0]  %s7296_s2, 16, %s63_s11, [#allocation6]  }
  0xbe   :  { %s6160_s7 = smov [#allocation10]   ;;  %s6161_s27 = smov [#allocation13]  }
  0xbf   :  { %s82_s28 = sshll.u32 %s6160_s7, 4  ;;  %s103_s15 = sshll.u32 %s6161_s27, 4  ;;  %s83_s28 = int_to_ptr.vmem [resolvable:$true] %s82_s28  ;;  %s6423_s15 = int_to_ptr.vmem [resolvable:$true] %s103_s15 }
  0xc0   :  { %s5946_s18 = scalar_lea.hbm %s7298_s4, 16 }
  0xc1   :  { %p5947_p10 = scmp.ne.s32.totalorder %s7298_s4, %s5946_s18  ;;  %p5950_p11 = scmp.lt.u32.totalorder %s5946_s18, %s7298_s4 }
  0xc3   :  { %p5952_p12 = pnand %p5950_p11, %p5947_p10 }
  0xc5   :  { %5955 = shalt.err (!%p5952_p12)
}
  0xc6   :  { %s5956_s2 = scalar_lea.vmem %s83_s28, 16  ;;  %s5960_s11 = scalar_lea.vmem %s83_s28, 32 }
  0xc7   :  { %p5957_p13 = scmp.ne.s32.totalorder %s83_s28, %s5956_s2  ;;  %p5961_p0 = scmp.lt.s32.totalorder %s83_s28, %s83_s28 }
  0xc8   :  { %p5962_p1 = scmp.lt.s32.totalorder %s5960_s11, %s5956_s2 }
  0xca   :  { %p5963_p2 = por %p5962_p1, %p5961_p0 }
  0xcc   :  { %p5964_p3 = pnand %p5963_p2, %p5957_p13 }
  0xce   :  { %5967 = shalt.err (!%p5964_p3)
}
  0xcf   :  { %85 = dma.hbm_to_vmem [thread:$0]  %s7298_s4, 16, %s83_s28, [#allocation9]  }
  0xd0   :  { %s5968_s1 = scalar_lea.hbm %s7300_s6, 96 }
  0xd1   :  { %p5969_p4 = scmp.ne.s32.totalorder %s7300_s6, %s5968_s1  ;;  %p5972_p5 = scmp.lt.u32.totalorder %s5968_s1, %s7300_s6 }
  0xd3   :  { %p5974_p6 = pnand %p5972_p5, %p5969_p4 }
  0xd5   :  { %5977 = shalt.err (!%p5974_p6)
}
  0xd6   :  { %s5978_s30 = scalar_lea.vmem %s6423_s15, 96  ;;  %p5983_p8 = scmp.lt.s32.totalorder %s6423_s15, %s6423_s15 }
  0xd7   :  { %p5979_p7 = scmp.ne.s32.totalorder %s6423_s15, %s5978_s30  ;;  %p5984_p9 = scmp.lt.s32.totalorder %s5978_s30, %s5978_s30 }
  0xd9   :  { %p5985_p10 = por %p5984_p9, %p5983_p8 }
  0xdb   :  { %p5986_p11 = pnand %p5985_p10, %p5979_p7 }
  0xdd   :  { %5989 = shalt.err (!%p5986_p11)
}
  0xde   :  { %s6162_s4 = smov 48   ;;  %s6163_s28 = smov 3  }
  0xdf   :  { %109 = dma.hbm_to_vmem [thread:$0]  %s7300_s6, 96, %s6423_s15, [#allocation12], %s6162_s4, %s6162_s4, %s6163_s28  }
  0xe0   :  { %s6164_s22 = smov [#allocation16]   ;;  %s6165_s20 = smov [#allocation19]  }
  0xe1   :  { %s127_s19 = sshll.u32 %s6164_s22, 4  ;;  %s151_s2 = sshll.u32 %s6165_s20, 4  ;;  %s128_s19 = int_to_ptr.vmem [resolvable:$true] %s127_s19  ;;  %s6454_s2 = int_to_ptr.vmem [resolvable:$true] %s151_s2 }
  0xe2   :  { %s5990_s9 = scalar_lea.hbm %s7302_s8, 32 }
  0xe3   :  { %p5991_p12 = scmp.ne.s32.totalorder %s7302_s8, %s5990_s9  ;;  %p5994_p13 = scmp.lt.u32.totalorder %s5990_s9, %s7302_s8 }
  0xe5   :  { %p5996_p0 = pnand %p5994_p13, %p5991_p12 }
  0xe7   :  { %5999 = shalt.err (!%p5996_p0)
}
  0xe8   :  { %s6000_s6 = scalar_lea.vmem %s128_s19, 32  ;;  %p6005_p2 = scmp.lt.s32.totalorder %s128_s19, %s128_s19 }
  0xe9   :  { %p6001_p1 = scmp.ne.s32.totalorder %s128_s19, %s6000_s6  ;;  %p6006_p3 = scmp.lt.s32.totalorder %s6000_s6, %s6000_s6 }
  0xeb   :  { %p6007_p4 = por %p6006_p3, %p6005_p2 }
  0xed   :  { %p6008_p5 = pnand %p6007_p4, %p6001_p1 }
  0xef   :  { %6011 = shalt.err (!%p6008_p5)
}
  0xf0   :  { %133 = dma.hbm_to_vmem [thread:$0]  %s7302_s8, 32, %s128_s19, [#allocation15], %s7322_s13, %s7322_s13, %s6153_s25  }
  0xf1   :  { %s6012_s30 = scalar_lea.hbm %s7304_s10, 32 }
  0xf2   :  { %p6013_p6 = scmp.ne.s32.totalorder %s7304_s10, %s6012_s30  ;;  %p6016_p7 = scmp.lt.u32.totalorder %s6012_s30, %s7304_s10 }
  0xf4   :  { %p6018_p8 = pnand %p6016_p7, %p6013_p6 }
  0xf6   :  { %6021 = shalt.err (!%p6018_p8)
}
  0xf7   :  { %s6022_s22 = scalar_lea.vmem %s6454_s2, 32  ;;  %p6027_p10 = scmp.lt.s32.totalorder %s6454_s2, %s6454_s2 }
  0xf8   :  { %p6023_p9 = scmp.ne.s32.totalorder %s6454_s2, %s6022_s22  ;;  %p6028_p11 = scmp.lt.s32.totalorder %s6022_s22, %s6022_s22 }
  0xfa   :  { %p6029_p12 = por %p6028_p11, %p6027_p10 }
  0xfc   :  { %p6030_p13 = pnand %p6029_p12, %p6023_p9 }
  0xfe   :  { %6033 = shalt.err (!%p6030_p13)
}
  0xff   :  { %157 = dma.hbm_to_vmem [thread:$0]  %s7304_s10, 32, %s6454_s2, [#allocation18], %s7322_s13, %s7322_s13, %s6153_s25  }
 0x100   :  { %s6166_s20 = smov [#allocation22]   ;;  %s6034_s21 = scalar_lea.hbm %s7306_s12, 128 }
 0x101   :  { %s175_s11 = sshll.u32 %s6166_s20, 4  ;;  %p6035_p0 = scmp.ne.s32.totalorder %s7306_s12, %s6034_s21  ;;  %s176_s11 = int_to_ptr.vmem [resolvable:$true] %s175_s11 }
 0x102   :  { %p6038_p1 = scmp.lt.u32.totalorder %s6034_s21, %s7306_s12 }
 0x104   :  { %p6040_p2 = pnand %p6038_p1, %p6035_p0 }
 0x106   :  { %6043 = shalt.err (!%p6040_p2)
}
 0x107   :  { %s6044_s15 = scalar_lea.vmem %s176_s11, 128  ;;  %p6049_p4 = scmp.lt.s32.totalorder %s176_s11, %s176_s11 }
 0x108   :  { %p6045_p3 = scmp.ne.s32.totalorder %s176_s11, %s6044_s15  ;;  %p6050_p5 = scmp.lt.s32.totalorder %s6044_s15, %s6044_s15 }
 0x10a   :  { %p6051_p6 = por %p6050_p5, %p6049_p4 }
 0x10c   :  { %p6052_p7 = pnand %p6051_p6, %p6045_p3 }
 0x10e   :  { %6055 = shalt.err (!%p6052_p7)
}
 0x10f   :  { %s6167_s10 = smov 64   ;;  %s6168_s2 = smov 4  }
 0x110   :  { %181 = dma.hbm_to_vmem [thread:$0]  %s7306_s12, 128, %s176_s11, [#allocation21], %s6167_s10, %s6167_s10, %s6168_s2  }
 0x111   :  { %s6169_s24 = smov [#allocation25]   ;;  %s6170_s4 = smov [#allocation28]  }
 0x112   :  { %s199_s30 = sshll.u32 %s6169_s24, 4  ;;  %s223_s28 = sshll.u32 %s6170_s4, 4  ;;  %s200_s30 = int_to_ptr.vmem [resolvable:$true] %s199_s30  ;;  %s224_s28 = int_to_ptr.vmem [resolvable:$true] %s223_s28 }
 0x113   :  { %s6056_s22 = scalar_lea.hbm %s7308_s14, 32 }
 0x114   :  { %p6057_p8 = scmp.ne.s32.totalorder %s7308_s14, %s6056_s22  ;;  %p6060_p9 = scmp.lt.u32.totalorder %s6056_s22, %s7308_s14 }
 0x116   :  { %p6062_p10 = pnand %p6060_p9, %p6057_p8 }
 0x118   :  { %6065 = shalt.err (!%p6062_p10)
}
 0x119   :  { %s6066_s12 = scalar_lea.vmem %s200_s30, 32  ;;  %p6071_p12 = scmp.lt.s32.totalorder %s200_s30, %s200_s30 }
 0x11a   :  { %p6067_p11 = scmp.ne.s32.totalorder %s200_s30, %s6066_s12  ;;  %p6072_p13 = scmp.lt.s32.totalorder %s6066_s12, %s6066_s12 }
 0x11c   :  { %p6073_p0 = por %p6072_p13, %p6071_p12 }
 0x11e   :  { %p6074_p1 = pnand %p6073_p0, %p6067_p11 }
 0x120   :  { %6077 = shalt.err (!%p6074_p1)
}
 0x121   :  { %205 = dma.hbm_to_vmem [thread:$0]  %s7308_s14, 32, %s200_s30, [#allocation24], %s7322_s13, %s7322_s13, %s6153_s25  }
 0x122   :  { %s6078_s1 = scalar_lea.hbm %s7310_s16, 32 }
 0x123   :  { %p6079_p2 = scmp.ne.s32.totalorder %s7310_s16, %s6078_s1  ;;  %p6082_p3 = scmp.lt.u32.totalorder %s6078_s1, %s7310_s16 }
 0x125   :  { %p6084_p4 = pnand %p6082_p3, %p6079_p2 }
 0x127   :  { %6087 = shalt.err (!%p6084_p4)
}
 0x128   :  { %s6088_s7 = scalar_lea.vmem %s224_s28, 32  ;;  %p6093_p6 = scmp.lt.s32.totalorder %s224_s28, %s224_s28 }
 0x129   :  { %p6089_p5 = scmp.ne.s32.totalorder %s224_s28, %s6088_s7  ;;  %p6094_p7 = scmp.lt.s32.totalorder %s6088_s7, %s6088_s7 }
 0x12b   :  { %p6095_p8 = por %p6094_p7, %p6093_p6 }
 0x12d   :  { %p6096_p9 = pnand %p6095_p8, %p6089_p5 }
 0x12f   :  { %6099 = shalt.err (!%p6096_p9)
}
 0x130   :  { %229 = dma.hbm_to_vmem [thread:$0]  %s7310_s16, 32, %s224_s28, [#allocation27], %s7322_s13, %s7322_s13, %s6153_s25  }
 0x131   :  { %6122 = dma.done.wait [#allocation3], 512  }
 0x132   :  { %6123 = vsyncadd [#allocation3], 4294966784 }
 0x133   :  { %6124 = dma.done.wait [#allocation6], 272  }
 0x134   :  { %6125 = vsyncadd [#allocation6], 4294967024 }
 0x135   :  { %6126 = dma.done.wait [#allocation9], 32  }
 0x136   :  { %6127 = vsyncadd [#allocation9], 4294967264 }
 0x137   :  { %6128 = dma.done.wait [#allocation12], 12384  }
 0x138   :  { %6129 = vsyncadd [#allocation12], 4294954912 }
 0x139   :  { %6130 = dma.done.wait [#allocation15], 4128  }
 0x13a   :  { %6131 = vsyncadd [#allocation15], 4294963168 }
 0x13b   :  { %6132 = dma.done.wait [#allocation18], 64  }
 0x13c   :  { %6133 = vsyncadd [#allocation18], 4294967232 }
 0x13d   :  { %6134 = dma.done.wait [#allocation21], 16512  }
 0x13e   :  { %6135 = vsyncadd [#allocation21], 4294950784 }
 0x13f   :  { %6136 = dma.done.wait [#allocation24], 16416  }
 0x140   :  { %6137 = vsyncadd [#allocation24], 4294950880 }
 0x141   :  { %6138 = dma.done.wait [#allocation27], 64  }
 0x142   :  { %6139 = vsyncadd [#allocation27], 4294967232  ;;  %v281_v0 = vld [vmem:[#allocation2] sm:$0xff]  ;;  %v4292_v2 = vld [vmem:[#allocation7] ss:$0 sm:$0xff]  ;;  %vm608_vm0 = vcmask 523264  }
 0x143   :  { %v285_v1 = vld [vmem:[#allocation5] sm:$0xff]  ;;  %v283_v4 = vld [vmem:[#allocation2 + $0x10] sm:$0xff]  ;;  %v282_v5 = vld [vmem:[#allocation2 + $0x8] sm:$0xff]  ;;  %vm783_vm2 = vcmask 130048   ;;  %s6172_s16 = smov [#allocation29]  }
 0x144   :  { %v287_v3 = vadd.f32 %v285_v1, %v281_v0  ;;  %v286_v6 = vld [vmem:[#allocation5 + $0x8] sm:$0xff]  ;;  %v289_v7 = vadd.f32 %v285_v1, %v283_v4  ;;  %v284_v9 = vld [vmem:[#allocation2 + $0x18] sm:$0xff]  ;;  %vm6603_vm1 = vmpackc.low %vm608_vm0, %vm608_vm0  ;;  %s4272_s25 = sshll.u32 %s6172_s16, 4  ;;  %s4273_s25 = int_to_ptr.vmem [resolvable:$true] %s4272_s25 }
 0x145   :  { %v288_v8 = vadd.f32 %v286_v6, %v282_v5  ;;  %v290_v11 = vadd.f32 %v286_v6, %v284_v9  ;;  %v370_v15 = vld [vmem:[#allocation11 + $0x8] sm:$0xff]  ;;  %v373_v16 = vld [vmem:[#allocation11 + $0x20] sm:$0xff]  ;;  %v372_v19 = vld [vmem:[#allocation11 + $0x18] sm:$0xff]  ;;  %s6100_s13 = scalar_lea.vmem %s4273_s25, 512  ;;  %p6105_p11 = scmp.lt.s32.totalorder %s4273_s25, %s4273_s25 }
 0x146   :  { %v298_v10 = vadd.f32 %v4292_v2, %v287_v3  ;;  %v300_v12 = vadd.f32 %v4292_v2, %v289_v7  ;;  %v369_v17 = vld [vmem:[#allocation11] sm:$0xff]  ;;  %v4939_v18 = vpack.c.bf16 %v373_v16, %v370_v15  ;;  %v376_v20 = vld [vmem:[#allocation11 + $0x38] sm:$0xff]  ;;  %v379_v21 = vld [vmem:[#allocation11 + $0x50] sm:$0xff]  ;;  %p6101_p10 = scmp.ne.s32.totalorder %s4273_s25, %s6100_s13  ;;  %p6106_p12 = scmp.lt.s32.totalorder %s6100_s13, %s6100_s13 }
 0x147   :  { %v299_v13 = vadd.f32 %v4292_v2, %v288_v8  ;;  %v301_v14 = vadd.f32 %v4292_v2, %v290_v11  ;;  %v4941_v22 = vpack.c.bf16 %v372_v19, %v369_v17  ;;  %v4943_v23 = vpack.c.bf16 %v379_v21, %v376_v20  ;;  %v371_v24 = vld [vmem:[#allocation11 + $0x10] sm:$0xff]  ;;  %v374_v25 = vld [vmem:[#allocation11 + $0x28] sm:$0xff]  ;;  %v385_v30 = vld [vmem:[#allocation11 + $0x80] sm:$0xff] }
 0x148   :  { %304 = vadd.xlane.f32.xlu0 %v298_v10  ;;  %308 = vadd.xlane.f32.xlu1 %v300_v12  ;;  %v375_v26 = vld [vmem:[#allocation11 + $0x30] sm:$0xff]  ;;  %v4971_v27 = vpack.c.bf16 %v374_v25, %v371_v24  ;;  %v378_v28 = vld [vmem:[#allocation11 + $0x48] sm:$0xff]  ;;  %v377_v32 = vld [vmem:[#allocation11 + $0x40] sm:$0xff]  ;;  %p6107_p13 = por %p6106_p12, %p6105_p11 }
 0x149   :  { %4940 = vmatprep.subr.bf16.mxu0 %v4939_v18  ;;  %v382_v29 = vld [vmem:[#allocation11 + $0x68] sm:$0xff]  ;;  %v4945_v31 = vpack.c.bf16 %v378_v28, %v375_v26  ;;  %v380_v33 = vld [vmem:[#allocation11 + $0x58] sm:$0xff]  ;;  %v381_v36 = vld [vmem:[#allocation11 + $0x60] sm:$0xff] }
 0x14a   :  { %4942 = vmatpush1.bf16.msra.mxu0 %v4941_v22  ;;  %4972 = vmatprep.subr.bf16.mxu1 %v4971_v27  ;;  %v4947_v34 = vpack.c.bf16 %v385_v30, %v382_v29  ;;  %v4975_v35 = vpack.c.bf16 %v380_v33, %v377_v32  ;;  %v384_v37 = vld [vmem:[#allocation11 + $0x78] sm:$0xff]  ;;  %v391_v56 = vld [vmem:[#allocation11 + $0xb0] sm:$0xff]  ;;  %v386_v59 = vld [vmem:[#allocation11 + $0x88] sm:$0xff]  ;;  %v6171_v30 = vmov 0.0   ;;  %p6108_p0 = pnand %p6107_p13, %p6101_p10 }
 0x14b   :  { %4944 = vmatprep.subr.bf16.mxu0 %v4943_v23  ;;  %4974 = vmatpush3.bf16.msra.mxu1 %v4971_v27  ;;  %v4949_v38 = vpack.c.bf16 %v384_v37, %v381_v36  ;;  %v388_v55 = vld [vmem:[#allocation11 + $0x98] sm:$0xff]  ;;  %v383_v57 = vld [vmem:[#allocation11 + $0x70] sm:$0xff]  ;;  %v390_v61 = vld [vmem:[#allocation11 + $0xa8] sm:$0xff] }
 0x14c   :  { %306 = vadd.xlane.f32.xlu0 %v299_v13  ;;  %310 = vadd.xlane.f32.xlu1 %v301_v14  ;;  %v4951_v58 = vpack.c.bf16 %v391_v56, %v388_v55  ;;  %v387_v60 = vld [vmem:[#allocation11 + $0x90] sm:$0xff]  ;;  %v4979_v62 = vpack.c.bf16 %v386_v59, %v383_v57  ;;  %v394_v0 = vld [vmem:[#allocation11 + $0xc8] sm:$0xff]  ;;  %v397_v1 = vld [vmem:[#allocation11 + $0xe0] sm:$0xff] }
 0x14d   :  { %4976 = vmatprep.subr.bf16.mxu1 %v4975_v35  ;;  %v4953_v63 = vpack.c.bf16 %v390_v61, %v387_v60  ;;  %v389_v2 = vld [vmem:[#allocation11 + $0xa0] sm:$0xff]  ;;  %v4955_v3 = vpack.c.bf16 %v397_v1, %v394_v0  ;;  %v392_v4 = vld [vmem:[#allocation11 + $0xb8] sm:$0xff]  ;;  %v395_v11 = vld [vmem:[#allocation11 + $0xd0] sm:$0xff]  ;;  %498 = vmatprep.mubr.f32.mxu0 %v6171_v30 }
 0x14e   :  { %4946 = vmatpush1.bf16.msra.mxu0 %v4945_v31  ;;  %v393_v5 = vld [vmem:[#allocation11 + $0xc0] sm:$0xff]  ;;  %v396_v6 = vld [vmem:[#allocation11 + $0xd8] sm:$0xff]  ;;  %v4983_v7 = vpack.c.bf16 %v392_v4, %v389_v2  ;;  %v402_v15 = vld [vmem:[#allocation11 + $0x108] sm:$0xff] }
 0x14f   :  { %4948 = vmatprep.subr.bf16.mxu0 %v4947_v34  ;;  %4978 = vmatpush3.bf16.msra.mxu1 %v4975_v35  ;;  %v4957_v8 = vpack.c.bf16 %v396_v6, %v393_v5  ;;  %v400_v9 = vld [vmem:[#allocation11 + $0xf8] sm:$0xff]  ;;  %v406_v18 = vld [vmem:[#allocation11 + $0x128] sm:$0xff]  ;;  %v409_v19 = vld [vmem:[#allocation11 + $0x140] sm:$0xff] }
 0x150   :  { %4980 = vmatprep.subr.bf16.mxu1 %v4979_v62  ;;  %v401_v20 = vld [vmem:[#allocation11 + $0x100] sm:$0xff]  ;;  %v4963_v21 = vpack.c.bf16 %v409_v19, %v406_v18  ;;  %v404_v22 = vld [vmem:[#allocation11 + $0x118] sm:$0xff]  ;;  %v415_v28 = vld [vmem:[#allocation11 + $0x170] sm:$0xff] }
 0x151   :  { %v405_v23 = vld [vmem:[#allocation11 + $0x120] sm:$0xff]  ;;  %v408_v24 = vld [vmem:[#allocation11 + $0x138] sm:$0xff]  ;;  %v4991_v25 = vpack.c.bf16 %v404_v22, %v401_v20  ;;  %v407_v29 = vld [vmem:[#allocation11 + $0x130] sm:$0xff] }
 0x152   :  { %4950 = vmatpush1.bf16.msra.mxu0 %v4949_v38  ;;  %v4965_v26 = vpack.c.bf16 %v408_v24, %v405_v23  ;;  %v412_v27 = vld [vmem:[#allocation11 + $0x158] sm:$0xff]  ;;  %v410_v32 = vld [vmem:[#allocation11 + $0x148] sm:$0xff]  ;;  %v411_v33 = vld [vmem:[#allocation11 + $0x150] sm:$0xff] }
 0x153   :  { %4952 = vmatprep.subr.bf16.mxu0 %v4951_v58  ;;  %4982 = vmatpush3.bf16.msra.mxu1 %v4979_v62  ;;  %v4967_v31 = vpack.c.bf16 %v415_v28, %v412_v27  ;;  %v414_v34 = vld [vmem:[#allocation11 + $0x168] sm:$0xff]  ;;  %v4995_v35 = vpack.c.bf16 %v410_v32, %v407_v29  ;;  %v413_v37 = vld [vmem:[#allocation11 + $0x160] sm:$0xff]  ;;  %v416_v38 = vld [vmem:[#allocation11 + $0x178] sm:$0xff] }
 0x154   :  { %4984 = vmatprep.subr.bf16.mxu1 %v4983_v7  ;;  %v4969_v36 = vpack.c.bf16 %v414_v34, %v411_v33  ;;  %v4293_v57 = vld [vmem:[#allocation8] ss:$0 sm:$0xff]  ;;  %v4294_v59 = vld [vmem:[#allocation10] ss:$0 sm:$0xff] }
 0x156   :  { %4954 = vmatpush1.bf16.msra.mxu0 %v4953_v63 }
 0x157   :  { %4956 = vmatprep.subr.bf16.mxu0 %v4955_v3  ;;  %4986 = vmatpush3.bf16.msra.mxu1 %v4983_v7 }
 0x15a   :  { %4958 = vmatpush1.bf16.msra.mxu0 %v4957_v8 }
 0x1d5   :  { %v305_v39 = vpop.xlane.xlu0 %304  ;;  %v309_v41 = vpop.xlane.xlu1 %308 }
 0x1d6   :  { %v313_v40 = vmul.f32 0.0078125, %v305_v39  ;;  %v315_v42 = vmul.f32 0.0078125, %v309_v41  ;;  %v4999_v39 = vpack.c.bf16 %v416_v38, %v413_v37 }
 0x1d8   :  { %v6535_v43 = vsub.f32 %v298_v10, %v313_v40  ;;  %v6537_v44 = vsub.f32 %v300_v12, %v315_v42  ;;  %v403_v10 = vld [vmem:[#allocation11 + $0x110] sm:$0xff] }
 0x1d9   :  { %v307_v45 = vpop.xlane.xlu0 %306  ;;  %v311_v48 = vpop.xlane.xlu1 %310  ;;  %v4959_v12 = vpack.c.bf16 %v403_v10, %v400_v9  ;;  %v417_v9 = vld [vmem:[#allocation13] sm:$0x7] }
 0x1da   :  { %v314_v46 = vmul.f32 0.0078125, %v307_v45  ;;  %v321_v47 = vmul.f32 %v6535_v43, %v6535_v43  ;;  %v316_v49 = vmul.f32 0.0078125, %v311_v48  ;;  %v323_v51 = vmul.f32 %v6537_v44, %v6537_v44 }
 0x1db   :  { %4960 = vmatprep.subr.bf16.mxu0 %v4959_v12 }
 0x1dc   :  { %v6541_v50 = vsub.f32 %v299_v13, %v314_v46  ;;  %325 = vadd.xlane.f32.xlu0 %v321_v47  ;;  %v6545_v52 = vsub.f32 %v301_v14, %v316_v49  ;;  %v398_v13 = vld [vmem:[#allocation11 + $0xe8] sm:$0xff]  ;;  %v399_v14 = vld [vmem:[#allocation11 + $0xf0] sm:$0xff] }
 0x1dd   :  { %v4987_v16 = vpack.c.bf16 %v398_v13, %v395_v11  ;;  %v4961_v17 = vpack.c.bf16 %v402_v15, %v399_v14 }
 0x1de   :  { %v322_v53 = vmul.f32 %v6541_v50, %v6541_v50  ;;  %v324_v54 = vmul.f32 %v6545_v52, %v6545_v52 }
 0x1df   :  { %4988 = vmatprep.subr.bf16.mxu1 %v4987_v16  ;;  %4962 = vmatpush1.bf16.msra.mxu0 %v4961_v17 }
 0x1e0   :  { %329 = vadd.xlane.f32.xlu0 %v323_v51  ;;  %327 = vadd.xlane.f32.xlu1 %v322_v53 }
 0x1e1   :  { %4990 = vmatpush3.bf16.msra.mxu1 %v4987_v16  ;;  %4964 = vmatprep.subr.bf16.mxu0 %v4963_v21 }
 0x1e2   :  { %4992 = vmatprep.subr.bf16.mxu1 %v4991_v25 }
 0x1e3   :  { %4966 = vmatpush1.bf16.msra.mxu0 %v4965_v26 }
 0x1e4   :  { %331 = vadd.xlane.f32.xlu1 %v324_v54  ;;  %4968 = vmatprep.subr.bf16.mxu0 %v4967_v31 }
 0x1e5   :  { %4994 = vmatpush3.bf16.msra.mxu1 %v4991_v25 }
 0x1e6   :  { %4996 = vmatprep.subr.bf16.mxu1 %v4995_v35 }
 0x1e7   :  { %4970 = vmatpush1.bf16.msra.mxu0 %v4969_v36 }
 0x1e9   :  { %4998 = vmatpush3.bf16.msra.mxu1 %v4995_v35 }
 0x1ea   :  { %5000 = vmatprep.subr.bf16.mxu1 %v4999_v39 }
 0x1ed   :  { %5002 = vmatpush3.bf16.msra.mxu1 %v4999_v39 }
 0x269   :  { %v326_v40 = vpop.xlane.xlu0 %325 }
 0x26a   :  { %v333_v41 = vmul.f32 0.0078125, %v326_v40 }
 0x26c   :  { %v337_v42 = vadd.f32 1e-12, %v333_v41 }
 0x26d   :  { %v328_v45 = vpop.xlane.xlu1 %327  ;;  %v330_v46 = vpop.xlane.xlu0 %329 }
 0x26e   :  { %5558 = vrsqrt.f32 %v337_v42  ;;  %v334_v47 = vmul.f32 0.0078125, %v328_v45  ;;  %v335_v48 = vmul.f32 0.0078125, %v330_v46 }
 0x270   :  { %v338_v49 = vadd.f32 1e-12, %v334_v47  ;;  %v339_v51 = vadd.f32 1e-12, %v335_v48 }
 0x271   :  { %v332_v53 = vpop.xlane.xlu1 %331 }
 0x272   :  { %5560 = vrsqrt.f32 %v338_v49  ;;  %v336_v54 = vmul.f32 0.0078125, %v332_v53 }
 0x273   :  { %5562 = vrsqrt.f32 %v339_v51 }
 0x274   :  { %v340_v55 = vadd.f32 1e-12, %v336_v54 }
 0x276   :  { %5564 = vrsqrt.f32 %v340_v55 }
 0x278   :  { %v5559_v56 = vpop.eup %5558 }
 0x279   :  { %v345_v58 = vmul.f32 %v5559_v56, %v6535_v43 }
 0x27b   :  { %v355_v60 = vmul.f32 %v4293_v57, %v345_v58 }
 0x27c   :  { %v5561_v61 = vpop.eup %5560 }
 0x27d   :  { %v5563_v62 = vpop.eup %5562  ;;  %v6553_v63 = vadd.f32 %v4294_v59, %v355_v60  ;;  %v346_v0 = vmul.f32 %v5561_v61, %v6541_v50 }
 0x27e   :  { %v347_v1 = vmul.f32 %v5563_v62, %v6537_v44 }
 0x27f   :  { %499 = vmatmul.mubr.f32.vlgmr.msra.gmra.mrb[0].mxu0 %v6553_v63  ;;  %4707 = vmatprep.mubr.f32.mxu1 %v6553_v63  ;;  %v356_v2 = vmul.f32 %v4293_v57, %v346_v0 }
 0x280   :  { %v5565_v3 = vpop.eup %5564  ;;  %504 = vmatprep.mubr.f32.mxu0 %v6171_v30  ;;  %v357_v4 = vmul.f32 %v4293_v57, %v347_v1 }
 0x281   :  { %v6560_v43 = vadd.f32 %v4294_v59, %v356_v2  ;;  %v348_v5 = vmul.f32 %v5565_v3, %v6545_v52  ;;  %v419_v52 = vlaneseq }
 0x282   :  { %v6563_v6 = vadd.f32 %v4294_v59, %v357_v4 }
 0x283   :  { %505 = vmatmul.mubr.f32.gmra.mrb[2].mxu0 %v6560_v43  ;;  %4708 = vmatmul.mubr.f32.vlgmr.msra.gmra.mrb[0].mxu1 %v6560_v43  ;;  %v358_v44 = vmul.f32 %v4293_v57, %v348_v5  ;;  %v6575_v7 = vshrl.u32 %v419_v52, 7 }
 0x284   :  { %4710 = vmatprep.mubr.f32.mxu1 %v6563_v6  ;;  %510 = vmatprep.mubr.f32.mxu0 %v6171_v30 }
 0x285   :  { %v6569_v50 = vadd.f32 %v4294_v59, %v358_v44  ;;  %v6578_v8 = vsub.s32 0, %v6575_v7  ;;  %v6582_v11 = vsub.s32 2, %v6575_v7  ;;  %v6585_v12 = vsub.s32 1, %v6575_v7 }
 0x287   :  { %511 = vmatmul.mubr.f32.gmra.mrb[4].mxu0 %v6563_v6  ;;  %4711 = vmatmul.mubr.f32.gmra.mrb[2].mxu1 %v6569_v50  ;;  %v422_v10 = vrot.slane %v417_v9, %v6578_v8  ;;  %v430_v16 = vrot.slane %v417_v9, %v6582_v11  ;;  %v426_v17 = vrot.slane %v417_v9, %v6585_v12 }
 0x288   :  { %516 = vmatprep.mubr.f32.mxu0 %v6171_v30 }
 0x28b   :  { %517 = vmatmul.mubr.f32.gmra.mrb[6].mxu0 %v6569_v50 }
 0x352   :  { %v500_v13 = vpop.f32.mrb[0].mxu0 }
 0x353   :  { %v6587_v14 = vadd.f32 %v500_v13, %v422_v10  ;;  %v502_v15 = vpop.f32.mrb[1].mxu0 }
 0x354   :  { %v6595_v23 = vadd.f32 %v502_v15, %v426_v17 }
 0x355   :  { %4717 = vmatprep.mubr.msk.f32.mxu1 %vm608_vm0, %v6587_v14 }
 0x356   :  { %v506_v18 = vpop.f32.mrb[2].mxu0  ;;  %v4709_v19 = vpop.f32.mrb[0].mxu1 }
 0x357   :  { %v6593_v20 = vadd.f32 %v4709_v19, %v430_v16  ;;  %v508_v21 = vpop.f32.mrb[3].mxu0  ;;  %v589_v22 = vpop.f32.mrb[1].mxu1  ;;  %v507_v46 = vadd.f32 %v506_v18, %v422_v10 }
 0x358   :  { %v6597_v24 = vadd.f32 %v508_v21, %v426_v17  ;;  %v6599_v25 = vadd.f32 %v589_v22, %v430_v16 }
 0x35a   :  { %v5003_v27 = vpack.c.bf16 %v6597_v24, %v6595_v23  ;;  %v5015_v28 = vpack.c.bf16 %v6593_v20, %v6599_v25  ;;  %v512_v29 = vpop.f32.mrb[4].mxu0  ;;  %v4712_v31 = vpop.f32.mrb[2].mxu1  ;;  %v5498_v32 = vpack.i.bf16 %v6597_v24, %v6595_v23  ;;  %v5508_v33 = vpack.i.bf16 %v6593_v20, %v6599_v25 }
 0x35b   :  { %v6615_v34 = vadd.f32 %v4712_v31, %v430_v16  ;;  %v514_v35 = vpop.f32.mrb[5].mxu0  ;;  %v599_v36 = vpop.f32.mrb[3].mxu1  ;;  %v513_v49 = vadd.f32 %v512_v29, %v422_v10 }
 0x35c   :  { %v6617_v37 = vadd.f32 %v599_v36, %v430_v16  ;;  %5005 = vmatprep.subr.msk.bf16.mxu1 %vm6603_vm1, %v5003_v27  ;;  %v515_v42 = vadd.f32 %v514_v35, %v426_v17 }
 0x35d   :  { %5008 = vmatpush3.bf16.xpose.msk.msra.mxu1 %vm6603_vm1, %v5003_v27 }
 0x35e   :  { %v6625_v38 = vpack.c.bf16 %v6615_v34, %v6617_v37  ;;  %v518_v39 = vpop.f32.mrb[6].mxu0  ;;  %v5513_v40 = vpack.i.bf16 %v6615_v34, %v6617_v37 }
 0x35f   :  { %v520_v41 = vpop.f32.mrb[7].mxu0  ;;  %v519_v51 = vadd.f32 %v518_v39, %v422_v10 }
 0x360   :  { %v521_v45 = vadd.f32 %v520_v41, %v426_v17 }
 0x362   :  { %v5009_v47 = vpack.c.bf16 %v521_v45, %v515_v42  ;;  %v5503_v48 = vpack.i.bf16 %v521_v45, %v515_v42 }
 0x364   :  { %4718 = vmatmul.mubr.msk.f32.vlgmr.msra.gmra.mrb[4].mxu1 %vm608_vm0, %v507_v46  ;;  %5011 = vmatprep.subr.msk.bf16.mxu1 %vm6603_vm1, %v5009_v47 }
 0x365   :  { %5014 = vmatpush3.bf16.xpose.msk.msra.mxu1 %vm6603_vm1, %v5009_v47  ;;  %4724 = vmatprep.mubr.msk.f32.mxu1 %vm608_vm0, %v513_v49 }
 0x366   :  { %5016 = vmatprep.subr.bf16.mxu1 %v5015_v28 }
 0x36c   :  { %4725 = vmatmul.mubr.msk.f32.vlgmr.msra.gmra.mrb[6].mxu1 %vm608_vm0, %v519_v51 }
 0x36d   :  { %5018 = vmatpush3.bf16.msra.mxu1 %v5015_v28 }
 0x36e   :  { %5020 = vmatprep.subr.bf16.mxu1 %v6625_v38 }
 0x437   :  { %v4719_v53 = vpop.f32.mrb[4].mxu1 }
 0x438   :  { %v687_v54 = vpop.f32.mrb[5].mxu1  ;;  %v787_v55 = vsel %vm783_vm2, %v4719_v53, -inf }
 0x439   :  { %788 = vmax.xlane.f32.xlu1 %v787_v55  ;;  %v784_v56 = vsel %vm783_vm2, %v687_v54, -inf }
 0x43a   :  { %785 = vmax.xlane.f32.xlu0 %v784_v56 }
 0x43f   :  { %v4726_v57 = vpop.f32.mrb[6].mxu1 }
 0x440   :  { %v774_v58 = vpop.f32.mrb[7].mxu1  ;;  %v793_v59 = vsel %vm783_vm2, %v4726_v57, -inf }
 0x441   :  { %794 = vmax.xlane.f32.xlu1 %v793_v59  ;;  %v790_v60 = vsel %vm783_vm2, %v774_v58, -inf }
 0x442   :  { %791 = vmax.xlane.f32.xlu0 %v790_v60 }
 0x4c6   :  { %v789_v61 = vpop.xlane.xlu1 %788 }
 0x4c7   :  { %v797_v62 = vsub.f32 %v4719_v53, %v789_v61  ;;  %v786_v0 = vpop.xlane.xlu0 %785 }
 0x4c8   :  { %v796_v1 = vsub.f32 %v687_v54, %v786_v0 }
 0x4c9   :  { %v802_v2 = vmul.f32 1.442695, %v797_v62 }
 0x4ca   :  { %v800_v3 = vmul.f32 1.442695, %v796_v1 }
 0x4cb   :  { %5566 = vpow2.f32 %v802_v2 }
 0x4cc   :  { %5568 = vpow2.f32 %v800_v3 }
 0x4ce   :  { %v795_v4 = vpop.xlane.xlu1 %794 }
 0x4cf   :  { %v799_v5 = vsub.f32 %v4726_v57, %v795_v4  ;;  %v792_v44 = vpop.xlane.xlu0 %791 }
 0x4d0   :  { %v798_v52 = vsub.f32 %v774_v58, %v792_v44 }
 0x4d1   :  { %v806_v9 = vmul.f32 1.442695, %v799_v5 }
 0x4d2   :  { %v804_v10 = vmul.f32 1.442695, %v798_v52 }
 0x4d3   :  { %5570 = vpow2.f32 %v806_v9 }
 0x4d4   :  { %5572 = vpow2.f32 %v804_v10 }
 0x4d5   :  { %v5567_v13 = vpop.eup %5566 }
 0x4d6   :  { %v5569_v15 = vpop.eup %5568  ;;  %v811_v16 = vsel %vm783_vm2, %v5567_v13, 0.0 }
 0x4d7   :  { %812 = vadd.xlane.f32.xlu1 %v811_v16  ;;  %v808_v17 = vsel %vm783_vm2, %v5569_v15, 0.0 }
 0x4d8   :  { %809 = vadd.xlane.f32.xlu0 %v808_v17 }
 0x4dd   :  { %v5571_v18 = vpop.eup %5570 }
 0x4de   :  { %v5573_v19 = vpop.eup %5572  ;;  %v817_v21 = vsel %vm783_vm2, %v5571_v18, 0.0 }
 0x4df   :  { %818 = vadd.xlane.f32.xlu1 %v817_v21  ;;  %v814_v22 = vsel %vm783_vm2, %v5573_v19, 0.0 }
 0x4e0   :  { %815 = vadd.xlane.f32.xlu0 %v814_v22 }
 0x4f0   :  { %990 = vrot.lane.b32.xlu1 %v6587_v14, %s6167_s10 }
 0x4f4   :  { %5504 = vrot.lane.b32.xlu1 %v5503_v48, %s6167_s10 }
 0x4f6   :  { %5499 = vrot.lane.b32.xlu0 %v5498_v32, %s6167_s10 }
 0x4f8   :  { %992 = vrot.lane.b32.xlu1 %v507_v46, %s6167_s10 }
 0x4fa   :  { %1081 = vrot.lane.b32.xlu0 %v513_v49, %s6167_s10 }
 0x4fc   :  { %1083 = vrot.lane.b32.xlu1 %v519_v51, %s6167_s10 }
 0x564   :  { %v813_v27 = vpop.xlane.xlu1 %812 }
 0x565   :  { %5574 = vrcp.f32 %v813_v27  ;;  %v810_v28 = vpop.xlane.xlu0 %809 }
 0x566   :  { %5576 = vrcp.f32 %v810_v28 }
 0x56c   :  { %v819_v29 = vpop.xlane.xlu1 %818 }
 0x56d   :  { %5578 = vrcp.f32 %v819_v29  ;;  %v816_v14 = vpop.xlane.xlu0 %815 }
 0x56e   :  { %5580 = vrcp.f32 %v816_v14 }
 0x56f   :  { %v5575_v31 = vpop.eup %5574 }
 0x570   :  { %v5577_v35 = vpop.eup %5576  ;;  %v991_v36 = vpop.permute.xlu1 %990  ;;  %v825_v24 = vmul.f32 %v5575_v31, %v5567_v13 }
 0x571   :  { %v5500_v39 = vpop.permute.xlu0 %5499  ;;  %v824_v23 = vmul.f32 %v5577_v35, %v5569_v15 }
 0x572   :  { %v5502_v32 = vunpack.i.h.bf16 %v5500_v39  ;;  %v5501_v41 = vunpack.i.l.bf16 %v5500_v39 }
 0x573   :  { %4731 = vmatprep.mubr.msk.f32.mxu1 %vm783_vm2, %v824_v23 }
 0x574   :  { %v5023_v42 = vpack.c.bf16 %v5502_v32, %v5501_v41  ;;  %4732 = vmatmul.mubr.msk.f32.vlgmr.msra.gmra.mrb[8].mxu1 %vm783_vm2, %v825_v24  ;;  %v5505_v45 = vpop.permute.xlu1 %5504 }
 0x575   :  { %5022 = vmatpush3.bf16.msra.mxu1 %v6625_v38  ;;  %v5507_v48 = vunpack.i.h.bf16 %v5505_v45  ;;  %v5506_v49 = vunpack.i.l.bf16 %v5505_v45  ;;  %v1082_v55 = vpop.permute.xlu0 %1081 }
 0x576   :  { %5025 = vmatprep.subr.msk.bf16.mxu1 %vm6603_vm1, %v5023_v42 }
 0x577   :  { %v5579_v46 = vpop.eup %5578  ;;  %v5029_v54 = vpack.c.bf16 %v5507_v48, %v5506_v49 }
 0x578   :  { %v5581_v47 = vpop.eup %5580  ;;  %v827_v53 = vmul.f32 %v5579_v46, %v5571_v18  ;;  %v993_v38 = vpop.permute.xlu1 %992 }
 0x579   :  { %v826_v51 = vmul.f32 %v5581_v47, %v5573_v19 }
 0x57b   :  { %4738 = vmatprep.mubr.msk.f32.mxu1 %vm783_vm2, %v826_v51 }
 0x57c   :  { %4739 = vmatmul.mubr.msk.f32.vlgmr.msra.gmra.mrb[10].mxu1 %vm783_vm2, %v827_v53  ;;  %v1084_v56 = vpop.permute.xlu1 %1083 }
 0x57d   :  { %4745 = vmatprep.mubr.msk.f32.mxu1 %vm608_vm0, %v991_v36 }
 0x57e   :  { %5028 = vmatpush3.bf16.xpose.msk.msra.mxu1 %vm6603_vm1, %v5023_v42 }
 0x57f   :  { %5031 = vmatprep.subr.msk.bf16.mxu1 %vm6603_vm1, %v5029_v54 }
 0x585   :  { %4746 = vmatmul.mubr.msk.f32.vlgmr.msra.gmra.mrb[12].mxu1 %vm608_vm0, %v993_v38 }
 0x586   :  { %5034 = vmatpush3.bf16.xpose.msk.msra.mxu1 %vm6603_vm1, %v5029_v54  ;;  %4752 = vmatprep.mubr.msk.f32.mxu1 %vm608_vm0, %v1082_v55  ;;  %v1414_v55 = vld [vmem:[#allocation14] sm:$0xff] }
 0x58d   :  { %4753 = vmatmul.mubr.msk.f32.vlgmr.msra.gmra.mrb[14].mxu1 %vm608_vm0, %v1084_v56  ;;  %v1415_v56 = vld [vmem:[#allocation14 + $0x8] sm:$0xff] }
 0x647   :  { %v6672_v57 = vpop.f32.mrb[8].mxu1 }
 0x648   :  { %v6674_v58 = vpop.f32.mrb[9].mxu1 }
 0x64f   :  { %v6676_v59 = vpop.f32.mrb[10].mxu1 }
 0x650   :  { %v6678_v60 = vpop.f32.mrb[11].mxu1 }
 0x658   :  { %v4747_v61 = vpop.f32.mrb[12].mxu1 }
 0x659   :  { %v1072_v62 = vpop.f32.mrb[13].mxu1  ;;  %v1175_v0 = vsel %vm783_vm2, %v4747_v61, -inf }
 0x65a   :  { %1176 = vmax.xlane.f32.xlu1 %v1175_v0  ;;  %v1172_v1 = vsel %vm783_vm2, %v1072_v62, -inf  ;;  %v1417_v0 = vld [vmem:[#allocation14 + $0x18] sm:$0xff] }
 0x65b   :  { %1173 = vmax.xlane.f32.xlu0 %v1172_v1 }
 0x660   :  { %v4754_v2 = vpop.f32.mrb[14].mxu1 }
 0x661   :  { %v1163_v3 = vpop.f32.mrb[15].mxu1  ;;  %v1181_v5 = vsel %vm783_vm2, %v4754_v2, -inf }
 0x662   :  { %v1178_v4 = vsel %vm783_vm2, %v1163_v3, -inf }
 0x663   :  { %1179 = vmax.xlane.f32.xlu0 %v1178_v4 }
 0x667   :  { %1182 = vmax.xlane.f32.xlu0 %v1181_v5  ;;  %v1420_v5 = vld [vmem:[#allocation14 + $0x30] sm:$0xff] }
 0x6e7   :  { %v1177_v44 = vpop.xlane.xlu1 %1176 }
 0x6e8   :  { %v1185_v52 = vsub.f32 %v4747_v61, %v1177_v44  ;;  %v1174_v9 = vpop.xlane.xlu0 %1173  ;;  %v1416_v61 = vld [vmem:[#allocation14 + $0x10] sm:$0xff]  ;;  %v1421_v44 = vld [vmem:[#allocation14 + $0x38] sm:$0xff] }
 0x6e9   :  { %v1184_v10 = vsub.f32 %v1072_v62, %v1174_v9  ;;  %v5043_v62 = vpack.c.bf16 %v1415_v56, %v1414_v55  ;;  %v5047_v1 = vpack.c.bf16 %v1417_v0, %v1416_v61  ;;  %v1422_v9 = vld [vmem:[#allocation14 + $0x40] sm:$0xff] }
 0x6ea   :  { %v1190_v13 = vmul.f32 1.442695, %v1185_v52  ;;  %v5055_v52 = vpack.c.bf16 %v1421_v44, %v1420_v5  ;;  %v1599_v56 = vld [vmem:[#allocation20 + $0x38] sm:$0xff]  ;;  %v1592_v61 = vld [vmem:[#allocation20] sm:$0xff]  ;;  %v1605_v5 = vld [vmem:[#allocation20 + $0x68] sm:$0xff] }
 0x6eb   :  { %v1188_v15 = vmul.f32 1.442695, %v1184_v10  ;;  %v1423_v10 = vld [vmem:[#allocation14 + $0x48] sm:$0xff]  ;;  %v1603_v44 = vld [vmem:[#allocation20 + $0x58] sm:$0xff] }
 0x6ec   :  { %5582 = vpow2.f32 %v1190_v13  ;;  %v5059_v13 = vpack.c.bf16 %v1423_v10, %v1422_v9  ;;  %v1600_v10 = vld [vmem:[#allocation20 + $0x40] sm:$0xff] }
 0x6ed   :  { %5584 = vpow2.f32 %v1188_v15  ;;  %v1424_v15 = vld [vmem:[#allocation14 + $0x50] sm:$0xff] }
 0x6f0   :  { %v1180_v16 = vpop.xlane.xlu0 %1179 }
 0x6f1   :  { %v1186_v17 = vsub.f32 %v1163_v3, %v1180_v16  ;;  %v1419_v3 = vld [vmem:[#allocation14 + $0x28] sm:$0xff]  ;;  %v1425_v16 = vld [vmem:[#allocation14 + $0x58] sm:$0xff] }
 0x6f3   :  { %v1192_v18 = vmul.f32 1.442695, %v1186_v17  ;;  %v5063_v17 = vpack.c.bf16 %v1425_v16, %v1424_v15  ;;  %v1602_v15 = vld [vmem:[#allocation20 + $0x50] sm:$0xff] }
 0x6f4   :  { %v1183_v19 = vpop.xlane.xlu0 %1182 }
 0x6f5   :  { %5586 = vpow2.f32 %v1192_v18  ;;  %v1187_v21 = vsub.f32 %v4754_v2, %v1183_v19  ;;  %v1418_v2 = vld [vmem:[#allocation14 + $0x20] sm:$0xff]  ;;  %v1427_v19 = vld [vmem:[#allocation14 + $0x68] sm:$0xff] }
 0x6f6   :  { %v5583_v22 = vpop.eup %5582  ;;  %v5051_v4 = vpack.c.bf16 %v1419_v3, %v1418_v2  ;;  %v1426_v18 = vld [vmem:[#allocation14 + $0x60] sm:$0xff]  ;;  %v1594_v2 = vld [vmem:[#allocation20 + $0x10] sm:$0xff] }
 0x6f7   :  { %v5585_v27 = vpop.eup %5584  ;;  %v1194_v28 = vmul.f32 1.442695, %v1187_v21  ;;  %v1199_v29 = vsel %vm783_vm2, %v5583_v22, 0.0  ;;  %v5067_v21 = vpack.c.bf16 %v1427_v19, %v1426_v18  ;;  %v1598_v3 = vld [vmem:[#allocation20 + $0x30] sm:$0xff]  ;;  %v1609_v18 = vld [vmem:[#allocation20 + $0x88] sm:$0xff] }
 0x6f8   :  { %1200 = vadd.xlane.f32.xlu1 %v1199_v29  ;;  %v1196_v14 = vsel %vm783_vm2, %v5585_v27, 0.0  ;;  %v1613_v19 = vld [vmem:[#allocation20 + $0xa8] sm:$0xff] }
 0x6f9   :  { %5588 = vpow2.f32 %v1194_v28  ;;  %1197 = vadd.xlane.f32.xlu0 %v1196_v14 }
 0x6ff   :  { %v5587_v31 = vpop.eup %5586 }
 0x700   :  { %v1202_v35 = vsel %vm783_vm2, %v5587_v31, 0.0 }
 0x701   :  { %1203 = vadd.xlane.f32.xlu0 %v1202_v35 }
 0x703   :  { %v5589_v36 = vpop.eup %5588 }
 0x704   :  { %v1205_v39 = vsel %vm783_vm2, %v5589_v36, 0.0 }
 0x705   :  { %1206 = vadd.xlane.f32.xlu1 %v1205_v39 }
 0x716   :  { %5514 = vrot.lane.b32.xlu1 %v5513_v40, %s6167_s10 }
 0x717   :  { %5509 = vrot.lane.b32.xlu0 %v5508_v33, %s6167_s10 }
 0x785   :  { %v1201_v24 = vpop.xlane.xlu1 %1200 }
 0x786   :  { %v1198_v23 = vpop.xlane.xlu0 %1197 }
 0x787   :  { %5590 = vrcp.f32 %v1198_v23 }
 0x788   :  { %5592 = vrcp.f32 %v1201_v24 }
 0x78e   :  { %v1204_v32 = vpop.xlane.xlu0 %1203 }
 0x78f   :  { %5594 = vrcp.f32 %v1204_v32 }
 0x791   :  { %v5591_v41 = vpop.eup %5590 }
 0x792   :  { %v1207_v42 = vpop.xlane.xlu1 %1206  ;;  %v5510_v45 = vpop.permute.xlu0 %5509  ;;  %v1212_v46 = vmul.f32 %v5591_v41, %v5585_v27  ;;  %v1429_v27 = vld [vmem:[#allocation14 + $0x78] sm:$0xff] }
 0x793   :  { %5596 = vrcp.f32 %v1207_v42  ;;  %v5512_v47 = vunpack.i.h.bf16 %v5510_v45  ;;  %v5511_v48 = vunpack.i.l.bf16 %v5510_v45  ;;  %v5593_v37 = vpop.eup %5592 }
 0x794   :  { %4759 = vmatprep.mubr.msk.f32.mxu0 %vm783_vm2, %v1212_v46  ;;  %v1213_v49 = vmul.f32 %v5593_v37, %v5583_v22  ;;  %v1428_v22 = vld [vmem:[#allocation14 + $0x70] sm:$0xff]  ;;  %v4319_v37 = vld [vmem:[#allocation16] ss:$0 sm:$0xff] }
 0x795   :  { %v5035_v34 = vpack.c.bf16 %v5512_v47, %v5511_v48  ;;  %v5071_v28 = vpack.c.bf16 %v1429_v27, %v1428_v22  ;;  %v5083_v22 = vpack.c.bf16 %v1613_v19, %v1609_v18  ;;  %v1611_v27 = vld [vmem:[#allocation20 + $0x98] sm:$0xff]  ;;  %v1632_v18 = vld [vmem:[#allocation20 + $0x140] sm:$0xff] }
 0x796   :  { %v5515_v40 = vpop.permute.xlu1 %5514  ;;  %v1636_v19 = vld [vmem:[#allocation20 + $0x160] sm:$0xff] }
 0x797   :  { %v5517_v20 = vunpack.i.h.bf16 %v5515_v40  ;;  %v5516_v25 = vunpack.i.l.bf16 %v5515_v40  ;;  %5036 = vmatprep.subr.bf16.mxu0 %v5035_v34 }
 0x798   :  { %5038 = vmatpush3.bf16.msra.mxu0 %v5035_v34 }
 0x799   :  { %v5595_v33 = vpop.eup %5594  ;;  %v5039_v51 = vpack.c.bf16 %v5517_v20, %v5516_v25  ;;  %5044 = vmatprep.subr.bf16.mxu0 %v5043_v62 }
 0x79a   :  { %v1214_v53 = vmul.f32 %v5595_v33, %v5587_v31 }
 0x79b   :  { %4760 = vmatmul.mubr.msk.f32.vlgmr.msra.gmra.mrb[8].mxu0 %vm783_vm2, %v1213_v49  ;;  %5040 = vmatprep.subr.bf16.mxu1 %v5039_v51 }
 0x79c   :  { %5042 = vmatpush3.bf16.msra.mxu1 %v5039_v51  ;;  %4766 = vmatprep.mubr.msk.f32.mxu1 %vm783_vm2, %v1214_v53 }
 0x79d   :  { %v5597_v54 = vpop.eup %5596  ;;  %5046 = vmatpush3.bf16.msra.mxu0 %v5043_v62  ;;  %v1596_v62 = vld [vmem:[#allocation20 + $0x20] sm:$0xff] }
 0x79e   :  { %v1215_v38 = vmul.f32 %v5597_v54, %v5589_v36  ;;  %5048 = vmatprep.subr.bf16.mxu0 %v5047_v1 }
 0x7a0   :  { %4767 = vmatmul.mubr.msk.f32.vlgmr.msra.gmra.mrb[16].mxu1 %vm783_vm2, %v1215_v38  ;;  %v1595_v38 = vld [vmem:[#allocation20 + $0x18] sm:$0xff] }
 0x7a1   :  { %1742 = vmatprep.mubr.f32.mxu1 %v6171_v30  ;;  %5050 = vmatpush3.bf16.msra.mxu0 %v5047_v1  ;;  %v5107_v0 = vpack.c.bf16 %v1599_v56, %v1595_v38  ;;  %v5077_v1 = vpack.c.bf16 %v1596_v62, %v1592_v61  ;;  %v1618_v56 = vld [vmem:[#allocation20 + $0xd0] sm:$0xff] }
 0x7a2   :  { %5052 = vmatprep.subr.bf16.mxu0 %v5051_v4  ;;  %v1622_v61 = vld [vmem:[#allocation20 + $0xf0] sm:$0xff] }
 0x7a3   :  { %v5121_v62 = vpack.c.bf16 %v1622_v61, %v1618_v56  ;;  %v2049_v61 = vld [vmem:[#allocation23 + $0x188] sm:$0xff] }
 0x7a5   :  { %5054 = vmatpush3.bf16.msra.mxu0 %v5051_v4  ;;  %v5109_v4 = vpack.c.bf16 %v1598_v3, %v1594_v2  ;;  %v1631_v3 = vld [vmem:[#allocation20 + $0x138] sm:$0xff] }
 0x7a6   :  { %5056 = vmatprep.subr.bf16.mxu0 %v5055_v52 }
 0x7a9   :  { %5058 = vmatpush3.bf16.msra.mxu0 %v5055_v52 }
 0x7aa   :  { %5060 = vmatprep.subr.bf16.mxu0 %v5059_v13 }
 0x7ad   :  { %5062 = vmatpush3.bf16.msra.mxu0 %v5059_v13  ;;  %v1604_v13 = vld [vmem:[#allocation20 + $0x60] sm:$0xff] }
 0x7ae   :  { %5064 = vmatprep.subr.bf16.mxu0 %v5063_v17  ;;  %v5081_v16 = vpack.c.bf16 %v1604_v13, %v1600_v10  ;;  %v1633_v10 = vld [vmem:[#allocation20 + $0x148] sm:$0xff] }
 0x7af   :  { %v1637_v13 = vld [vmem:[#allocation20 + $0x168] sm:$0xff] }
 0x7b1   :  { %5066 = vmatpush3.bf16.msra.mxu0 %v5063_v17  ;;  %v1606_v17 = vld [vmem:[#allocation20 + $0x70] sm:$0xff] }
 0x7b2   :  { %5068 = vmatprep.subr.bf16.mxu0 %v5067_v21 }
 0x7b5   :  { %5070 = vmatpush3.bf16.msra.mxu0 %v5067_v21  ;;  %v5113_v21 = vpack.c.bf16 %v1606_v17, %v1602_v15  ;;  %v1635_v15 = vld [vmem:[#allocation20 + $0x158] sm:$0xff] }
 0x7b6   :  { %5072 = vmatprep.subr.bf16.mxu0 %v5071_v28  ;;  %v1639_v17 = vld [vmem:[#allocation20 + $0x178] sm:$0xff] }
 0x7b9   :  { %5074 = vmatpush3.bf16.msra.mxu0 %v5071_v28  ;;  %v1615_v28 = vld [vmem:[#allocation20 + $0xb8] sm:$0xff] }
 0x7ba   :  { %5108 = vmatprep.subr.bf16.mxu0 %v5107_v0  ;;  %v1629_v0 = vld [vmem:[#allocation20 + $0x128] sm:$0xff] }
 0x86e   :  { %v4761_v29 = vpop.f32.mrb[8].mxu0 }
 0x86f   :  { %v1296_v14 = vpop.f32.mrb[9].mxu0 }
 0x870   :  { %v5518_v31 = vpack.i.bf16 %v4761_v29, %v1296_v14  ;;  %v1608_v29 = vld [vmem:[#allocation20 + $0x80] sm:$0xff]  ;;  %v5115_v14 = vpack.c.bf16 %v1615_v28, %v1611_v27  ;;  %v1634_v27 = vld [vmem:[#allocation20 + $0x150] sm:$0xff] }
 0x871   :  { %v1638_v28 = vld [vmem:[#allocation20 + $0x170] sm:$0xff] }
 0x872   :  { %5519 = vrot.lane.b32.xlu1 %v5518_v31, %s6167_s10  ;;  %v1612_v31 = vld [vmem:[#allocation20 + $0xa0] sm:$0xff] }
 0x873   :  { %v4768_v35 = vpop.f32.mrb[16].mxu1 }
 0x874   :  { %v1385_v36 = vpop.f32.mrb[17].mxu1 }
 0x875   :  { %v5523_v39 = vpack.i.bf16 %v4768_v35, %v1385_v36  ;;  %v1610_v35 = vld [vmem:[#allocation20 + $0x90] sm:$0xff] }
 0x876   :  { %v1614_v36 = vld [vmem:[#allocation20 + $0xb0] sm:$0xff] }
 0x877   :  { %5524 = vrot.lane.b32.xlu1 %v5523_v39, %s6167_s10  ;;  %v5085_v39 = vpack.c.bf16 %v1612_v31, %v1608_v29  ;;  %v5129_v29 = vpack.c.bf16 %v1638_v28, %v1634_v27  ;;  %v1645_v31 = vld [vmem:[#allocation20 + $0x1a8] sm:$0xff]  ;;  %v2033_v27 = vld [vmem:[#allocation23 + $0x108] sm:$0xff] }
 0x8e4   :  { %v5520_v23 = vpop.permute.xlu1 %5519 }
 0x8e5   :  { %v5522_v24 = vunpack.i.h.bf16 %v5520_v23  ;;  %v5521_v32 = vunpack.i.l.bf16 %v5520_v23  ;;  %v5117_v23 = vpack.c.bf16 %v1614_v36, %v1610_v35  ;;  %v1643_v35 = vld [vmem:[#allocation20 + $0x198] sm:$0xff] }
 0x8e7   :  { %v1410_v41 = vsel %vm608_vm0, %v6674_v58, %v5521_v32  ;;  %v1411_v42 = vsel %vm608_vm0, %v6672_v57, %v5522_v24 }
 0x8e8   :  { %4801 = vmatprep.mubr.f32.mxu0 %v1410_v41 }
 0x8e9   :  { %v5525_v45 = vpop.permute.xlu1 %5524  ;;  %4802 = vmatmul.mubr.f32.vlgmr.msra.gmra.mrb[10].mxu0 %v1411_v42 }
 0x8ea   :  { %v5527_v46 = vunpack.i.h.bf16 %v5525_v45  ;;  %v5526_v47 = vunpack.i.l.bf16 %v5525_v45  ;;  %5110 = vmatpush1.bf16.msra.mxu0 %v5109_v4  ;;  %v1628_v4 = vld [vmem:[#allocation20 + $0x120] sm:$0xff] }
 0x8ec   :  { %v1412_v48 = vsel %vm608_vm0, %v6678_v60, %v5526_v47  ;;  %v1413_v34 = vsel %vm608_vm0, %v6676_v59, %v5527_v46 }
 0x8ed   :  { %4804 = vmatprep.mubr.f32.mxu0 %v1412_v48 }
 0x8ee   :  { %4805 = vmatmul.mubr.f32.gmra.mrb[12].mxu0 %v1413_v34 }
 0x8ef   :  { %1831 = vmatprep.mubr.f32.mxu0 %v6171_v30 }
 0x9bc   :  { %v4803_v58 = vpop.f32.mrb[10].mxu0 }
 0x9bd   :  { %v1509_v40 = vadd.f32 %v4803_v58, %v4319_v37  ;;  %v1503_v20 = vpop.f32.mrb[11].mxu0 }
 0x9be   :  { %v1504_v57 = vadd.f32 %v4319_v37, %v1503_v20 }
 0x9bf   :  { %v6713_v25 = vadd.f32 %v1509_v40, %v6560_v43  ;;  %v1597_v43 = vld [vmem:[#allocation20 + $0x28] sm:$0xff] }
 0x9c0   :  { %v6716_v33 = vadd.f32 %v1504_v57, %v6553_v63  ;;  %v1593_v63 = vld [vmem:[#allocation20 + $0x8] sm:$0xff] }
 0x9c1   :  { %1530 = vadd.xlane.f32.xlu1 %v6713_v25  ;;  %v4806_v60 = vpop.f32.mrb[12].mxu0  ;;  %v5075_v55 = vpack.c.bf16 %v1597_v43, %v1593_v63  ;;  %v1623_v63 = vld [vmem:[#allocation20 + $0xf8] sm:$0xff]  ;;  %v1620_v43 = vld [vmem:[#allocation20 + $0xe0] sm:$0xff] }
 0x9c2   :  { %v1513_v49 = vpop.f32.mrb[13].mxu0  ;;  %1528 = vadd.xlane.f32.xlu0 %v6716_v33  ;;  %v1519_v51 = vadd.f32 %v4806_v60, %v4319_v37  ;;  %v1617_v60 = vld [vmem:[#allocation20 + $0xc8] sm:$0xff] }
 0x9c3   :  { %v1514_v59 = vadd.f32 %v4319_v37, %v1513_v49  ;;  %5076 = vmatprep.subr.bf16.mxu1 %v5075_v55  ;;  %v1621_v49 = vld [vmem:[#allocation20 + $0xe8] sm:$0xff] }
 0x9c4   :  { %v6725_v54 = vadd.f32 %v1519_v51, %v6569_v50  ;;  %v1607_v50 = vld [vmem:[#allocation20 + $0x78] sm:$0xff]  ;;  %5078 = vmatpush1.bf16.msra.mxu1 %v5077_v1  ;;  %v5087_v51 = vpack.c.bf16 %v1621_v49, %v1617_v60  ;;  %v1652_v60 = vld [vmem:[#allocation20 + $0x1e0] sm:$0xff] }
 0x9c5   :  { %v6721_v53 = vadd.f32 %v1514_v59, %v6563_v6  ;;  %v1601_v6 = vld [vmem:[#allocation20 + $0x48] sm:$0xff]  ;;  %v5111_v9 = vpack.c.bf16 %v1607_v50, %v1603_v44  ;;  %v1619_v59 = vld [vmem:[#allocation20 + $0xd8] sm:$0xff]  ;;  %v1626_v50 = vld [vmem:[#allocation20 + $0x110] sm:$0xff] }
 0x9c6   :  { %v5079_v52 = vpack.c.bf16 %v1605_v5, %v1601_v6  ;;  %v5119_v38 = vpack.c.bf16 %v1623_v63, %v1619_v59  ;;  %v1627_v1 = vld [vmem:[#allocation20 + $0x118] sm:$0xff]  ;;  %v1624_v6 = vld [vmem:[#allocation20 + $0x100] sm:$0xff]  ;;  %v1654_v63 = vld [vmem:[#allocation20 + $0x1f0] sm:$0xff] }
 0x9c7   :  { %1532 = vadd.xlane.f32.xlu0 %v6721_v53  ;;  %5112 = vmatprep.subr.bf16.mxu0 %v5111_v9  ;;  %v5123_v5 = vpack.c.bf16 %v1631_v3, %v1627_v1  ;;  %v5093_v44 = vpack.c.bf16 %v1628_v4, %v1624_v6 }
 0x9c8   :  { %5080 = vmatprep.subr.bf16.mxu1 %v5079_v52  ;;  %5114 = vmatpush1.bf16.msra.mxu0 %v5113_v21  ;;  %v1630_v52 = vld [vmem:[#allocation20 + $0x130] sm:$0xff]  ;;  %v5127_v21 = vpack.c.bf16 %v1639_v17, %v1635_v15  ;;  %v4320_v15 = vld [vmem:[#allocation17] ss:$0 sm:$0xff] }
 0x9c9   :  { %5082 = vmatpush1.bf16.msra.mxu1 %v5081_v16  ;;  %5116 = vmatprep.subr.bf16.mxu0 %v5115_v14  ;;  %v5125_v9 = vpack.c.bf16 %v1630_v52, %v1626_v50  ;;  %v5095_v16 = vpack.c.bf16 %v1637_v13, %v1633_v10  ;;  %v1641_v14 = vld [vmem:[#allocation20 + $0x188] sm:$0xff] }
 0x9ca   :  { %5084 = vmatprep.subr.bf16.mxu1 %v5083_v22  ;;  %v5097_v22 = vpack.c.bf16 %v1636_v19, %v1632_v18  ;;  %v5099_v36 = vpack.c.bf16 %v1645_v31, %v1641_v14  ;;  %v2000_v19 = vld [vmem:[#allocation23] sm:$0xff] }
 0x9cb   :  { %1534 = vadd.xlane.f32.xlu0 %v6725_v54 }
 0x9cc   :  { %5118 = vmatpush1.bf16.msra.mxu0 %v5117_v23  ;;  %v1640_v23 = vld [vmem:[#allocation20 + $0x180] sm:$0xff] }
 0x9cd   :  { %5086 = vmatpush1.bf16.msra.mxu1 %v5085_v39  ;;  %5120 = vmatprep.subr.bf16.mxu0 %v5119_v38  ;;  %v1647_v39 = vld [vmem:[#allocation20 + $0x1b8] sm:$0xff]  ;;  %v2017_v38 = vld [vmem:[#allocation23 + $0x88] sm:$0xff] }
 0x9ce   :  { %5088 = vmatprep.subr.bf16.mxu1 %v5087_v51  ;;  %v1650_v51 = vld [vmem:[#allocation20 + $0x1d0] sm:$0xff] }
 0x9d0   :  { %5122 = vmatpush1.bf16.msra.mxu0 %v5121_v62 }
 0x9d1   :  { %5124 = vmatprep.subr.bf16.mxu0 %v5123_v5 }
 0x9d4   :  { %5126 = vmatpush1.bf16.msra.mxu0 %v5125_v9 }
 0x9d5   :  { %5128 = vmatprep.subr.bf16.mxu0 %v5127_v21  ;;  %v2001_v21 = vld [vmem:[#allocation23 + $0x8] sm:$0xff] }
 0x9d8   :  { %5130 = vmatpush1.bf16.msra.mxu0 %v5129_v29 }
 0xa4e   :  { %v1531_v24 = vpop.xlane.xlu1 %1530 }
 0xa4f   :  { %v1537_v32 = vmul.f32 0.0078125, %v1531_v24  ;;  %v1529_v41 = vpop.xlane.xlu0 %1528  ;;  %v1644_v24 = vld [vmem:[#allocation20 + $0x1a0] sm:$0xff] }
 0xa50   :  { %v1536_v42 = vmul.f32 0.0078125, %v1529_v41  ;;  %v5101_v41 = vpack.c.bf16 %v1644_v24, %v1640_v23 }
 0xa51   :  { %v6729_v45 = vsub.f32 %v6713_v25, %v1537_v32  ;;  %v5131_v32 = vpack.c.bf16 %v1647_v39, %v1643_v35  ;;  %v5141_v35 = vpack.c.bf16 %v2001_v21, %v2000_v19  ;;  %v2057_v19 = vld [vmem:[#allocation23 + $0x1c8] sm:$0xff]  ;;  %v2008_v21 = vld [vmem:[#allocation23 + $0x40] sm:$0xff] }
 0xa52   :  { %v6732_v46 = vsub.f32 %v6716_v33, %v1536_v42  ;;  %v1642_v42 = vld [vmem:[#allocation20 + $0x190] sm:$0xff] }
 0xa53   :  { %v1545_v47 = vmul.f32 %v6729_v45, %v6729_v45  ;;  %5132 = vmatprep.subr.bf16.mxu0 %v5131_v32 }
 0xa54   :  { %v1533_v48 = vpop.xlane.xlu0 %1532  ;;  %v1544_v34 = vmul.f32 %v6732_v46, %v6732_v46 }
 0xa55   :  { %v1538_v37 = vmul.f32 0.0078125, %v1533_v48  ;;  %1550 = vadd.xlane.f32.xlu1 %v1545_v47  ;;  %v1646_v47 = vld [vmem:[#allocation20 + $0x1b0] sm:$0xff] }
 0xa56   :  { %1548 = vadd.xlane.f32.xlu0 %v1544_v34  ;;  %v5133_v48 = vpack.c.bf16 %v1646_v47, %v1642_v42  ;;  %v1649_v34 = vld [vmem:[#allocation20 + $0x1c8] sm:$0xff]  ;;  %v2019_v42 = vld [vmem:[#allocation23 + $0x98] sm:$0xff]  ;;  %v2050_v47 = vld [vmem:[#allocation23 + $0x190] sm:$0xff] }
 0xa57   :  { %v6739_v58 = vsub.f32 %v6721_v53, %v1538_v37  ;;  %v1616_v53 = vld [vmem:[#allocation20 + $0xc0] sm:$0xff]  ;;  %v1653_v37 = vld [vmem:[#allocation20 + $0x1e8] sm:$0xff] }
 0xa58   :  { %v1535_v40 = vpop.xlane.xlu0 %1534  ;;  %v5089_v55 = vpack.c.bf16 %v1620_v43, %v1616_v53  ;;  %5134 = vmatpush1.bf16.msra.mxu0 %v5133_v48  ;;  %v5137_v53 = vpack.c.bf16 %v1654_v63, %v1650_v51  ;;  %v2016_v43 = vld [vmem:[#allocation23 + $0x80] sm:$0xff]  ;;  %v2021_v51 = vld [vmem:[#allocation23 + $0xa8] sm:$0xff] }
 0xa59   :  { %v1539_v20 = vmul.f32 0.0078125, %v1535_v40  ;;  %v1546_v57 = vmul.f32 %v6739_v58, %v6739_v58  ;;  %v1651_v40 = vld [vmem:[#allocation20 + $0x1d8] sm:$0xff]  ;;  %v5139_v56 = vpack.c.bf16 %v2017_v38, %v2016_v43  ;;  %v2052_v63 = vld [vmem:[#allocation23 + $0x1a0] sm:$0xff]  ;;  %v2053_v43 = vld [vmem:[#allocation23 + $0x1a8] sm:$0xff] }
 0xa5a   :  { %5090 = vmatpush1.bf16.msra.mxu1 %v5089_v55  ;;  %v2048_v55 = vld [vmem:[#allocation23 + $0x180] sm:$0xff] }
 0xa5b   :  { %v6744_v25 = vsub.f32 %v6725_v54, %v1539_v20  ;;  %1552 = vadd.xlane.f32.xlu0 %v1546_v57  ;;  %v1625_v54 = vld [vmem:[#allocation20 + $0x108] sm:$0xff]  ;;  %v5103_v20 = vpack.c.bf16 %v1653_v37, %v1649_v34  ;;  %v1655_v57 = vld [vmem:[#allocation20 + $0x1f8] sm:$0xff]  ;;  %v5171_v62 = vpack.c.bf16 %v2049_v61, %v2048_v55  ;;  %v2051_v34 = vld [vmem:[#allocation23 + $0x198] sm:$0xff] }
 0xa5c   :  { %v5091_v2 = vpack.c.bf16 %v1629_v0, %v1625_v54  ;;  %v5135_v49 = vpack.c.bf16 %v1655_v57, %v1651_v40  ;;  %v2002_v37 = vld [vmem:[#allocation23 + $0x10] sm:$0xff]  ;;  %v2003_v40 = vld [vmem:[#allocation23 + $0x18] sm:$0xff]  ;;  %v2004_v38 = vld [vmem:[#allocation23 + $0x20] sm:$0xff] }
 0xa5d   :  { %v1547_v33 = vmul.f32 %v6744_v25, %v6744_v25  ;;  %v5145_v57 = vpack.c.bf16 %v2003_v40, %v2002_v37  ;;  %v2005_v55 = vld [vmem:[#allocation23 + $0x28] sm:$0xff]  ;;  %v2028_v40 = vld [vmem:[#allocation23 + $0xe0] sm:$0xff] }
 0xa5e   :  { %5092 = vmatprep.subr.bf16.mxu1 %v5091_v2  ;;  %5136 = vmatprep.subr.bf16.mxu0 %v5135_v49  ;;  %v5149_v61 = vpack.c.bf16 %v2005_v55, %v2004_v38  ;;  %v2030_v38 = vld [vmem:[#allocation23 + $0xf0] sm:$0xff] }
 0xa5f   :  { %1554 = vadd.xlane.f32.xlu1 %v1547_v33  ;;  %5094 = vmatpush1.bf16.msra.mxu1 %v5093_v44  ;;  %v1648_v33 = vld [vmem:[#allocation20 + $0x1c0] sm:$0xff] }
 0xa60   :  { %5096 = vmatprep.subr.bf16.mxu1 %v5095_v16  ;;  %v5105_v59 = vpack.c.bf16 %v1652_v60, %v1648_v33  ;;  %5138 = vmatpush1.bf16.msra.mxu0 %v5137_v53  ;;  %v4321_v16 = vld [vmem:[#allocation19] ss:$0 sm:$0xff]  ;;  %v2035_v60 = vld [vmem:[#allocation23 + $0x118] sm:$0xff] }
 0xa61   :  { %5172 = vmatprep.subr.bf16.mxu0 %v5171_v62  ;;  %v2034_v33 = vld [vmem:[#allocation23 + $0x110] sm:$0xff]  ;;  %v2036_v62 = vld [vmem:[#allocation23 + $0x120] sm:$0xff] }
 0xa62   :  { %v5177_v49 = vpack.c.bf16 %v2035_v60, %v2034_v33  ;;  %v2061_v60 = vld [vmem:[#allocation23 + $0x1e8] sm:$0xff] }
 0xa63   :  { %5098 = vmatpush1.bf16.msra.mxu1 %v5097_v22  ;;  %v2032_v22 = vld [vmem:[#allocation23 + $0x100] sm:$0xff] }
 0xa64   :  { %5100 = vmatprep.subr.bf16.mxu1 %v5099_v36  ;;  %v5173_v36 = vpack.c.bf16 %v2033_v27, %v2032_v22  ;;  %v2009_v22 = vld [vmem:[#allocation23 + $0x48] sm:$0xff] }
 0xa67   :  { %5102 = vmatpush1.bf16.msra.mxu1 %v5101_v41  ;;  %v2018_v41 = vld [vmem:[#allocation23 + $0x90] sm:$0xff] }
 0xa68   :  { %5104 = vmatprep.subr.bf16.mxu1 %v5103_v20  ;;  %v5143_v48 = vpack.c.bf16 %v2019_v42, %v2018_v41  ;;  %v5175_v20 = vpack.c.bf16 %v2051_v34, %v2050_v47  ;;  %v2011_v41 = vld [vmem:[#allocation23 + $0x58] sm:$0xff] }
 0xa69   :  { %v2043_v34 = vld [vmem:[#allocation23 + $0x158] sm:$0xff] }
 0xa6b   :  { %5106 = vmatpush1.bf16.msra.mxu1 %v5105_v59  ;;  %v2020_v59 = vld [vmem:[#allocation23 + $0xa0] sm:$0xff] }
 0xa6c   :  { %5140 = vmatprep.subr.bf16.mxu1 %v5139_v56  ;;  %v5147_v53 = vpack.c.bf16 %v2021_v51, %v2020_v59  ;;  %v5179_v56 = vpack.c.bf16 %v2053_v43, %v2052_v63  ;;  %v2013_v59 = vld [vmem:[#allocation23 + $0x68] sm:$0xff] }
 0xa6d   :  { %v2045_v43 = vld [vmem:[#allocation23 + $0x168] sm:$0xff] }
 0xae2   :  { %v1551_v54 = vpop.xlane.xlu1 %1550 }
 0xae3   :  { %v1557_v0 = vmul.f32 0.0078125, %v1551_v54  ;;  %v1549_v1 = vpop.xlane.xlu0 %1548  ;;  %v2037_v54 = vld [vmem:[#allocation23 + $0x128] sm:$0xff] }
 0xae4   :  { %v1556_v2 = vmul.f32 0.0078125, %v1549_v1  ;;  %v2022_v1 = vld [vmem:[#allocation23 + $0xb0] sm:$0xff] }
 0xae5   :  { %v1561_v3 = vadd.f32 1e-12, %v1557_v0  ;;  %v5181_v0 = vpack.c.bf16 %v2037_v54, %v2036_v62  ;;  %v2063_v62 = vld [vmem:[#allocation23 + $0x1f8] sm:$0xff] }
 0xae6   :  { %v1560_v6 = vadd.f32 1e-12, %v1556_v2  ;;  %v2023_v2 = vld [vmem:[#allocation23 + $0xb8] sm:$0xff] }
 0xae7   :  { %5598 = vrsqrt.f32 %v1561_v3  ;;  %v2054_v3 = vld [vmem:[#allocation23 + $0x1b0] sm:$0xff] }
 0xae8   :  { %5600 = vrsqrt.f32 %v1560_v6  ;;  %v1553_v4 = vpop.xlane.xlu0 %1552  ;;  %v5151_v6 = vpack.c.bf16 %v2023_v2, %v2022_v1  ;;  %v2014_v1 = vld [vmem:[#allocation23 + $0x70] sm:$0xff]  ;;  %v2015_v2 = vld [vmem:[#allocation23 + $0x78] sm:$0xff] }
 0xae9   :  { %v1558_v5 = vmul.f32 0.0078125, %v1553_v4  ;;  %v2055_v4 = vld [vmem:[#allocation23 + $0x1b8] sm:$0xff] }
 0xaeb   :  { %v1562_v44 = vadd.f32 1e-12, %v1558_v5  ;;  %v2006_v5 = vld [vmem:[#allocation23 + $0x30] sm:$0xff] }
 0xaec   :  { %v1555_v50 = vpop.xlane.xlu1 %1554 }
 0xaed   :  { %5602 = vrsqrt.f32 %v1562_v44  ;;  %v1559_v52 = vmul.f32 0.0078125, %v1555_v50  ;;  %v2007_v44 = vld [vmem:[#allocation23 + $0x38] sm:$0xff]  ;;  %v5183_v50 = vpack.c.bf16 %v2055_v4, %v2054_v3  ;;  %v2046_v3 = vld [vmem:[#allocation23 + $0x170] sm:$0xff] }
 0xaee   :  { %v2047_v4 = vld [vmem:[#allocation23 + $0x178] sm:$0xff] }
 0xaef   :  { %v1563_v9 = vadd.f32 1e-12, %v1559_v52  ;;  %v5153_v52 = vpack.c.bf16 %v2007_v44, %v2006_v5  ;;  %v5201_v5 = vpack.c.bf16 %v2047_v4, %v2046_v3  ;;  %v1656_v44 = vld [vmem:[#allocation22] sm:$0xf] }
 0xaf1   :  { %v5599_v10 = vpop.eup %5598  ;;  %5604 = vrsqrt.f32 %v1563_v9  ;;  %v2038_v9 = vld [vmem:[#allocation23 + $0x130] sm:$0xff] }
 0xaf2   :  { %v5601_v13 = vpop.eup %5600  ;;  %v1569_v18 = vmul.f32 %v5599_v10, %v6729_v45  ;;  %v2039_v10 = vld [vmem:[#allocation23 + $0x138] sm:$0xff] }
 0xaf3   :  { %v1568_v17 = vmul.f32 %v5601_v13, %v6732_v46  ;;  %v5185_v13 = vpack.c.bf16 %v2039_v10, %v2038_v9  ;;  %v6779_v9 = vrot.slane %v1656_v44, %v6582_v11  ;;  %v6782_v10 = vrot.slane %v1656_v44, %v6585_v12 }
 0xaf4   :  { %v1579_v31 = vmul.f32 %v4320_v15, %v1569_v18 }
 0xaf5   :  { %v1578_v28 = vmul.f32 %v4320_v15, %v1568_v17  ;;  %v2056_v17 = vld [vmem:[#allocation23 + $0x1c0] sm:$0xff] }
 0xaf6   :  { %v6757_v46 = vadd.f32 %v4321_v16, %v1579_v31  ;;  %v5187_v27 = vpack.c.bf16 %v2057_v19, %v2056_v17  ;;  %v2041_v31 = vld [vmem:[#allocation23 + $0x148] sm:$0xff] }
 0xaf7   :  { %v5603_v29 = vpop.eup %5602  ;;  %v6750_v14 = vadd.f32 %v4321_v16, %v1578_v28  ;;  %v5157_v28 = vpack.c.bf16 %v2009_v22, %v2008_v21 }
 0xaf8   :  { %v1570_v39 = vmul.f32 %v5603_v29, %v6739_v58  ;;  %v2040_v29 = vld [vmem:[#allocation23 + $0x140] sm:$0xff] }
 0xaf9   :  { %1743 = vmatmul.mubr.f32.vlgmr.msra.gmra.mrb[18].mxu1 %v6750_v14  ;;  %1832 = vmatmul.mubr.f32.vlgmr.msra.gmra.mrb[14].mxu0 %v6750_v14 }
 0xafa   :  { %1748 = vmatprep.mubr.f32.mxu1 %v6171_v30  ;;  %1837 = vmatprep.mubr.f32.mxu0 %v6171_v30  ;;  %v1580_v23 = vmul.f32 %v4320_v15, %v1570_v39  ;;  %v2027_v39 = vld [vmem:[#allocation23 + $0xd8] sm:$0xff] }
 0xafb   :  { %v5605_v45 = vpop.eup %5604  ;;  %5142 = vmatpush3.bf16.msra.mxu1 %v5141_v35  ;;  %5174 = vmatpush3.bf16.msra.mxu0 %v5173_v36  ;;  %v5189_v35 = vpack.c.bf16 %v2041_v31, %v2040_v29  ;;  %v2026_v36 = vld [vmem:[#allocation23 + $0xd0] sm:$0xff] }
 0xafc   :  { %v1571_v24 = vmul.f32 %v5605_v45, %v6744_v25  ;;  %v6764_v58 = vadd.f32 %v4321_v16, %v1580_v23  ;;  %5144 = vmatprep.subr.bf16.mxu1 %v5143_v48  ;;  %5176 = vmatprep.subr.bf16.mxu0 %v5175_v20  ;;  %v2058_v45 = vld [vmem:[#allocation23 + $0x1d0] sm:$0xff]  ;;  %v5159_v23 = vpack.c.bf16 %v2027_v39, %v2026_v36  ;;  %v2029_v20 = vld [vmem:[#allocation23 + $0xe8] sm:$0xff] }
 0xafd   :  { %1749 = vmatmul.mubr.f32.gmra.mrb[20].mxu1 %v6757_v46  ;;  %1838 = vmatmul.mubr.f32.gmra.mrb[16].mxu0 %v6757_v46  ;;  %v2042_v48 = vld [vmem:[#allocation23 + $0x150] sm:$0xff]  ;;  %v5163_v33 = vpack.c.bf16 %v2029_v20, %v2028_v40 }
 0xafe   :  { %1754 = vmatprep.mubr.f32.mxu1 %v6171_v30  ;;  %1843 = vmatprep.mubr.f32.mxu0 %v6171_v30  ;;  %v1581_v32 = vmul.f32 %v4320_v15, %v1571_v24  ;;  %v2024_v15 = vld [vmem:[#allocation23 + $0xc0] sm:$0xff]  ;;  %v2059_v24 = vld [vmem:[#allocation23 + $0x1d8] sm:$0xff]  ;;  %v5193_v37 = vpack.c.bf16 %v2043_v34, %v2042_v48 }
 0xaff   :  { %5146 = vmatpush3.bf16.msra.mxu1 %v5145_v57  ;;  %5178 = vmatpush3.bf16.msra.mxu0 %v5177_v49  ;;  %v5191_v42 = vpack.c.bf16 %v2059_v24, %v2058_v45  ;;  %v2060_v57 = vld [vmem:[#allocation23 + $0x1e0] sm:$0xff] }
 0xb00   :  { %v6770_v25 = vadd.f32 %v4321_v16, %v1581_v32  ;;  %5148 = vmatprep.subr.bf16.mxu1 %v5147_v53  ;;  %5180 = vmatprep.subr.bf16.mxu0 %v5179_v56  ;;  %v2025_v16 = vld [vmem:[#allocation23 + $0xc8] sm:$0xff]  ;;  %v2010_v32 = vld [vmem:[#allocation23 + $0x50] sm:$0xff]  ;;  %v2012_v49 = vld [vmem:[#allocation23 + $0x60] sm:$0xff]  ;;  %v5195_v51 = vpack.c.bf16 %v2061_v60, %v2060_v57 }
 0xb01   :  { %1755 = vmatmul.mubr.f32.gmra.mrb[22].mxu1 %v6764_v58  ;;  %1844 = vmatmul.mubr.f32.gmra.mrb[18].mxu0 %v6764_v58  ;;  %v5155_v18 = vpack.c.bf16 %v2025_v16, %v2024_v15  ;;  %v5161_v47 = vpack.c.bf16 %v2011_v41, %v2010_v32  ;;  %v5165_v63 = vpack.c.bf16 %v2013_v59, %v2012_v49  ;;  %v2044_v53 = vld [vmem:[#allocation23 + $0x160] sm:$0xff]  ;;  %v2031_v56 = vld [vmem:[#allocation23 + $0xf8] sm:$0xff] }
 0xb02   :  { %1760 = vmatprep.mubr.f32.mxu1 %v6171_v30  ;;  %1849 = vmatprep.mubr.f32.mxu0 %v6171_v30  ;;  %v5197_v55 = vpack.c.bf16 %v2045_v43, %v2044_v53  ;;  %v5167_v54 = vpack.c.bf16 %v2031_v56, %v2030_v38 }
 0xb03   :  { %5150 = vmatpush3.bf16.msra.mxu1 %v5149_v61  ;;  %5182 = vmatpush3.bf16.msra.mxu0 %v5181_v0  ;;  %v2062_v61 = vld [vmem:[#allocation23 + $0x1f0] sm:$0xff] }
 0xb04   :  { %5152 = vmatprep.subr.bf16.mxu1 %v5151_v6  ;;  %5184 = vmatprep.subr.bf16.mxu0 %v5183_v50  ;;  %v5199_v0 = vpack.c.bf16 %v2063_v62, %v2062_v61  ;;  %v5169_v6 = vpack.c.bf16 %v2015_v2, %v2014_v1  ;;  %v1672_v50 = vsub.s32 3, %v6575_v7 }
 0xb05   :  { %1761 = vmatmul.mubr.f32.gmra.mrb[24].mxu1 %v6770_v25  ;;  %1850 = vmatmul.mubr.f32.gmra.mrb[20].mxu0 %v6770_v25 }
 0xb07   :  { %5154 = vmatpush3.bf16.msra.mxu1 %v5153_v52  ;;  %5186 = vmatpush3.bf16.msra.mxu0 %v5185_v13  ;;  %v6776_v52 = vrot.slane %v1656_v44, %v6578_v8  ;;  %v6786_v13 = vrot.slane %v1656_v44, %v1672_v50 }
 0xb08   :  { %5156 = vmatprep.subr.bf16.mxu1 %v5155_v18  ;;  %5188 = vmatprep.subr.bf16.mxu0 %v5187_v27 }
 0xb0b   :  { %5158 = vmatpush3.bf16.msra.mxu1 %v5157_v28  ;;  %5190 = vmatpush3.bf16.msra.mxu0 %v5189_v35 }
 0xb0c   :  { %5160 = vmatprep.subr.bf16.mxu1 %v5159_v23  ;;  %5192 = vmatprep.subr.bf16.mxu0 %v5191_v42 }
 0xb0f   :  { %5162 = vmatpush3.bf16.msra.mxu1 %v5161_v47  ;;  %5194 = vmatpush3.bf16.msra.mxu0 %v5193_v37 }
 0xb10   :  { %5164 = vmatprep.subr.bf16.mxu1 %v5163_v33  ;;  %5196 = vmatprep.subr.bf16.mxu0 %v5195_v51 }
 0xb13   :  { %5166 = vmatpush3.bf16.msra.mxu1 %v5165_v63  ;;  %5198 = vmatpush3.bf16.msra.mxu0 %v5197_v55 }
 0xb14   :  { %5168 = vmatprep.subr.bf16.mxu1 %v5167_v54  ;;  %5200 = vmatprep.subr.bf16.mxu0 %v5199_v0 }
 0xb17   :  { %5170 = vmatpush3.bf16.msra.mxu1 %v5169_v6  ;;  %5202 = vmatpush3.bf16.msra.mxu0 %v5201_v5 }
 0xbcc   :  { %v1744_v15 = vpop.f32.mrb[18].mxu1  ;;  %v1833_v16 = vpop.f32.mrb[14].mxu0 }
 0xbcd   :  { %v1745_v17 = vadd.f32 %v1744_v15, %v6776_v52  ;;  %v1834_v18 = vadd.f32 %v1833_v16, %v6779_v9  ;;  %v1746_v19 = vpop.f32.mrb[19].mxu1  ;;  %v1835_v21 = vpop.f32.mrb[15].mxu0 }
 0xbce   :  { %v6791_v22 = vadd.f32 %v1746_v19, %v6782_v10  ;;  %v6794_v27 = vadd.f32 %v1835_v21, %v6786_v13 }
 0xbcf   :  { %v1872_v28 = vmul.f32 0.044715, %v1745_v17  ;;  %v1874_v29 = vmul.f32 0.044715, %v1834_v18  ;;  %v6832_v16 = vmul.f32 0.5, %v1745_v17 }
 0xbd0   :  { %v1873_v31 = vmul.f32 0.044715, %v6791_v22  ;;  %v1875_v35 = vmul.f32 0.044715, %v6794_v27  ;;  %v1750_v36 = vpop.f32.mrb[20].mxu1  ;;  %v1839_v39 = vpop.f32.mrb[16].mxu0 }
 0xbd1   :  { %v1888_v45 = vmul.f32 %v1872_v28, %v1745_v17  ;;  %v1890_v23 = vmul.f32 %v1874_v29, %v1834_v18  ;;  %v1752_v24 = vpop.f32.mrb[21].mxu1  ;;  %v1841_v32 = vpop.f32.mrb[17].mxu0  ;;  %v6801_v47 = vadd.f32 %v1750_v36, %v6776_v52  ;;  %v6811_v59 = vadd.f32 %v1839_v39, %v6779_v9 }
 0xbd2   :  { %v1889_v41 = vmul.f32 %v1873_v31, %v6791_v22  ;;  %v1891_v42 = vmul.f32 %v1875_v35, %v6794_v27  ;;  %v6804_v48 = vadd.f32 %v1752_v24, %v6782_v10  ;;  %v6807_v40 = vadd.f32 %v1841_v32, %v6786_v13 }
 0xbd3   :  { %v1904_v34 = vmul.f32 %v1888_v45, %v1745_v17  ;;  %v1906_v37 = vmul.f32 %v1890_v23, %v1834_v18  ;;  %v1876_v43 = vmul.f32 0.044715, %v6801_v47  ;;  %v1878_v4 = vmul.f32 0.044715, %v6811_v59 }
 0xbd4   :  { %v1756_v20 = vpop.f32.mrb[22].mxu1  ;;  %v1845_v57 = vpop.f32.mrb[18].mxu0  ;;  %v1905_v33 = vmul.f32 %v1889_v41, %v6791_v22  ;;  %v1907_v53 = vmul.f32 %v1891_v42, %v6794_v27  ;;  %v1877_v38 = vmul.f32 0.044715, %v6804_v48  ;;  %v1879_v61 = vmul.f32 0.044715, %v6807_v40 }
 0xbd5   :  { %v1920_v60 = vadd.f32 %v1904_v34, %v1745_v17  ;;  %v1922_v49 = vadd.f32 %v1906_v37, %v1834_v18  ;;  %v1758_v51 = vpop.f32.mrb[23].mxu1  ;;  %v1847_v63 = vpop.f32.mrb[19].mxu0  ;;  %v6817_v55 = vadd.f32 %v1756_v20, %v6776_v52  ;;  %v6827_v1 = vadd.f32 %v1845_v57, %v6779_v9 }
 0xbd6   :  { %v6821_v62 = vadd.f32 %v1758_v51, %v6782_v10  ;;  %v6824_v54 = vadd.f32 %v1847_v63, %v6786_v13  ;;  %v1921_v6 = vadd.f32 %v1905_v33, %v6791_v22  ;;  %v1923_v15 = vadd.f32 %v1907_v53, %v6794_v27 }
 0xbd7   :  { %v1936_v56 = vmul.f32 0.7978846, %v1920_v60  ;;  %v1938_v0 = vmul.f32 0.7978846, %v1922_v49  ;;  %v1880_v19 = vmul.f32 0.044715, %v6817_v55  ;;  %v1892_v28 = vmul.f32 %v1876_v43, %v6801_v47 }
 0xbd8   :  { %v1762_v2 = vpop.f32.mrb[24].mxu1  ;;  %v1851_v3 = vpop.f32.mrb[20].mxu0  ;;  %v1881_v21 = vmul.f32 0.044715, %v6821_v62  ;;  %v1893_v29 = vmul.f32 %v1877_v38, %v6804_v48  ;;  %v1895_v31 = vmul.f32 %v1879_v61, %v6807_v40  ;;  %v1883_v35 = vmul.f32 0.044715, %v6824_v54 }
 0xbd9   :  { %v1764_v5 = vpop.f32.mrb[25].mxu1  ;;  %v1853_v44 = vpop.f32.mrb[21].mxu0  ;;  %5606 = vtanh.f32 %v1936_v56  ;;  %v1882_v36 = vmul.f32 0.044715, %v6827_v1  ;;  %v6842_v39 = vadd.f32 %v1762_v2, %v6776_v52  ;;  %v1937_v17 = vmul.f32 0.7978846, %v1921_v6 }
 0xbda   :  { %5608 = vtanh.f32 %v1938_v0  ;;  %v1894_v45 = vmul.f32 %v1878_v4, %v6811_v59  ;;  %v6846_v23 = vadd.f32 %v1851_v3, %v6779_v9  ;;  %v6849_v24 = vadd.f32 %v1764_v5, %v6782_v10 }
 0xbdb   :  { %v1939_v32 = vmul.f32 0.7978846, %v1923_v15  ;;  %v6851_v41 = vmul.f32 0.5, %v1834_v18  ;;  %v1896_v42 = vmul.f32 %v1880_v19, %v6817_v55  ;;  %v1897_v34 = vmul.f32 %v1881_v21, %v6821_v62 }
 0xbdc   :  { %5610 = vtanh.f32 %v1937_v17  ;;  %v1899_v52 = vmul.f32 %v1883_v35, %v6824_v54  ;;  %v6857_v37 = vadd.f32 %v1853_v44, %v6786_v13  ;;  %v1909_v9 = vmul.f32 %v1893_v29, %v6804_v48 }
 0xbdd   :  { %5612 = vtanh.f32 %v1939_v32  ;;  %v1898_v20 = vmul.f32 %v1882_v36, %v6827_v1  ;;  %v1884_v10 = vmul.f32 0.044715, %v6842_v39  ;;  %v1911_v18 = vmul.f32 %v1895_v31, %v6807_v40 }
 0xbde   :  { %v1908_v57 = vmul.f32 %v1892_v28, %v6801_v47  ;;  %v1886_v33 = vmul.f32 0.044715, %v6846_v23  ;;  %v1885_v60 = vmul.f32 0.044715, %v6849_v24  ;;  %v1925_v49 = vadd.f32 %v1909_v9, %v6804_v48 }
 0xbdf   :  { %v1910_v13 = vmul.f32 %v1894_v45, %v6811_v59  ;;  %v1857_v51 = vmul.f32 0.5, %v6791_v22  ;;  %v1927_v63 = vadd.f32 %v1911_v18, %v6807_v40  ;;  %v1913_v43 = vmul.f32 %v1897_v34, %v6821_v62 }
 0xbe0   :  { %v1924_v53 = vadd.f32 %v1908_v57, %v6801_v47  ;;  %v1887_v38 = vmul.f32 0.044715, %v6857_v37  ;;  %v1941_v56 = vmul.f32 0.7978846, %v1925_v49  ;;  %v1915_v0 = vmul.f32 %v1899_v52, %v6824_v54 }
 0xbe1   :  { %v1926_v61 = vadd.f32 %v1910_v13, %v6811_v59  ;;  %v1900_v3 = vmul.f32 %v1884_v10, %v6842_v39  ;;  %v1943_v6 = vmul.f32 0.7978846, %v1927_v63  ;;  %v1929_v22 = vadd.f32 %v1913_v43, %v6821_v62 }
 0xbe2   :  { %v1940_v4 = vmul.f32 0.7978846, %v1924_v53  ;;  %v1901_v5 = vmul.f32 %v1885_v60, %v6849_v24  ;;  %5614 = vtanh.f32 %v1941_v56  ;;  %v1931_v15 = vadd.f32 %v1915_v0, %v6824_v54 }
 0xbe3   :  { %v5607_v2 = vpop.eup %5606  ;;  %v1942_v44 = vmul.f32 0.7978846, %v1926_v61  ;;  %v1859_v21 = vmul.f32 0.5, %v6794_v27  ;;  %5616 = vtanh.f32 %v1943_v6  ;;  %v1945_v28 = vmul.f32 0.7978846, %v1929_v22 }
 0xbe4   :  { %v5609_v19 = vpop.eup %5608  ;;  %v1912_v29 = vmul.f32 %v1896_v42, %v6817_v55  ;;  %v1903_v31 = vmul.f32 %v1887_v38, %v6857_v37  ;;  %v1968_v35 = vadd.f32 1.0, %v5607_v2  ;;  %5618 = vtanh.f32 %v1940_v4 }
 0xbe5   :  { %v1947_v36 = vmul.f32 0.7978846, %v1931_v15  ;;  %v1902_v45 = vmul.f32 %v1886_v33, %v6846_v23  ;;  %5620 = vtanh.f32 %v1942_v44  ;;  %v1914_v34 = vmul.f32 %v1898_v20, %v6827_v1 }
 0xbe6   :  { %v5611_v17 = vpop.eup %5610  ;;  %v1928_v32 = vadd.f32 %v1912_v29, %v6817_v55  ;;  %v1970_v27 = vadd.f32 1.0, %v5609_v19  ;;  %5622 = vtanh.f32 %v1945_v28  ;;  %v1917_v10 = vmul.f32 %v1901_v5, %v6849_v24 }
 0xbe7   :  { %v5613_v52 = vpop.eup %5612  ;;  %v1969_v9 = vadd.f32 1.0, %v5611_v17  ;;  %5624 = vtanh.f32 %v1947_v36  ;;  %v1930_v57 = vadd.f32 %v1914_v34, %v6827_v1  ;;  %v1984_v49 = vmul.f32 %v1968_v35, %v6832_v16 }
 0xbe8   :  { %v1971_v42 = vadd.f32 1.0, %v5613_v52  ;;  %v1944_v18 = vmul.f32 0.7978846, %v1928_v32  ;;  %v1933_v33 = vadd.f32 %v1917_v10, %v6849_v24  ;;  %v1919_v13 = vmul.f32 %v1903_v31, %v6857_v37 }
 0xbe9   :  { %v1985_v60 = vmul.f32 %v1969_v9, %v1857_v51  ;;  %v1946_v20 = vmul.f32 0.7978846, %v1930_v57  ;;  %v1916_v53 = vmul.f32 %v1900_v3, %v6842_v39  ;;  %v1986_v43 = vmul.f32 %v1970_v27, %v6851_v41 }
 0xbea   :  { %v1987_v63 = vmul.f32 %v1971_v42, %v1859_v21  ;;  %5626 = vtanh.f32 %v1944_v18  ;;  %v1949_v38 = vmul.f32 0.7978846, %v1933_v33  ;;  %v1935_v56 = vadd.f32 %v1919_v13, %v6857_v37 }
 0xbeb   :  { %2135 = vmatprep.mubr.f32.mxu1 %v1985_v60  ;;  %v1918_v61 = vmul.f32 %v1902_v45, %v6846_v23  ;;  %5628 = vtanh.f32 %v1946_v20  ;;  %v1932_v16 = vadd.f32 %v1916_v53, %v6842_v39  ;;  %v1861_v6 = vmul.f32 0.5, %v6804_v48 }
 0xbec   :  { %2220 = vmatprep.mubr.f32.mxu0 %v1987_v63  ;;  %2136 = vmatmul.mubr.f32.vlgmr.msra.gmra.mrb[26].mxu1 %v1984_v49  ;;  %v5615_v51 = vpop.eup %5614  ;;  %5630 = vtanh.f32 %v1949_v38  ;;  %v1951_v0 = vmul.f32 0.7978846, %v1935_v56  ;;  %v1863_v5 = vmul.f32 0.5, %v6807_v40  ;;  %v1860_v28 = vmul.f32 0.5, %v6801_v47 }
 0xbed   :  { %2221 = vmatmul.mubr.f32.vlgmr.msra.gmra.mrb[22].mxu0 %v1986_v43  ;;  %v1934_v2 = vadd.f32 %v1918_v61, %v6846_v23  ;;  %v5617_v3 = vpop.eup %5616  ;;  %v1973_v41 = vadd.f32 1.0, %v5615_v51  ;;  %v1948_v4 = vmul.f32 0.7978846, %v1932_v16  ;;  %v1862_v36 = vmul.f32 0.5, %v6811_v59 }
 0xbee   :  { %v5619_v22 = vpop.eup %5618  ;;  %v1975_v44 = vadd.f32 1.0, %v5617_v3  ;;  %5632 = vtanh.f32 %v1951_v0  ;;  %v1865_v40 = vmul.f32 0.5, %v6821_v62  ;;  %v1867_v52 = vmul.f32 0.5, %v6824_v54  ;;  %v4322_v3 = vld [vmem:[#allocation25] ss:$0 sm:$0xff] }
 0xbef   :  { %v1950_v15 = vmul.f32 0.7978846, %v1934_v2  ;;  %v5621_v19 = vpop.eup %5620  ;;  %v1989_v21 = vmul.f32 %v1973_v41, %v1861_v6  ;;  %v1972_v29 = vadd.f32 1.0, %v5619_v22  ;;  %5634 = vtanh.f32 %v1948_v4 }
 0xbf0   :  { %v5623_v31 = vpop.eup %5622  ;;  %v1991_v35 = vmul.f32 %v1975_v44, %v1863_v5  ;;  %v1974_v17 = vadd.f32 1.0, %v5621_v19  ;;  %v1864_v59 = vmul.f32 0.5, %v6817_v55  ;;  %v1866_v62 = vmul.f32 0.5, %v6827_v1 }
 0xbf1   :  { %5636 = vtanh.f32 %v1950_v15  ;;  %v5625_v48 = vpop.eup %5624  ;;  %2140 = vmatprep.mubr.f32.mxu1 %v1989_v21  ;;  %v1988_v45 = vmul.f32 %v1972_v29, %v1860_v28  ;;  %v1977_v32 = vadd.f32 1.0, %v5623_v31  ;;  %v1869_v33 = vmul.f32 0.5, %v6849_v24 }
 0xbf2   :  { %2225 = vmatprep.mubr.f32.mxu0 %v1991_v35  ;;  %v1990_v34 = vmul.f32 %v1974_v17, %v1862_v36  ;;  %v1979_v9 = vadd.f32 1.0, %v5625_v48  ;;  %v1871_v43 = vmul.f32 0.5, %v6857_v37  ;;  %v1868_v56 = vmul.f32 0.5, %v6842_v39 }
 0xbf3   :  { %2141 = vmatmul.mubr.f32.gmra.mrb[28].mxu1 %v1988_v45  ;;  %v1993_v27 = vmul.f32 %v1977_v32, %v1865_v40  ;;  %v1870_v1 = vmul.f32 0.5, %v6846_v23 }
 0xbf4   :  { %v5627_v47 = vpop.eup %5626  ;;  %2226 = vmatmul.mubr.f32.gmra.mrb[24].mxu0 %v1990_v34  ;;  %v1995_v10 = vmul.f32 %v1979_v9, %v1867_v52 }
 0xbf5   :  { %v1976_v42 = vadd.f32 1.0, %v5627_v47  ;;  %v5629_v18 = vpop.eup %5628  ;;  %2145 = vmatprep.mubr.f32.mxu1 %v1993_v27 }
 0xbf6   :  { %v5631_v57 = vpop.eup %5630  ;;  %2230 = vmatprep.mubr.f32.mxu0 %v1995_v10  ;;  %v1978_v49 = vadd.f32 1.0, %v5629_v18 }
 0xbf7   :  { %v1992_v60 = vmul.f32 %v1976_v42, %v1864_v59  ;;  %v1981_v54 = vadd.f32 1.0, %v5631_v57 }
 0xbf8   :  { %v5633_v13 = vpop.eup %5632  ;;  %v1994_v63 = vmul.f32 %v1978_v49, %v1866_v62  ;;  %v2313_v49 = vld [vmem:[#allocation11 + $0x188] sm:$0xff] }
 0xbf9   :  { %2146 = vmatmul.mubr.f32.gmra.mrb[30].mxu1 %v1992_v60  ;;  %v5635_v20 = vpop.eup %5634  ;;  %v1997_v53 = vmul.f32 %v1981_v54, %v1869_v33  ;;  %v1983_v55 = vadd.f32 1.0, %v5633_v13  ;;  %v2312_v33 = vld [vmem:[#allocation11 + $0x180] sm:$0xff]  ;;  %v2315_v13 = vld [vmem:[#allocation11 + $0x198] sm:$0xff] }
 0xbfa   :  { %2231 = vmatmul.mubr.f32.gmra.mrb[26].mxu0 %v1994_v63  ;;  %v1980_v61 = vadd.f32 1.0, %v5635_v20  ;;  %v2319_v63 = vld [vmem:[#allocation11 + $0x1b8] sm:$0xff]  ;;  %v2322_v20 = vld [vmem:[#allocation11 + $0x1d0] sm:$0xff] }
 0xbfb   :  { %v5637_v38 = vpop.eup %5636  ;;  %2150 = vmatprep.mubr.f32.mxu1 %v1997_v53  ;;  %v1999_v16 = vmul.f32 %v1983_v55, %v1871_v43  ;;  %v5205_v53 = vpack.c.bf16 %v2315_v13, %v2312_v33  ;;  %v5207_v43 = vpack.c.bf16 %v2322_v20, %v2319_v63  ;;  %v2314_v55 = vld [vmem:[#allocation11 + $0x190] sm:$0xff]  ;;  %v2341_v63 = vld [vmem:[#allocation11 + $0x268] sm:$0xff] }
 0xbfc   :  { %v1982_v51 = vadd.f32 1.0, %v5637_v38  ;;  %v1996_v24 = vmul.f32 %v1980_v61, %v1868_v56  ;;  %v2317_v38 = vld [vmem:[#allocation11 + $0x1a8] sm:$0xff]  ;;  %v2318_v56 = vld [vmem:[#allocation11 + $0x1b0] sm:$0xff] }
 0xbfd   :  { %2235 = vmatprep.mubr.f32.mxu0 %v1999_v16  ;;  %v2321_v61 = vld [vmem:[#allocation11 + $0x1c8] sm:$0xff]  ;;  %v2346_v33 = vld [vmem:[#allocation11 + $0x290] sm:$0xff] }
 0xbfe   :  { %v1998_v0 = vmul.f32 %v1982_v51, %v1870_v1  ;;  %2151 = vmatmul.mubr.f32.gmra.mrb[32].mxu1 %v1996_v24  ;;  %v2325_v16 = vld [vmem:[#allocation11 + $0x1e8] sm:$0xff]  ;;  %v2328_v1 = vld [vmem:[#allocation11 + $0x200] sm:$0xff]  ;;  %v2323_v24 = vld [vmem:[#allocation11 + $0x1d8] sm:$0xff] }
 0xbff   :  { %2442 = vmatprep.mubr.f32.mxu1 %v6171_v30  ;;  %v2320_v51 = vld [vmem:[#allocation11 + $0x1c0] sm:$0xff]  ;;  %v2342_v20 = vld [vmem:[#allocation11 + $0x270] sm:$0xff] }
 0xc00   :  { %2236 = vmatmul.mubr.f32.gmra.mrb[28].mxu0 %v1998_v0  ;;  %v5211_v0 = vpack.c.bf16 %v2328_v1, %v2325_v16  ;;  %v2347_v16 = vld [vmem:[#allocation11 + $0x298] sm:$0xff]  ;;  %v2348_v1 = vld [vmem:[#allocation11 + $0x2a0] sm:$0xff] }
 0xcbf   :  { %v4459_v2 = vpop.f32.mrb[26].mxu1 }
 0xcc0   :  { %v4503_v37 = vpop.f32.mrb[22].mxu0  ;;  %v4460_v6 = vpop.f32.mrb[27].mxu1 }
 0xcc1   :  { %v4461_v41 = vadd.f32 %v4460_v6, %v4459_v2  ;;  %v4504_v4 = vpop.f32.mrb[23].mxu0  ;;  %v5239_v2 = vpack.c.bf16 %v2323_v24, %v2320_v51 }
 0xcc2   :  { %v4505_v39 = vadd.f32 %v4504_v4, %v4503_v37  ;;  %v2324_v37 = vld [vmem:[#allocation11 + $0x1e0] sm:$0xff] }
 0xcc3   :  { %v2138_v22 = vadd.f32 %v4461_v41, %v4322_v3 }
 0xcc5   :  { %v2223_v5 = vadd.f32 %v4505_v39, %v2138_v22 }
 0xcc6   :  { %v4462_v44 = vpop.f32.mrb[28].mxu1 }
 0xcc7   :  { %v6910_v23 = vadd.f32 %v2223_v5, %v6750_v14  ;;  %v4506_v15 = vpop.f32.mrb[24].mxu0  ;;  %v4463_v19 = vpop.f32.mrb[29].mxu1 }
 0xcc8   :  { %v4464_v21 = vadd.f32 %v4463_v19, %v4462_v44  ;;  %v4507_v28 = vpop.f32.mrb[25].mxu0 }
 0xcc9   :  { %2247 = vadd.xlane.f32.xlu0 %v6910_v23  ;;  %v4508_v29 = vadd.f32 %v4507_v28, %v4506_v15 }
 0xcca   :  { %v2143_v31 = vadd.f32 %v4464_v21, %v4322_v3 }
 0xccc   :  { %v4465_v35 = vpop.f32.mrb[30].mxu1  ;;  %v2228_v36 = vadd.f32 %v4508_v29, %v2143_v31 }
 0xccd   :  { %v4466_v17 = vpop.f32.mrb[31].mxu1  ;;  %v4509_v48 = vpop.f32.mrb[26].mxu0 }
 0xcce   :  { %v4467_v45 = vadd.f32 %v4466_v17, %v4465_v35  ;;  %v4510_v40 = vpop.f32.mrb[27].mxu0  ;;  %v2242_v32 = vadd.f32 %v2228_v36, %v6757_v46  ;;  %v2316_v46 = vld [vmem:[#allocation11 + $0x1a0] sm:$0xff] }
 0xccf   :  { %v4511_v52 = vadd.f32 %v4510_v40, %v4509_v48  ;;  %v5203_v54 = vpack.c.bf16 %v2316_v46, %v2313_v49  ;;  %v2331_v48 = vld [vmem:[#allocation11 + $0x218] sm:$0xff]  ;;  %v2326_v40 = vld [vmem:[#allocation11 + $0x1f0] sm:$0xff] }
 0xcd0   :  { %v2148_v34 = vadd.f32 %v4467_v45, %v4322_v3  ;;  %2249 = vadd.xlane.f32.xlu1 %v2242_v32  ;;  %v2334_v45 = vld [vmem:[#allocation11 + $0x230] sm:$0xff]  ;;  %v2343_v46 = vld [vmem:[#allocation11 + $0x278] sm:$0xff] }
 0xcd1   :  { %v4468_v9 = vpop.f32.mrb[32].mxu1  ;;  %5204 = vmatprep.subr.bf16.mxu1 %v5203_v54  ;;  %v2338_v54 = vld [vmem:[#allocation11 + $0x250] sm:$0xff]  ;;  %v5223_v13 = vpack.c.bf16 %v2346_v33, %v2343_v46 }
 0xcd2   :  { %v2233_v14 = vadd.f32 %v4511_v52, %v2148_v34  ;;  %v4469_v27 = vpop.f32.mrb[33].mxu1  ;;  %5206 = vmatpush1.bf16.msra.mxu1 %v5205_v53  ;;  %v2329_v34 = vld [vmem:[#allocation11 + $0x208] sm:$0xff]  ;;  %v2330_v52 = vld [vmem:[#allocation11 + $0x210] sm:$0xff] }
 0xcd3   :  { %v4512_v47 = vpop.f32.mrb[28].mxu0  ;;  %v4470_v10 = vadd.f32 %v4469_v27, %v4468_v9  ;;  %5208 = vmatprep.subr.bf16.mxu1 %v5207_v43  ;;  %v5243_v9 = vpack.c.bf16 %v2329_v34, %v2326_v40  ;;  %v2337_v27 = vld [vmem:[#allocation11 + $0x248] sm:$0xff]  ;;  %v5251_v43 = vpack.c.bf16 %v2341_v63, %v2338_v54  ;;  %v4323_v34 = vld [vmem:[#allocation26] ss:$0 sm:$0xff]  ;;  %v2361_v63 = vld [vmem:[#allocation13 + $0x3] sm:$0x7] }
 0xcd4   :  { %v4513_v59 = vpop.f32.mrb[29].mxu0  ;;  %v2243_v42 = vadd.f32 %v2233_v14, %v6764_v58  ;;  %v5235_v58 = vpack.c.bf16 %v2317_v38, %v2314_v55  ;;  %v2333_v14 = vld [vmem:[#allocation11 + $0x228] sm:$0xff] }
 0xcd5   :  { %v4514_v18 = vadd.f32 %v4513_v59, %v4512_v47  ;;  %v2153_v57 = vadd.f32 %v4470_v10, %v4322_v3  ;;  %v2327_v3 = vld [vmem:[#allocation11 + $0x1f8] sm:$0xff]  ;;  %v5217_v47 = vpack.c.bf16 %v2333_v14, %v2330_v52  ;;  %v2340_v10 = vld [vmem:[#allocation11 + $0x260] sm:$0xff]  ;;  %v2345_v53 = vld [vmem:[#allocation11 + $0x288] sm:$0xff] }
 0xcd6   :  { %2251 = vadd.xlane.f32.xlu0 %v2243_v42  ;;  %5236 = vmatprep.subr.bf16.mxu0 %v5235_v58  ;;  %v5213_v6 = vpack.c.bf16 %v2327_v3, %v2324_v37  ;;  %v2332_v59 = vld [vmem:[#allocation11 + $0x220] sm:$0xff]  ;;  %v5225_v55 = vpack.c.bf16 %v2345_v53, %v2342_v20  ;;  %v2349_v38 = vld [vmem:[#allocation11 + $0x2a8] sm:$0xff]  ;;  %v2350_v37 = vld [vmem:[#allocation11 + $0x2b0] sm:$0xff]  ;;  %v2366_v20 = vrot.slane %v2361_v63, %v6578_v8 }
 0xcd7   :  { %v2238_v60 = vadd.f32 %v4514_v18, %v2153_v57  ;;  %5238 = vmatpush3.bf16.msra.mxu0 %v5235_v58  ;;  %v2335_v18 = vld [vmem:[#allocation11 + $0x238] sm:$0xff]  ;;  %v2336_v57 = vld [vmem:[#allocation11 + $0x240] sm:$0xff] }
 0xcd8   :  { %5240 = vmatprep.subr.bf16.mxu0 %v5239_v2  ;;  %v2344_v58 = vld [vmem:[#allocation11 + $0x280] sm:$0xff] }
 0xcd9   :  { %v2244_v62 = vadd.f32 %v2238_v60, %v6770_v25  ;;  %v5209_v25 = vpack.c.bf16 %v2321_v61, %v2318_v56  ;;  %v2339_v60 = vld [vmem:[#allocation11 + $0x258] sm:$0xff]  ;;  %v2352_v56 = vld [vmem:[#allocation11 + $0x2c0] sm:$0xff]  ;;  %v5255_v51 = vpack.c.bf16 %v2347_v16, %v2344_v58 }
 0xcda   :  { %v5221_v49 = vpack.c.bf16 %v2339_v60, %v2336_v57  ;;  %v5227_v61 = vpack.c.bf16 %v2352_v56, %v2349_v38  ;;  %v2370_v38 = vrot.slane %v2361_v63, %v6585_v12 }
 0xcdb   :  { %2253 = vadd.xlane.f32.xlu1 %v2244_v62  ;;  %5210 = vmatpush1.bf16.msra.mxu1 %v5209_v25  ;;  %v2351_v25 = vld [vmem:[#allocation11 + $0x2b8] sm:$0xff] }
 0xcdc   :  { %5212 = vmatprep.subr.bf16.mxu1 %v5211_v0  ;;  %5242 = vmatpush3.bf16.msra.mxu0 %v5239_v2  ;;  %v5229_v24 = vpack.c.bf16 %v2351_v25, %v2348_v1  ;;  %v2355_v0 = vld [vmem:[#allocation11 + $0x2d8] sm:$0xff]  ;;  %v2358_v2 = vld [vmem:[#allocation11 + $0x2f0] sm:$0xff] }
 0xcdd   :  { %5244 = vmatprep.subr.bf16.mxu0 %v5243_v9  ;;  %v5231_v3 = vpack.c.bf16 %v2358_v2, %v2355_v0 }
 0xcdf   :  { %5214 = vmatpush1.bf16.msra.mxu1 %v5213_v6  ;;  %v2353_v6 = vld [vmem:[#allocation11 + $0x2c8] sm:$0xff] }
 0xce0   :  { %5246 = vmatpush3.bf16.msra.mxu0 %v5243_v9  ;;  %v4324_v9 = vld [vmem:[#allocation28] ss:$0 sm:$0xff] }
 0xd56   :  { %v2248_v41 = vpop.xlane.xlu0 %2247 }
 0xd57   :  { %v2255_v4 = vmul.f32 0.0078125, %v2248_v41  ;;  %v2354_v41 = vld [vmem:[#allocation11 + $0x2d0] sm:$0xff] }
 0xd59   :  { %v6917_v39 = vsub.f32 %v6910_v23, %v2255_v4  ;;  %v2357_v4 = vld [vmem:[#allocation11 + $0x2e8] sm:$0xff] }
 0xd5b   :  { %v2263_v22 = vmul.f32 %v6917_v39, %v6917_v39 }
 0xd5d   :  { %2267 = vadd.xlane.f32.xlu0 %v2263_v22  ;;  %v2250_v5 = vpop.xlane.xlu1 %2249  ;;  %v5259_v22 = vpack.c.bf16 %v2353_v6, %v2350_v37 }
 0xd5e   :  { %v2256_v44 = vmul.f32 0.0078125, %v2250_v5  ;;  %v2356_v5 = vld [vmem:[#allocation11 + $0x2e0] sm:$0xff] }
 0xd60   :  { %v6921_v15 = vsub.f32 %v2242_v32, %v2256_v44  ;;  %v5215_v32 = vpack.c.bf16 %v2334_v45, %v2331_v48  ;;  %v5233_v44 = vpack.c.bf16 %v2357_v4, %v2354_v41 }
 0xd62   :  { %v2264_v21 = vmul.f32 %v6921_v15, %v6921_v15  ;;  %5216 = vmatprep.subr.bf16.mxu1 %v5215_v32 }
 0xd63   :  { %v2252_v19 = vpop.xlane.xlu0 %2251  ;;  %5218 = vmatpush1.bf16.msra.mxu1 %v5217_v47 }
 0xd64   :  { %v2257_v28 = vmul.f32 0.0078125, %v2252_v19  ;;  %2269 = vadd.xlane.f32.xlu1 %v2264_v21  ;;  %v2359_v19 = vld [vmem:[#allocation11 + $0x2f8] sm:$0xff] }
 0xd65   :  { %v5263_v21 = vpack.c.bf16 %v2359_v19, %v2356_v5 }
 0xd66   :  { %v6925_v29 = vsub.f32 %v2243_v42, %v2257_v28  ;;  %v5219_v42 = vpack.c.bf16 %v2340_v10, %v2337_v27 }
 0xd68   :  { %v2265_v23 = vmul.f32 %v6925_v29, %v6925_v29  ;;  %v2254_v31 = vpop.xlane.xlu1 %2253  ;;  %5220 = vmatprep.subr.bf16.mxu1 %v5219_v42 }
 0xd69   :  { %v2258_v35 = vmul.f32 0.0078125, %v2254_v31  ;;  %5222 = vmatpush1.bf16.msra.mxu1 %v5221_v49 }
 0xd6a   :  { %2271 = vadd.xlane.f32.xlu0 %v2265_v23  ;;  %5224 = vmatprep.subr.bf16.mxu1 %v5223_v13 }
 0xd6b   :  { %v6929_v36 = vsub.f32 %v2244_v62, %v2258_v35  ;;  %v5247_v62 = vpack.c.bf16 %v2335_v18, %v2332_v59 }
 0xd6d   :  { %v2266_v17 = vmul.f32 %v6929_v36, %v6929_v36  ;;  %5248 = vmatprep.subr.bf16.mxu0 %v5247_v62  ;;  %5226 = vmatpush1.bf16.msra.mxu1 %v5225_v55 }
 0xd6e   :  { %5250 = vmatpush3.bf16.msra.mxu0 %v5247_v62  ;;  %5228 = vmatprep.subr.bf16.mxu1 %v5227_v61 }
 0xd6f   :  { %2273 = vadd.xlane.f32.xlu1 %v2266_v17  ;;  %5252 = vmatprep.subr.bf16.mxu0 %v5251_v43 }
 0xd71   :  { %5230 = vmatpush1.bf16.msra.mxu1 %v5229_v24 }
 0xd72   :  { %5254 = vmatpush3.bf16.msra.mxu0 %v5251_v43  ;;  %5232 = vmatprep.subr.bf16.mxu1 %v5231_v3 }
 0xd73   :  { %5256 = vmatprep.subr.bf16.mxu0 %v5255_v51 }
 0xd75   :  { %5234 = vmatpush1.bf16.msra.mxu1 %v5233_v44 }
 0xd76   :  { %5258 = vmatpush3.bf16.msra.mxu0 %v5255_v51 }
 0xd77   :  { %5260 = vmatprep.subr.bf16.mxu0 %v5259_v22 }
 0xd7a   :  { %5262 = vmatpush3.bf16.msra.mxu0 %v5259_v22 }
 0xd7b   :  { %5264 = vmatprep.subr.bf16.mxu0 %v5263_v21 }
 0xd7e   :  { %5266 = vmatpush3.bf16.msra.mxu0 %v5263_v21 }
 0xdea   :  { %v2268_v28 = vpop.xlane.xlu0 %2267 }
 0xdeb   :  { %v2275_v23 = vmul.f32 0.0078125, %v2268_v28 }
 0xded   :  { %v2279_v31 = vadd.f32 1e-12, %v2275_v23 }
 0xdef   :  { %5638 = vrsqrt.f32 %v2279_v31 }
 0xdf1   :  { %v2270_v35 = vpop.xlane.xlu1 %2269 }
 0xdf2   :  { %v2276_v17 = vmul.f32 0.0078125, %v2270_v35 }
 0xdf4   :  { %v2280_v48 = vadd.f32 1e-12, %v2276_v17 }
 0xdf6   :  { %5640 = vrsqrt.f32 %v2280_v48 }
 0xdf7   :  { %v2272_v45 = vpop.xlane.xlu0 %2271 }
 0xdf8   :  { %v2277_v40 = vmul.f32 0.0078125, %v2272_v45 }
 0xdf9   :  { %v5639_v32 = vpop.eup %5638 }
 0xdfa   :  { %v2287_v52 = vmul.f32 %v5639_v32, %v6917_v39  ;;  %v2281_v14 = vadd.f32 1e-12, %v2277_v40 }
 0xdfc   :  { %5642 = vrsqrt.f32 %v2281_v14  ;;  %v2297_v47 = vmul.f32 %v4323_v34, %v2287_v52  ;;  %v2274_v27 = vpop.xlane.xlu1 %2273 }
 0xdfd   :  { %v2278_v10 = vmul.f32 0.0078125, %v2274_v27 }
 0xdfe   :  { %v6934_v59 = vadd.f32 %v4324_v9, %v2297_v47 }
 0xdff   :  { %v2282_v42 = vadd.f32 1e-12, %v2278_v10 }
 0xe00   :  { %2443 = vmatmul.mubr.f32.vlgmr.msra.gmra.mrb[34].mxu1 %v6934_v59  ;;  %4839 = vmatprep.mubr.f32.mxu0 %v6934_v59  ;;  %v5641_v18 = vpop.eup %5640 }
 0xe01   :  { %2448 = vmatprep.mubr.f32.mxu1 %v6171_v30  ;;  %5644 = vrsqrt.f32 %v2282_v42  ;;  %v2288_v57 = vmul.f32 %v5641_v18, %v6921_v15 }
 0xe03   :  { %v2298_v39 = vmul.f32 %v4323_v34, %v2288_v57 }
 0xe05   :  { %v6940_v62 = vadd.f32 %v4324_v9, %v2298_v39 }
 0xe06   :  { %v5643_v60 = vpop.eup %5642 }
 0xe07   :  { %v2289_v49 = vmul.f32 %v5643_v60, %v6925_v29  ;;  %2449 = vmatmul.mubr.f32.gmra.mrb[36].mxu1 %v6940_v62  ;;  %4840 = vmatmul.mubr.f32.vlgmr.msra.gmra.mrb[30].mxu0 %v6940_v62 }
 0xe08   :  { %2454 = vmatprep.mubr.f32.mxu1 %v6171_v30 }
 0xe09   :  { %v2299_v46 = vmul.f32 %v4323_v34, %v2289_v49 }
 0xe0b   :  { %v6946_v33 = vadd.f32 %v4324_v9, %v2299_v46  ;;  %v5645_v54 = vpop.eup %5644 }
 0xe0c   :  { %v2290_v15 = vmul.f32 %v5645_v54, %v6929_v36  ;;  %v2374_v36 = vrot.slane %v2361_v63, %v6582_v11 }
 0xe0d   :  { %2455 = vmatmul.mubr.f32.gmra.mrb[38].mxu1 %v6946_v33  ;;  %4842 = vmatprep.mubr.f32.mxu0 %v6946_v33 }
 0xe0e   :  { %2460 = vmatprep.mubr.f32.mxu1 %v6171_v30  ;;  %v2300_v13 = vmul.f32 %v4323_v34, %v2290_v15 }
 0xe10   :  { %v6952_v29 = vadd.f32 %v4324_v9, %v2300_v13 }
 0xe12   :  { %2461 = vmatmul.mubr.f32.gmra.mrb[40].mxu1 %v6952_v29  ;;  %4843 = vmatmul.mubr.f32.gmra.mrb[32].mxu0 %v6952_v29 }
 0xed3   :  { %v2444_v53 = vpop.f32.mrb[34].mxu1 }
 0xed4   :  { %v6957_v43 = vadd.f32 %v2444_v53, %v2366_v20  ;;  %v2446_v55 = vpop.f32.mrb[35].mxu1 }
 0xed5   :  { %v6965_v25 = vadd.f32 %v2446_v55, %v2370_v38 }
 0xed6   :  { %4849 = vmatprep.mubr.msk.f32.mxu1 %vm608_vm0, %v6957_v43 }
 0xeda   :  { %v2450_v56 = vpop.f32.mrb[36].mxu1  ;;  %v4841_v58 = vpop.f32.mrb[30].mxu0 }
 0xedb   :  { %v6963_v61 = vadd.f32 %v4841_v58, %v2374_v36  ;;  %v2452_v16 = vpop.f32.mrb[37].mxu1  ;;  %v2533_v1 = vpop.f32.mrb[31].mxu0  ;;  %v6983_v5 = vadd.f32 %v2450_v56, %v2366_v20 }
 0xedc   :  { %v6967_v51 = vadd.f32 %v2452_v16, %v2370_v38  ;;  %v6969_v24 = vadd.f32 %v2533_v1, %v2374_v36 }
 0xede   :  { %v5267_v0 = vpack.c.bf16 %v6967_v51, %v6965_v25  ;;  %v5279_v2 = vpack.c.bf16 %v6963_v61, %v6969_v24  ;;  %v5528_v37 = vpack.i.bf16 %v6967_v51, %v6965_v25  ;;  %v5538_v3 = vpack.i.bf16 %v6963_v61, %v6969_v24 }
 0xee0   :  { %v2456_v6 = vpop.f32.mrb[38].mxu1  ;;  %5269 = vmatprep.subr.msk.bf16.mxu1 %vm6603_vm1, %v5267_v0 }
 0xee1   :  { %v2458_v41 = vpop.f32.mrb[39].mxu1  ;;  %5272 = vmatpush3.bf16.xpose.msk.msra.mxu1 %vm6603_vm1, %v5267_v0  ;;  %v2457_v28 = vadd.f32 %v2456_v6, %v2366_v20 }
 0xee2   :  { %v2459_v23 = vadd.f32 %v2458_v41, %v2370_v38 }
 0xee5   :  { %v2462_v4 = vpop.f32.mrb[40].mxu1  ;;  %v4844_v22 = vpop.f32.mrb[32].mxu0 }
 0xee6   :  { %v6985_v44 = vadd.f32 %v4844_v22, %v2374_v36  ;;  %v2464_v19 = vpop.f32.mrb[41].mxu1  ;;  %v2543_v21 = vpop.f32.mrb[33].mxu0  ;;  %v2463_v32 = vadd.f32 %v2462_v4, %v2366_v20 }
 0xee7   :  { %v2465_v31 = vadd.f32 %v2464_v19, %v2370_v38  ;;  %v6987_v35 = vadd.f32 %v2543_v21, %v2374_v36 }
 0xee8   :  { %4850 = vmatmul.mubr.msk.f32.vlgmr.msra.gmra.mrb[42].mxu1 %vm608_vm0, %v6983_v5 }
 0xee9   :  { %v5273_v17 = vpack.c.bf16 %v2465_v31, %v2459_v23  ;;  %v6993_v48 = vpack.c.bf16 %v6985_v44, %v6987_v35  ;;  %4856 = vmatprep.mubr.msk.f32.mxu1 %vm608_vm0, %v2457_v28  ;;  %v5533_v45 = vpack.i.bf16 %v2465_v31, %v2459_v23  ;;  %v5543_v40 = vpack.i.bf16 %v6985_v44, %v6987_v35 }
 0xeeb   :  { %5275 = vmatprep.subr.msk.bf16.mxu1 %vm6603_vm1, %v5273_v17 }
 0xeec   :  { %5278 = vmatpush3.bf16.xpose.msk.msra.mxu1 %vm6603_vm1, %v5273_v17 }
 0xeed   :  { %5280 = vmatprep.subr.bf16.mxu1 %v5279_v2 }
 0xef3   :  { %4857 = vmatmul.mubr.msk.f32.vlgmr.msra.gmra.mrb[44].mxu1 %vm608_vm0, %v2463_v32 }
 0xef4   :  { %5282 = vmatpush3.bf16.msra.mxu1 %v5279_v2 }
 0xef5   :  { %5284 = vmatprep.subr.bf16.mxu1 %v6993_v48 }
 0xfbb   :  { %v4851_v34 = vpop.f32.mrb[42].mxu1 }
 0xfbc   :  { %v2630_v52 = vpop.f32.mrb[43].mxu1  ;;  %v2729_v14 = vsel %vm783_vm2, %v4851_v34, -inf }
 0xfbd   :  { %2730 = vmax.xlane.f32.xlu1 %v2729_v14  ;;  %v2726_v9 = vsel %vm783_vm2, %v2630_v52, -inf }
 0xfbe   :  { %2727 = vmax.xlane.f32.xlu0 %v2726_v9 }
 0xfc6   :  { %v4858_v47 = vpop.f32.mrb[44].mxu1 }
 0xfc7   :  { %v2717_v27 = vpop.f32.mrb[45].mxu1  ;;  %v2735_v10 = vsel %vm783_vm2, %v4858_v47, -inf }
 0xfc8   :  { %2736 = vmax.xlane.f32.xlu1 %v2735_v10  ;;  %v2732_v42 = vsel %vm783_vm2, %v2717_v27, -inf }
 0xfc9   :  { %2733 = vmax.xlane.f32.xlu0 %v2732_v42 }
0x104a   :  { %v2731_v18 = vpop.xlane.xlu1 %2730 }
0x104b   :  { %v2739_v57 = vsub.f32 %v4851_v34, %v2731_v18  ;;  %v2728_v39 = vpop.xlane.xlu0 %2727 }
0x104c   :  { %v2738_v60 = vsub.f32 %v2630_v52, %v2728_v39 }
0x104d   :  { %v2744_v49 = vmul.f32 1.442695, %v2739_v57 }
0x104e   :  { %v2742_v46 = vmul.f32 1.442695, %v2738_v60 }
0x104f   :  { %5646 = vpow2.f32 %v2744_v49 }
0x1050   :  { %5648 = vpow2.f32 %v2742_v46 }
0x1055   :  { %v2737_v54 = vpop.xlane.xlu1 %2736 }
0x1056   :  { %v2741_v15 = vsub.f32 %v4858_v47, %v2737_v54  ;;  %v2734_v13 = vpop.xlane.xlu0 %2733 }
0x1057   :  { %v2740_v63 = vsub.f32 %v2717_v27, %v2734_v13 }
0x1058   :  { %v2748_v20 = vmul.f32 1.442695, %v2741_v15 }
0x1059   :  { %v5647_v53 = vpop.eup %5646  ;;  %v2746_v55 = vmul.f32 1.442695, %v2740_v63 }
0x105a   :  { %v5649_v36 = vpop.eup %5648  ;;  %5650 = vpow2.f32 %v2748_v20  ;;  %v2753_v38 = vsel %vm783_vm2, %v5647_v53, 0.0 }
0x105b   :  { %5652 = vpow2.f32 %v2746_v55  ;;  %2754 = vadd.xlane.f32.xlu1 %v2753_v38  ;;  %v2750_v56 = vsel %vm783_vm2, %v5649_v36, 0.0 }
0x105c   :  { %2751 = vadd.xlane.f32.xlu0 %v2750_v56 }
0x1064   :  { %v5651_v58 = vpop.eup %5650 }
0x1065   :  { %v5653_v16 = vpop.eup %5652  ;;  %v2759_v1 = vsel %vm783_vm2, %v5651_v58, 0.0 }
0x1066   :  { %2760 = vadd.xlane.f32.xlu1 %v2759_v1  ;;  %v2756_v0 = vsel %vm783_vm2, %v5653_v16, 0.0 }
0x1067   :  { %2757 = vadd.xlane.f32.xlu0 %v2756_v0 }
0x1077   :  { %5534 = vrot.lane.b32.xlu1 %v5533_v45, %s6167_s10 }
0x107b   :  { %2932 = vrot.lane.b32.xlu1 %v6957_v43, %s6167_s10 }
0x107d   :  { %5529 = vrot.lane.b32.xlu0 %v5528_v37, %s6167_s10 }
0x107f   :  { %2934 = vrot.lane.b32.xlu1 %v6983_v5, %s6167_s10 }
0x1081   :  { %3023 = vrot.lane.b32.xlu0 %v2457_v28, %s6167_s10 }
0x1083   :  { %3025 = vrot.lane.b32.xlu1 %v2463_v32, %s6167_s10 }
0x10e8   :  { %v2755_v2 = vpop.xlane.xlu1 %2754 }
0x10e9   :  { %5654 = vrcp.f32 %v2755_v2  ;;  %v2752_v6 = vpop.xlane.xlu0 %2751 }
0x10ea   :  { %5656 = vrcp.f32 %v2752_v6 }
0x10f3   :  { %v5655_v41 = vpop.eup %5654  ;;  %v2761_v4 = vpop.xlane.xlu1 %2760 }
0x10f4   :  { %v5657_v22 = vpop.eup %5656  ;;  %5658 = vrcp.f32 %v2761_v4  ;;  %v2758_v43 = vpop.xlane.xlu0 %2757  ;;  %v2767_v25 = vmul.f32 %v5655_v41, %v5647_v53 }
0x10f5   :  { %5660 = vrcp.f32 %v2758_v43  ;;  %v2766_v19 = vmul.f32 %v5657_v22, %v5649_v36 }
0x10f7   :  { %v5535_v51 = vpop.permute.xlu1 %5534  ;;  %4863 = vmatprep.mubr.msk.f32.mxu1 %vm783_vm2, %v2766_v19 }
0x10f8   :  { %v5537_v37 = vunpack.i.h.bf16 %v5535_v51  ;;  %v5536_v5 = vunpack.i.l.bf16 %v5535_v51  ;;  %v5530_v21 = vpop.permute.xlu0 %5529  ;;  %4864 = vmatmul.mubr.msk.f32.vlgmr.msra.gmra.mrb[46].mxu1 %vm783_vm2, %v2767_v25 }
0x10f9   :  { %v5532_v28 = vunpack.i.h.bf16 %v5530_v21  ;;  %v5531_v23 = vunpack.i.l.bf16 %v5530_v21  ;;  %5286 = vmatpush3.bf16.msra.mxu1 %v6993_v48 }
0x10fa   :  { %v5293_v31 = vpack.c.bf16 %v5537_v37, %v5536_v5 }
0x10fb   :  { %v5287_v17 = vpack.c.bf16 %v5532_v28, %v5531_v23  ;;  %v2933_v45 = vpop.permute.xlu1 %2932 }
0x10fc   :  { %4877 = vmatprep.mubr.msk.f32.mxu0 %vm608_vm0, %v2933_v45  ;;  %5295 = vmatprep.subr.msk.bf16.mxu1 %vm6603_vm1, %v5293_v31  ;;  %v3024_v48 = vpop.permute.xlu0 %3023 }
0x10fd   :  { %5289 = vmatprep.subr.msk.bf16.mxu0 %vm6603_vm1, %v5287_v17 }
0x10fe   :  { %v5659_v32 = vpop.eup %5658  ;;  %5292 = vmatpush3.bf16.xpose.msk.msra.mxu0 %vm6603_vm1, %v5287_v17 }
0x10ff   :  { %v5661_v34 = vpop.eup %5660  ;;  %v2769_v14 = vmul.f32 %v5659_v32, %v5651_v58  ;;  %v2935_v9 = vpop.permute.xlu1 %2934 }
0x1100   :  { %v2768_v52 = vmul.f32 %v5661_v34, %v5653_v16 }
0x1102   :  { %4870 = vmatprep.mubr.msk.f32.mxu1 %vm783_vm2, %v2768_v52 }
0x1103   :  { %4871 = vmatmul.mubr.msk.f32.vlgmr.msra.gmra.mrb[48].mxu1 %vm783_vm2, %v2769_v14  ;;  %v3026_v47 = vpop.permute.xlu1 %3025 }
0x1104   :  { %5298 = vmatpush3.bf16.xpose.msk.msra.mxu1 %vm6603_vm1, %v5293_v31  ;;  %4884 = vmatprep.mubr.msk.f32.mxu1 %vm608_vm0, %v3024_v48 }
0x1105   :  { %4878 = vmatmul.mubr.msk.f32.vlgmr.msra.gmra.mrb[34].mxu0 %vm608_vm0, %v2935_v9  ;;  %v3357_v9 = vld [vmem:[#allocation14 + $0x80] sm:$0xff] }
0x110b   :  { %4885 = vmatmul.mubr.msk.f32.vlgmr.msra.gmra.mrb[50].mxu1 %vm608_vm0, %v3026_v47  ;;  %v3358_v47 = vld [vmem:[#allocation14 + $0x88] sm:$0xff] }
0x11cb   :  { %v7040_v27 = vpop.f32.mrb[46].mxu1 }
0x11cc   :  { %v7042_v10 = vpop.f32.mrb[47].mxu1 }
0x11d6   :  { %v7044_v42 = vpop.f32.mrb[48].mxu1 }
0x11d7   :  { %v7046_v18 = vpop.f32.mrb[49].mxu1 }
0x11d8   :  { %v4879_v57 = vpop.f32.mrb[34].mxu0 }
0x11d9   :  { %v3014_v39 = vpop.f32.mrb[35].mxu0  ;;  %v3117_v26 = vsel %vm783_vm2, %v4879_v57, -inf }
0x11da   :  { %3118 = vmax.xlane.f32.xlu1 %v3117_v26  ;;  %v3114_v60 = vsel %vm783_vm2, %v3014_v39, -inf  ;;  %v3360_v26 = vld [vmem:[#allocation14 + $0x98] sm:$0xff] }
0x11db   :  { %3115 = vmax.xlane.f32.xlu0 %v3114_v60 }
0x11de   :  { %v4886_v49 = vpop.f32.mrb[50].mxu1 }
0x11df   :  { %v3105_v46 = vpop.f32.mrb[51].mxu1  ;;  %v3123_v15 = vsel %vm783_vm2, %v4886_v49, -inf }
0x11e0   :  { %v3120_v54 = vsel %vm783_vm2, %v3105_v46, -inf }
0x11e1   :  { %3121 = vmax.xlane.f32.xlu0 %v3120_v54 }
0x11e5   :  { %3124 = vmax.xlane.f32.xlu0 %v3123_v15  ;;  %v3363_v15 = vld [vmem:[#allocation14 + $0xb0] sm:$0xff] }
0x1267   :  { %v3119_v13 = vpop.xlane.xlu1 %3118 }
0x1268   :  { %v3127_v63 = vsub.f32 %v4879_v57, %v3119_v13  ;;  %v3116_v20 = vpop.xlane.xlu0 %3115  ;;  %v3359_v57 = vld [vmem:[#allocation14 + $0x90] sm:$0xff]  ;;  %v3364_v13 = vld [vmem:[#allocation14 + $0xb8] sm:$0xff] }
0x1269   :  { %v3126_v53 = vsub.f32 %v3014_v39, %v3116_v20  ;;  %v5307_v39 = vpack.c.bf16 %v3358_v47, %v3357_v9  ;;  %v5311_v60 = vpack.c.bf16 %v3360_v26, %v3359_v57  ;;  %v3365_v20 = vld [vmem:[#allocation14 + $0xc0] sm:$0xff] }
0x126a   :  { %v3132_v55 = vmul.f32 1.442695, %v3127_v63  ;;  %v5319_v63 = vpack.c.bf16 %v3364_v13, %v3363_v15  ;;  %v3546_v47 = vld [vmem:[#allocation20 + $0x238] sm:$0xff]  ;;  %v3539_v57 = vld [vmem:[#allocation20 + $0x200] sm:$0xff]  ;;  %v3552_v15 = vld [vmem:[#allocation20 + $0x268] sm:$0xff] }
0x126b   :  { %v3130_v36 = vmul.f32 1.442695, %v3126_v53  ;;  %v3366_v53 = vld [vmem:[#allocation14 + $0xc8] sm:$0xff]  ;;  %v3550_v13 = vld [vmem:[#allocation20 + $0x258] sm:$0xff] }
0x126c   :  { %5662 = vpow2.f32 %v3132_v55  ;;  %v5323_v55 = vpack.c.bf16 %v3366_v53, %v3365_v20  ;;  %v3547_v53 = vld [vmem:[#allocation20 + $0x240] sm:$0xff] }
0x126d   :  { %5664 = vpow2.f32 %v3130_v36  ;;  %v3367_v36 = vld [vmem:[#allocation14 + $0xd0] sm:$0xff] }
0x126e   :  { %v3122_v38 = vpop.xlane.xlu0 %3121 }
0x126f   :  { %v3128_v56 = vsub.f32 %v3105_v46, %v3122_v38  ;;  %v3362_v46 = vld [vmem:[#allocation14 + $0xa8] sm:$0xff]  ;;  %v3368_v38 = vld [vmem:[#allocation14 + $0xd8] sm:$0xff] }
0x1271   :  { %v3134_v58 = vmul.f32 1.442695, %v3128_v56  ;;  %v5327_v56 = vpack.c.bf16 %v3368_v38, %v3367_v36  ;;  %v3549_v36 = vld [vmem:[#allocation20 + $0x250] sm:$0xff] }
0x1272   :  { %v3125_v16 = vpop.xlane.xlu0 %3124 }
0x1273   :  { %5666 = vpow2.f32 %v3134_v58  ;;  %v3129_v1 = vsub.f32 %v4886_v49, %v3125_v16  ;;  %v3361_v49 = vld [vmem:[#allocation14 + $0xa0] sm:$0xff]  ;;  %v3370_v16 = vld [vmem:[#allocation14 + $0xe8] sm:$0xff] }
0x1274   :  { %v5315_v54 = vpack.c.bf16 %v3362_v46, %v3361_v49  ;;  %v3369_v58 = vld [vmem:[#allocation14 + $0xe0] sm:$0xff]  ;;  %v3541_v49 = vld [vmem:[#allocation20 + $0x210] sm:$0xff] }
0x1275   :  { %v3136_v0 = vmul.f32 1.442695, %v3129_v1  ;;  %v5331_v1 = vpack.c.bf16 %v3370_v16, %v3369_v58  ;;  %v3545_v46 = vld [vmem:[#allocation20 + $0x230] sm:$0xff]  ;;  %v3556_v58 = vld [vmem:[#allocation20 + $0x288] sm:$0xff] }
0x1276   :  { %v5663_v2 = vpop.eup %5662  ;;  %v3560_v16 = vld [vmem:[#allocation20 + $0x2a8] sm:$0xff] }
0x1277   :  { %v5665_v6 = vpop.eup %5664  ;;  %5668 = vpow2.f32 %v3136_v0  ;;  %v3141_v41 = vsel %vm783_vm2, %v5663_v2, 0.0  ;;  %v3371_v0 = vld [vmem:[#allocation14 + $0xf0] sm:$0xff] }
0x1278   :  { %3142 = vadd.xlane.f32.xlu1 %v3141_v41  ;;  %v3138_v4 = vsel %vm783_vm2, %v5665_v6, 0.0 }
0x1279   :  { %3139 = vadd.xlane.f32.xlu0 %v3138_v4 }
0x127d   :  { %v5667_v22 = vpop.eup %5666 }
0x127e   :  { %v3144_v43 = vsel %vm783_vm2, %v5667_v22, 0.0 }
0x127f   :  { %3145 = vadd.xlane.f32.xlu0 %v3144_v43 }
0x1281   :  { %v5669_v19 = vpop.eup %5668 }
0x1282   :  { %v3147_v25 = vsel %vm783_vm2, %v5669_v19, 0.0 }
0x1283   :  { %3148 = vadd.xlane.f32.xlu1 %v3147_v25 }
0x1294   :  { %5544 = vrot.lane.b32.xlu1 %v5543_v40, %s6167_s10 }
0x1295   :  { %5539 = vrot.lane.b32.xlu0 %v5538_v3, %s6167_s10 }
0x1305   :  { %v3143_v37 = vpop.xlane.xlu1 %3142 }
0x1306   :  { %v3140_v51 = vpop.xlane.xlu0 %3139 }
0x1307   :  { %5670 = vrcp.f32 %v3140_v51 }
0x1308   :  { %5672 = vrcp.f32 %v3143_v37 }
0x130c   :  { %v3146_v5 = vpop.xlane.xlu0 %3145 }
0x130d   :  { %5674 = vrcp.f32 %v3146_v5 }
0x1310   :  { %v3149_v21 = vpop.xlane.xlu1 %3148  ;;  %v5540_v28 = vpop.permute.xlu0 %5539 }
0x1311   :  { %v5671_v23 = vpop.eup %5670  ;;  %5676 = vrcp.f32 %v3149_v21  ;;  %v5542_v31 = vunpack.i.h.bf16 %v5540_v28  ;;  %v5541_v17 = vunpack.i.l.bf16 %v5540_v28 }
0x1312   :  { %v3154_v45 = vmul.f32 %v5671_v23, %v5665_v6  ;;  %v5673_v35 = vpop.eup %5672 }
0x1313   :  { %v5299_v44 = vpack.c.bf16 %v5542_v31, %v5541_v17  ;;  %v3155_v32 = vmul.f32 %v5673_v35, %v5663_v2  ;;  %v3372_v2 = vld [vmem:[#allocation14 + $0xf8] sm:$0xff]  ;;  %v4349_v35 = vld [vmem:[#allocation16 + $0x1] ss:$0 sm:$0xff] }
0x1314   :  { %v5545_v40 = vpop.permute.xlu1 %5544  ;;  %4891 = vmatprep.mubr.msk.f32.mxu0 %vm783_vm2, %v3154_v45  ;;  %v5335_v6 = vpack.c.bf16 %v3372_v2, %v3371_v0  ;;  %v5347_v0 = vpack.c.bf16 %v3560_v16, %v3556_v58  ;;  %v3558_v2 = vld [vmem:[#allocation20 + $0x298] sm:$0xff]  ;;  %v3579_v58 = vld [vmem:[#allocation20 + $0x340] sm:$0xff] }
0x1315   :  { %v5547_v61 = vunpack.i.h.bf16 %v5545_v40  ;;  %v5546_v24 = vunpack.i.l.bf16 %v5545_v40  ;;  %5300 = vmatprep.subr.bf16.mxu0 %v5299_v44  ;;  %v3583_v16 = vld [vmem:[#allocation20 + $0x360] sm:$0xff] }
0x1316   :  { %5302 = vmatpush3.bf16.msra.mxu0 %v5299_v44 }
0x1317   :  { %v5675_v3 = vpop.eup %5674  ;;  %v5303_v34 = vpack.c.bf16 %v5547_v61, %v5546_v24  ;;  %5308 = vmatprep.subr.bf16.mxu0 %v5307_v39 }
0x1318   :  { %v3156_v52 = vmul.f32 %v5675_v3, %v5667_v22 }
0x1319   :  { %4892 = vmatmul.mubr.msk.f32.vlgmr.msra.gmra.mrb[36].mxu0 %vm783_vm2, %v3155_v32  ;;  %5304 = vmatprep.subr.bf16.mxu1 %v5303_v34 }
0x131a   :  { %5306 = vmatpush3.bf16.msra.mxu1 %v5303_v34  ;;  %4898 = vmatprep.mubr.msk.f32.mxu1 %vm783_vm2, %v3156_v52 }
0x131b   :  { %v5677_v14 = vpop.eup %5676  ;;  %5310 = vmatpush3.bf16.msra.mxu0 %v5307_v39  ;;  %v3543_v39 = vld [vmem:[#allocation20 + $0x220] sm:$0xff] }
0x131c   :  { %v3157_v48 = vmul.f32 %v5677_v14, %v5669_v19  ;;  %5312 = vmatprep.subr.bf16.mxu0 %v5311_v60 }
0x131e   :  { %4899 = vmatmul.mubr.msk.f32.vlgmr.msra.gmra.mrb[52].mxu1 %vm783_vm2, %v3157_v48  ;;  %v3542_v48 = vld [vmem:[#allocation20 + $0x218] sm:$0xff] }
0x131f   :  { %3690 = vmatprep.mubr.f32.mxu1 %v6171_v30  ;;  %5314 = vmatpush3.bf16.msra.mxu0 %v5311_v60  ;;  %v5371_v26 = vpack.c.bf16 %v3546_v47, %v3542_v48  ;;  %v5341_v60 = vpack.c.bf16 %v3543_v39, %v3539_v57  ;;  %v3565_v47 = vld [vmem:[#allocation20 + $0x2d0] sm:$0xff] }
0x1320   :  { %5316 = vmatprep.subr.bf16.mxu0 %v5315_v54  ;;  %v3569_v57 = vld [vmem:[#allocation20 + $0x2f0] sm:$0xff] }
0x1321   :  { %v5385_v39 = vpack.c.bf16 %v3569_v57, %v3565_v47  ;;  %v3998_v57 = vld [vmem:[#allocation23 + $0x388] sm:$0xff] }
0x1323   :  { %5318 = vmatpush3.bf16.msra.mxu0 %v5315_v54  ;;  %v5373_v54 = vpack.c.bf16 %v3545_v46, %v3541_v49  ;;  %v3578_v46 = vld [vmem:[#allocation20 + $0x338] sm:$0xff] }
0x1324   :  { %5320 = vmatprep.subr.bf16.mxu0 %v5319_v63 }
0x1327   :  { %5322 = vmatpush3.bf16.msra.mxu0 %v5319_v63 }
0x1328   :  { %5324 = vmatprep.subr.bf16.mxu0 %v5323_v55 }
0x132b   :  { %5326 = vmatpush3.bf16.msra.mxu0 %v5323_v55  ;;  %v3551_v55 = vld [vmem:[#allocation20 + $0x260] sm:$0xff] }
0x132c   :  { %5328 = vmatprep.subr.bf16.mxu0 %v5327_v56  ;;  %v5345_v38 = vpack.c.bf16 %v3551_v55, %v3547_v53  ;;  %v3580_v53 = vld [vmem:[#allocation20 + $0x348] sm:$0xff] }
0x132d   :  { %v3584_v55 = vld [vmem:[#allocation20 + $0x368] sm:$0xff] }
0x132f   :  { %5330 = vmatpush3.bf16.msra.mxu0 %v5327_v56  ;;  %v3553_v56 = vld [vmem:[#allocation20 + $0x270] sm:$0xff] }
0x1330   :  { %5332 = vmatprep.subr.bf16.mxu0 %v5331_v1 }
0x1333   :  { %5334 = vmatpush3.bf16.msra.mxu0 %v5331_v1  ;;  %v5377_v1 = vpack.c.bf16 %v3553_v56, %v3549_v36  ;;  %v3582_v36 = vld [vmem:[#allocation20 + $0x358] sm:$0xff] }
0x1334   :  { %5336 = vmatprep.subr.bf16.mxu0 %v5335_v6  ;;  %v3586_v56 = vld [vmem:[#allocation20 + $0x378] sm:$0xff] }
0x1337   :  { %5338 = vmatpush3.bf16.msra.mxu0 %v5335_v6  ;;  %v3562_v6 = vld [vmem:[#allocation20 + $0x2b8] sm:$0xff] }
0x1338   :  { %5372 = vmatprep.subr.bf16.mxu0 %v5371_v26  ;;  %v3576_v26 = vld [vmem:[#allocation20 + $0x328] sm:$0xff] }
0x13ec   :  { %v4893_v41 = vpop.f32.mrb[36].mxu0 }
0x13ed   :  { %v3238_v4 = vpop.f32.mrb[37].mxu0 }
0x13ee   :  { %v5548_v22 = vpack.i.bf16 %v4893_v41, %v3238_v4  ;;  %v3555_v41 = vld [vmem:[#allocation20 + $0x280] sm:$0xff]  ;;  %v5379_v4 = vpack.c.bf16 %v3562_v6, %v3558_v2  ;;  %v3581_v2 = vld [vmem:[#allocation20 + $0x350] sm:$0xff] }
0x13ef   :  { %v3585_v6 = vld [vmem:[#allocation20 + $0x370] sm:$0xff] }
0x13f0   :  { %5549 = vrot.lane.b32.xlu1 %v5548_v22, %s6167_s10  ;;  %v3559_v22 = vld [vmem:[#allocation20 + $0x2a0] sm:$0xff] }
0x13f1   :  { %v4900_v43 = vpop.f32.mrb[52].mxu1 }
0x13f2   :  { %v3327_v19 = vpop.f32.mrb[53].mxu1 }
0x13f3   :  { %v5553_v25 = vpack.i.bf16 %v4900_v43, %v3327_v19  ;;  %v3557_v43 = vld [vmem:[#allocation20 + $0x290] sm:$0xff] }
0x13f4   :  { %v3561_v19 = vld [vmem:[#allocation20 + $0x2b0] sm:$0xff] }
0x13f5   :  { %5554 = vrot.lane.b32.xlu1 %v5553_v25, %s6167_s10  ;;  %v5349_v25 = vpack.c.bf16 %v3559_v22, %v3555_v41  ;;  %v3588_v41 = vld [vmem:[#allocation20 + $0x388] sm:$0xff] }
0x13f6   :  { %v3592_v22 = vld [vmem:[#allocation20 + $0x3a8] sm:$0xff] }
0x1462   :  { %v5550_v51 = vpop.permute.xlu1 %5549 }
0x1463   :  { %v5552_v37 = vunpack.i.h.bf16 %v5550_v51  ;;  %v5551_v5 = vunpack.i.l.bf16 %v5550_v51  ;;  %v5381_v51 = vpack.c.bf16 %v3561_v19, %v3557_v43  ;;  %v3590_v43 = vld [vmem:[#allocation20 + $0x398] sm:$0xff] }
0x1464   :  { %v3594_v19 = vld [vmem:[#allocation20 + $0x3b8] sm:$0xff] }
0x1465   :  { %v3352_v21 = vsel %vm608_vm0, %v7042_v10, %v5551_v5  ;;  %v3353_v28 = vsel %vm608_vm0, %v7040_v27, %v5552_v37 }
0x1466   :  { %4933 = vmatprep.mubr.f32.mxu0 %v3352_v21 }
0x1467   :  { %v5555_v23 = vpop.permute.xlu1 %5554  ;;  %4934 = vmatmul.mubr.f32.vlgmr.msra.gmra.mrb[38].mxu0 %v3353_v28 }
0x1468   :  { %v5557_v31 = vunpack.i.h.bf16 %v5555_v23  ;;  %v5556_v17 = vunpack.i.l.bf16 %v5555_v23  ;;  %5374 = vmatpush1.bf16.msra.mxu0 %v5373_v54  ;;  %v3575_v54 = vld [vmem:[#allocation20 + $0x320] sm:$0xff] }
0x146a   :  { %v3354_v45 = vsel %vm608_vm0, %v7046_v18, %v5556_v17  ;;  %v3355_v44 = vsel %vm608_vm0, %v7044_v42, %v5557_v31 }
0x146b   :  { %4936 = vmatprep.mubr.f32.mxu0 %v3354_v45 }
0x146c   :  { %4937 = vmatmul.mubr.f32.gmra.mrb[40].mxu0 %v3355_v44 }
0x146d   :  { %3779 = vmatprep.mubr.f32.mxu0 %v6171_v30 }
0x153a   :  { %v4935_v10 = vpop.f32.mrb[38].mxu0 }
0x153b   :  { %v3453_v40 = vadd.f32 %v4935_v10, %v4349_v35  ;;  %v3447_v61 = vpop.f32.mrb[39].mxu0 }
0x153c   :  { %v3448_v27 = vadd.f32 %v4349_v35, %v3447_v61 }
0x153d   :  { %v7081_v24 = vadd.f32 %v3453_v40, %v6940_v62  ;;  %v3544_v62 = vld [vmem:[#allocation20 + $0x228] sm:$0xff] }
0x153e   :  { %v7084_v3 = vadd.f32 %v3448_v27, %v6934_v59  ;;  %v3540_v59 = vld [vmem:[#allocation20 + $0x208] sm:$0xff] }
0x153f   :  { %3476 = vadd.xlane.f32.xlu1 %v7081_v24  ;;  %v4938_v18 = vpop.f32.mrb[40].mxu0  ;;  %v5339_v9 = vpack.c.bf16 %v3544_v62, %v3540_v59  ;;  %v3570_v59 = vld [vmem:[#allocation20 + $0x2f8] sm:$0xff]  ;;  %v3567_v62 = vld [vmem:[#allocation20 + $0x2e0] sm:$0xff] }
0x1540   :  { %v3457_v32 = vpop.f32.mrb[41].mxu0  ;;  %3474 = vadd.xlane.f32.xlu0 %v7084_v3  ;;  %v3463_v34 = vadd.f32 %v4938_v18, %v4349_v35  ;;  %v3564_v18 = vld [vmem:[#allocation20 + $0x2c8] sm:$0xff] }
0x1541   :  { %v3458_v42 = vadd.f32 %v4349_v35, %v3457_v32  ;;  %5340 = vmatprep.subr.bf16.mxu1 %v5339_v9  ;;  %v3568_v32 = vld [vmem:[#allocation20 + $0x2e8] sm:$0xff] }
0x1542   :  { %v7093_v14 = vadd.f32 %v3463_v34, %v6952_v29  ;;  %v3554_v29 = vld [vmem:[#allocation20 + $0x278] sm:$0xff]  ;;  %5342 = vmatpush1.bf16.msra.mxu1 %v5341_v60  ;;  %v5351_v34 = vpack.c.bf16 %v3568_v32, %v3564_v18  ;;  %v3599_v32 = vld [vmem:[#allocation20 + $0x3e0] sm:$0xff] }
0x1543   :  { %v7089_v52 = vadd.f32 %v3458_v42, %v6946_v33  ;;  %v3548_v33 = vld [vmem:[#allocation20 + $0x248] sm:$0xff]  ;;  %v5375_v20 = vpack.c.bf16 %v3554_v29, %v3550_v13  ;;  %v3566_v42 = vld [vmem:[#allocation20 + $0x2d8] sm:$0xff]  ;;  %v3573_v29 = vld [vmem:[#allocation20 + $0x310] sm:$0xff] }
0x1544   :  { %v5343_v63 = vpack.c.bf16 %v3552_v15, %v3548_v33  ;;  %v5383_v48 = vpack.c.bf16 %v3570_v59, %v3566_v42  ;;  %v3574_v60 = vld [vmem:[#allocation20 + $0x318] sm:$0xff]  ;;  %v3571_v33 = vld [vmem:[#allocation20 + $0x300] sm:$0xff]  ;;  %v3597_v42 = vld [vmem:[#allocation20 + $0x3d0] sm:$0xff] }
0x1545   :  { %3478 = vadd.xlane.f32.xlu0 %v7089_v52  ;;  %5376 = vmatprep.subr.bf16.mxu0 %v5375_v20  ;;  %v5387_v15 = vpack.c.bf16 %v3578_v46, %v3574_v60  ;;  %v5357_v13 = vpack.c.bf16 %v3575_v54, %v3571_v33 }
0x1546   :  { %5344 = vmatprep.subr.bf16.mxu1 %v5343_v63  ;;  %5378 = vmatpush1.bf16.msra.mxu0 %v5377_v1  ;;  %v3577_v63 = vld [vmem:[#allocation20 + $0x330] sm:$0xff]  ;;  %v5391_v1 = vpack.c.bf16 %v3586_v56, %v3582_v36  ;;  %v4350_v36 = vld [vmem:[#allocation17 + $0x1] ss:$0 sm:$0xff] }
0x1547   :  { %5346 = vmatpush1.bf16.msra.mxu1 %v5345_v38  ;;  %5380 = vmatprep.subr.bf16.mxu0 %v5379_v4  ;;  %v5389_v20 = vpack.c.bf16 %v3577_v63, %v3573_v29  ;;  %v5359_v38 = vpack.c.bf16 %v3584_v55, %v3580_v53  ;;  %v5393_v4 = vpack.c.bf16 %v3585_v6, %v3581_v2  ;;  %v3982_v2 = vld [vmem:[#allocation23 + $0x308] sm:$0xff] }
0x1548   :  { %5348 = vmatprep.subr.bf16.mxu1 %v5347_v0  ;;  %v5361_v0 = vpack.c.bf16 %v3583_v16, %v3579_v58  ;;  %v3949_v16 = vld [vmem:[#allocation23 + $0x200] sm:$0xff] }
0x1549   :  { %3480 = vadd.xlane.f32.xlu0 %v7093_v14 }
0x154a   :  { %5382 = vmatpush1.bf16.msra.mxu0 %v5381_v51  ;;  %v5395_v51 = vpack.c.bf16 %v3594_v19, %v3590_v43 }
0x154b   :  { %5350 = vmatpush1.bf16.msra.mxu1 %v5349_v25  ;;  %5384 = vmatprep.subr.bf16.mxu0 %v5383_v48  ;;  %v5363_v25 = vpack.c.bf16 %v3592_v22, %v3588_v41  ;;  %v3966_v48 = vld [vmem:[#allocation23 + $0x288] sm:$0xff] }
0x154c   :  { %5352 = vmatprep.subr.bf16.mxu1 %v5351_v34  ;;  %v3601_v34 = vld [vmem:[#allocation20 + $0x3f0] sm:$0xff] }
0x154e   :  { %5386 = vmatpush1.bf16.msra.mxu0 %v5385_v39 }
0x154f   :  { %5388 = vmatprep.subr.bf16.mxu0 %v5387_v15 }
0x1552   :  { %5390 = vmatpush1.bf16.msra.mxu0 %v5389_v20 }
0x1553   :  { %5392 = vmatprep.subr.bf16.mxu0 %v5391_v1  ;;  %v3950_v1 = vld [vmem:[#allocation23 + $0x208] sm:$0xff] }
0x1554   :  { %v5405_v43 = vpack.c.bf16 %v3950_v1, %v3949_v16  ;;  %v3957_v16 = vld [vmem:[#allocation23 + $0x240] sm:$0xff]  ;;  %v3958_v1 = vld [vmem:[#allocation23 + $0x248] sm:$0xff] }
0x1556   :  { %5394 = vmatpush1.bf16.msra.mxu0 %v5393_v4 }
0x1557   :  { %5396 = vmatprep.subr.bf16.mxu0 %v5395_v51 }
0x15cc   :  { %v3477_v37 = vpop.xlane.xlu1 %3476 }
0x15cd   :  { %v3483_v5 = vmul.f32 0.0078125, %v3477_v37  ;;  %v3475_v21 = vpop.xlane.xlu0 %3474  ;;  %v3587_v37 = vld [vmem:[#allocation20 + $0x380] sm:$0xff] }
0x15ce   :  { %v3482_v28 = vmul.f32 0.0078125, %v3475_v21  ;;  %v3589_v21 = vld [vmem:[#allocation20 + $0x390] sm:$0xff] }
0x15cf   :  { %v7097_v23 = vsub.f32 %v7081_v24, %v3483_v5  ;;  %v3591_v5 = vld [vmem:[#allocation20 + $0x3a0] sm:$0xff] }
0x15d0   :  { %v7100_v31 = vsub.f32 %v7084_v3, %v3482_v28  ;;  %v5365_v28 = vpack.c.bf16 %v3591_v5, %v3587_v37 }
0x15d1   :  { %v3491_v17 = vmul.f32 %v7097_v23, %v7097_v23 }
0x15d2   :  { %v3479_v45 = vpop.xlane.xlu0 %3478  ;;  %v3490_v44 = vmul.f32 %v7100_v31, %v7100_v31 }
0x15d3   :  { %v3484_v35 = vmul.f32 0.0078125, %v3479_v45  ;;  %3496 = vadd.xlane.f32.xlu1 %v3491_v17  ;;  %v3593_v17 = vld [vmem:[#allocation20 + $0x3b0] sm:$0xff]  ;;  %v3596_v45 = vld [vmem:[#allocation20 + $0x3c8] sm:$0xff] }
0x15d4   :  { %3494 = vadd.xlane.f32.xlu0 %v3490_v44  ;;  %v3600_v44 = vld [vmem:[#allocation20 + $0x3e8] sm:$0xff] }
0x15d5   :  { %v7107_v10 = vsub.f32 %v7089_v52, %v3484_v35  ;;  %v3563_v52 = vld [vmem:[#allocation20 + $0x2c0] sm:$0xff]  ;;  %v5397_v35 = vpack.c.bf16 %v3593_v17, %v3589_v21  ;;  %v3967_v21 = vld [vmem:[#allocation23 + $0x290] sm:$0xff] }
0x15d6   :  { %v3481_v40 = vpop.xlane.xlu0 %3480  ;;  %v5353_v9 = vpack.c.bf16 %v3567_v62, %v3563_v52  ;;  %v5401_v52 = vpack.c.bf16 %v3601_v34, %v3597_v42  ;;  %v3965_v62 = vld [vmem:[#allocation23 + $0x280] sm:$0xff]  ;;  %v3999_v17 = vld [vmem:[#allocation23 + $0x390] sm:$0xff]  ;;  %v3970_v42 = vld [vmem:[#allocation23 + $0x2a8] sm:$0xff] }
0x15d7   :  { %v3485_v61 = vmul.f32 0.0078125, %v3481_v40  ;;  %v3492_v27 = vmul.f32 %v7107_v10, %v7107_v10  ;;  %v5367_v40 = vpack.c.bf16 %v3600_v44, %v3596_v45  ;;  %5398 = vmatpush1.bf16.msra.mxu0 %v5397_v35  ;;  %v5403_v47 = vpack.c.bf16 %v3966_v48, %v3965_v62  ;;  %v4000_v44 = vld [vmem:[#allocation23 + $0x398] sm:$0xff]  ;;  %v3951_v35 = vld [vmem:[#allocation23 + $0x210] sm:$0xff]  ;;  %v4001_v34 = vld [vmem:[#allocation23 + $0x3a0] sm:$0xff] }
0x15d8   :  { %5354 = vmatpush1.bf16.msra.mxu1 %v5353_v9  ;;  %v3997_v9 = vld [vmem:[#allocation23 + $0x380] sm:$0xff]  ;;  %v3954_v48 = vld [vmem:[#allocation23 + $0x228] sm:$0xff] }
0x15d9   :  { %v7112_v24 = vsub.f32 %v7093_v14, %v3485_v61  ;;  %3498 = vadd.xlane.f32.xlu0 %v3492_v27  ;;  %v3572_v14 = vld [vmem:[#allocation20 + $0x308] sm:$0xff]  ;;  %v3598_v61 = vld [vmem:[#allocation20 + $0x3d8] sm:$0xff]  ;;  %v5435_v39 = vpack.c.bf16 %v3998_v57, %v3997_v9 }
0x15da   :  { %v5355_v49 = vpack.c.bf16 %v3576_v26, %v3572_v14  ;;  %v3602_v27 = vld [vmem:[#allocation20 + $0x3f8] sm:$0xff]  ;;  %v3953_v62 = vld [vmem:[#allocation23 + $0x220] sm:$0xff] }
0x15db   :  { %v3493_v3 = vmul.f32 %v7112_v24, %v7112_v24  ;;  %v5399_v18 = vpack.c.bf16 %v3602_v27, %v3598_v61  ;;  %v5439_v61 = vpack.c.bf16 %v4000_v44, %v3999_v17  ;;  %v3985_v57 = vld [vmem:[#allocation23 + $0x320] sm:$0xff] }
0x15dc   :  { %5356 = vmatprep.subr.bf16.mxu1 %v5355_v49  ;;  %v3977_v44 = vld [vmem:[#allocation23 + $0x2e0] sm:$0xff] }
0x15dd   :  { %3500 = vadd.xlane.f32.xlu1 %v3493_v3  ;;  %5358 = vmatpush1.bf16.msra.mxu1 %v5357_v13  ;;  %v3595_v3 = vld [vmem:[#allocation20 + $0x3c0] sm:$0xff] }
0x15de   :  { %5360 = vmatprep.subr.bf16.mxu1 %v5359_v38  ;;  %v5369_v59 = vpack.c.bf16 %v3599_v32, %v3595_v3  ;;  %5400 = vmatprep.subr.bf16.mxu0 %v5399_v18  ;;  %v4351_v38 = vld [vmem:[#allocation19 + $0x1] ss:$0 sm:$0xff]  ;;  %v3984_v18 = vld [vmem:[#allocation23 + $0x318] sm:$0xff] }
0x15df   :  { %5402 = vmatpush1.bf16.msra.mxu0 %v5401_v52  ;;  %v3983_v3 = vld [vmem:[#allocation23 + $0x310] sm:$0xff]  ;;  %v4002_v52 = vld [vmem:[#allocation23 + $0x3a8] sm:$0xff] }
0x15e0   :  { %5436 = vmatprep.subr.bf16.mxu0 %v5435_v39  ;;  %v5441_v32 = vpack.c.bf16 %v3984_v18, %v3983_v3  ;;  %v5443_v9 = vpack.c.bf16 %v4002_v52, %v4001_v34  ;;  %v3986_v39 = vld [vmem:[#allocation23 + $0x328] sm:$0xff]  ;;  %v3961_v18 = vld [vmem:[#allocation23 + $0x260] sm:$0xff]  ;;  %v3979_v52 = vld [vmem:[#allocation23 + $0x2f0] sm:$0xff] }
0x15e1   :  { %5362 = vmatpush1.bf16.msra.mxu1 %v5361_v0  ;;  %v3981_v0 = vld [vmem:[#allocation23 + $0x300] sm:$0xff]  ;;  %v4010_v3 = vld [vmem:[#allocation23 + $0x3e8] sm:$0xff] }
0x15e2   :  { %5364 = vmatprep.subr.bf16.mxu1 %v5363_v25  ;;  %v5437_v19 = vpack.c.bf16 %v3982_v2, %v3981_v0  ;;  %v5421_v2 = vpack.c.bf16 %v3958_v1, %v3957_v16  ;;  %v3994_v34 = vld [vmem:[#allocation23 + $0x368] sm:$0xff] }
0x15e5   :  { %5366 = vmatpush1.bf16.msra.mxu1 %v5365_v28  ;;  %v3968_v28 = vld [vmem:[#allocation23 + $0x298] sm:$0xff] }
0x15e6   :  { %5368 = vmatprep.subr.bf16.mxu1 %v5367_v40  ;;  %v5407_v45 = vpack.c.bf16 %v3968_v28, %v3967_v21  ;;  %v3952_v40 = vld [vmem:[#allocation23 + $0x218] sm:$0xff]  ;;  %v3991_v28 = vld [vmem:[#allocation23 + $0x350] sm:$0xff] }
0x15e7   :  { %v5409_v27 = vpack.c.bf16 %v3952_v40, %v3951_v35  ;;  %v3960_v21 = vld [vmem:[#allocation23 + $0x258] sm:$0xff]  ;;  %v3978_v35 = vld [vmem:[#allocation23 + $0x2e8] sm:$0xff] }
0x15e9   :  { %5370 = vmatpush1.bf16.msra.mxu1 %v5369_v59 }
0x15ea   :  { %5404 = vmatprep.subr.bf16.mxu1 %v5403_v47  ;;  %v5413_v47 = vpack.c.bf16 %v3954_v48, %v3953_v62  ;;  %v3980_v62 = vld [vmem:[#allocation23 + $0x2f8] sm:$0xff]  ;;  %v4011_v48 = vld [vmem:[#allocation23 + $0x3f0] sm:$0xff] }
0x1660   :  { %v3497_v14 = vpop.xlane.xlu1 %3496 }
0x1661   :  { %v3503_v26 = vmul.f32 0.0078125, %v3497_v14  ;;  %v3495_v60 = vpop.xlane.xlu0 %3494  ;;  %v5445_v14 = vpack.c.bf16 %v3986_v39, %v3985_v57  ;;  %v4012_v57 = vld [vmem:[#allocation23 + $0x3f8] sm:$0xff]  ;;  %v3963_v39 = vld [vmem:[#allocation23 + $0x270] sm:$0xff] }
0x1662   :  { %v3502_v49 = vmul.f32 0.0078125, %v3495_v60  ;;  %v3972_v60 = vld [vmem:[#allocation23 + $0x2b8] sm:$0xff] }
0x1663   :  { %v3507_v46 = vadd.f32 1e-12, %v3503_v26  ;;  %v3971_v26 = vld [vmem:[#allocation23 + $0x2b0] sm:$0xff] }
0x1664   :  { %v3506_v33 = vadd.f32 1e-12, %v3502_v49  ;;  %v4003_v49 = vld [vmem:[#allocation23 + $0x3b0] sm:$0xff] }
0x1665   :  { %5678 = vrsqrt.f32 %v3507_v46  ;;  %v5415_v46 = vpack.c.bf16 %v3972_v60, %v3971_v26  ;;  %v5463_v26 = vpack.c.bf16 %v4012_v57, %v4011_v48  ;;  %v3995_v60 = vld [vmem:[#allocation23 + $0x370] sm:$0xff] }
0x1666   :  { %5680 = vrsqrt.f32 %v3506_v33  ;;  %v3499_v54 = vpop.xlane.xlu0 %3498  ;;  %v4004_v33 = vld [vmem:[#allocation23 + $0x3b8] sm:$0xff] }
0x1667   :  { %v3504_v15 = vmul.f32 0.0078125, %v3499_v54  ;;  %v3955_v54 = vld [vmem:[#allocation23 + $0x230] sm:$0xff] }
0x1669   :  { %v3508_v13 = vadd.f32 1e-12, %v3504_v15  ;;  %v3956_v15 = vld [vmem:[#allocation23 + $0x238] sm:$0xff] }
0x166a   :  { %v3501_v29 = vpop.xlane.xlu1 %3500 }
0x166b   :  { %5682 = vrsqrt.f32 %v3508_v13  ;;  %v3505_v63 = vmul.f32 0.0078125, %v3501_v29  ;;  %v5447_v13 = vpack.c.bf16 %v4004_v33, %v4003_v49  ;;  %v5417_v29 = vpack.c.bf16 %v3956_v15, %v3955_v54  ;;  %v3996_v49 = vld [vmem:[#allocation23 + $0x378] sm:$0xff] }
0x166c   :  { %v5465_v33 = vpack.c.bf16 %v3996_v49, %v3995_v60  ;;  %v3604_v54 = vld [vmem:[#allocation22 + $0x4] sm:$0xf] }
0x166d   :  { %v3509_v20 = vadd.f32 1e-12, %v3505_v63  ;;  %v3987_v63 = vld [vmem:[#allocation23 + $0x330] sm:$0xff]  ;;  %v7143_v15 = vrot.slane %v3604_v54, %v6578_v8 }
0x166f   :  { %v5679_v53 = vpop.eup %5678  ;;  %5684 = vrsqrt.f32 %v3509_v20  ;;  %v3988_v20 = vld [vmem:[#allocation23 + $0x338] sm:$0xff] }
0x1670   :  { %v5681_v55 = vpop.eup %5680  ;;  %v3515_v58 = vmul.f32 %v5679_v53, %v7097_v23  ;;  %v5449_v53 = vpack.c.bf16 %v3988_v20, %v3987_v63  ;;  %v7153_v63 = vrot.slane %v3604_v54, %v1672_v50 }
0x1671   :  { %v3514_v56 = vmul.f32 %v5681_v55, %v7100_v31  ;;  %v3973_v55 = vld [vmem:[#allocation23 + $0x2c0] sm:$0xff] }
0x1672   :  { %v3525_v22 = vmul.f32 %v4350_v36, %v3515_v58  ;;  %v4006_v58 = vld [vmem:[#allocation23 + $0x3c8] sm:$0xff] }
0x1673   :  { %v3524_v6 = vmul.f32 %v4350_v36, %v3514_v56 }
0x1674   :  { %v7125_v31 = vadd.f32 %v4351_v38, %v3525_v22  ;;  %v3975_v22 = vld [vmem:[#allocation23 + $0x2d0] sm:$0xff] }
0x1675   :  { %v5683_v41 = vpop.eup %5682  ;;  %v7118_v4 = vadd.f32 %v4351_v38, %v3524_v6  ;;  %v3989_v6 = vld [vmem:[#allocation23 + $0x340] sm:$0xff] }
0x1676   :  { %v3516_v25 = vmul.f32 %v5683_v41, %v7107_v10  ;;  %v3990_v41 = vld [vmem:[#allocation23 + $0x348] sm:$0xff] }
0x1677   :  { %3691 = vmatmul.mubr.f32.vlgmr.msra.gmra.mrb[54].mxu1 %v7118_v4  ;;  %3780 = vmatmul.mubr.f32.vlgmr.msra.gmra.mrb[42].mxu0 %v7118_v4 }
0x1678   :  { %3696 = vmatprep.mubr.f32.mxu1 %v6171_v30  ;;  %3785 = vmatprep.mubr.f32.mxu0 %v6171_v30  ;;  %v3526_v51 = vmul.f32 %v4350_v36, %v3516_v25  ;;  %v4007_v25 = vld [vmem:[#allocation23 + $0x3d0] sm:$0xff] }
0x1679   :  { %v5685_v23 = vpop.eup %5684  ;;  %5406 = vmatpush3.bf16.msra.mxu1 %v5405_v43  ;;  %5438 = vmatpush3.bf16.msra.mxu0 %v5437_v19  ;;  %v5453_v43 = vpack.c.bf16 %v3990_v41, %v3989_v6  ;;  %v3976_v19 = vld [vmem:[#allocation23 + $0x2d8] sm:$0xff] }
0x167a   :  { %v3517_v37 = vmul.f32 %v5685_v23, %v7112_v24  ;;  %v7132_v10 = vadd.f32 %v4351_v38, %v3526_v51  ;;  %5408 = vmatprep.subr.bf16.mxu1 %v5407_v45  ;;  %5440 = vmatprep.subr.bf16.mxu0 %v5439_v61  ;;  %v4008_v23 = vld [vmem:[#allocation23 + $0x3d8] sm:$0xff]  ;;  %v5423_v51 = vpack.c.bf16 %v3976_v19, %v3975_v22 }
0x167b   :  { %3697 = vmatmul.mubr.f32.gmra.mrb[56].mxu1 %v7125_v31  ;;  %3786 = vmatmul.mubr.f32.gmra.mrb[44].mxu0 %v7125_v31  ;;  %v3992_v45 = vld [vmem:[#allocation23 + $0x358] sm:$0xff]  ;;  %v5427_v61 = vpack.c.bf16 %v3978_v35, %v3977_v44 }
0x167c   :  { %3702 = vmatprep.mubr.f32.mxu1 %v6171_v30  ;;  %3791 = vmatprep.mubr.f32.mxu0 %v6171_v30  ;;  %v3527_v5 = vmul.f32 %v4350_v36, %v3517_v37  ;;  %v3974_v36 = vld [vmem:[#allocation23 + $0x2c8] sm:$0xff]  ;;  %v5455_v37 = vpack.c.bf16 %v4008_v23, %v4007_v25  ;;  %v5457_v40 = vpack.c.bf16 %v3992_v45, %v3991_v28 }
0x167d   :  { %5410 = vmatpush3.bf16.msra.mxu1 %v5409_v27  ;;  %5442 = vmatpush3.bf16.msra.mxu0 %v5441_v32  ;;  %v5419_v56 = vpack.c.bf16 %v3974_v36, %v3973_v55  ;;  %v4009_v27 = vld [vmem:[#allocation23 + $0x3e0] sm:$0xff] }
0x167e   :  { %v7138_v24 = vadd.f32 %v4351_v38, %v3527_v5  ;;  %5444 = vmatprep.subr.bf16.mxu0 %v5443_v9  ;;  %v4005_v38 = vld [vmem:[#allocation23 + $0x3c0] sm:$0xff]  ;;  %v3959_v5 = vld [vmem:[#allocation23 + $0x250] sm:$0xff]  ;;  %v5459_v32 = vpack.c.bf16 %v4010_v3, %v4009_v27 }
0x167f   :  { %3703 = vmatmul.mubr.f32.gmra.mrb[58].mxu1 %v7132_v10  ;;  %3792 = vmatmul.mubr.f32.gmra.mrb[46].mxu0 %v7132_v10  ;;  %v5451_v0 = vpack.c.bf16 %v4006_v58, %v4005_v38  ;;  %v5425_v17 = vpack.c.bf16 %v3960_v21, %v3959_v5 }
0x1680   :  { %3708 = vmatprep.mubr.f32.mxu1 %v6171_v30  ;;  %3797 = vmatprep.mubr.f32.mxu0 %v6171_v30  ;;  %v3969_v30 = vld [vmem:[#allocation23 + $0x2a0] sm:$0xff] }
0x1681   :  { %v5411_v59 = vpack.c.bf16 %v3970_v42, %v3969_v30  ;;  %5446 = vmatpush3.bf16.msra.mxu0 %v5445_v14  ;;  %v3962_v30 = vld [vmem:[#allocation23 + $0x268] sm:$0xff]  ;;  %v3993_v42 = vld [vmem:[#allocation23 + $0x360] sm:$0xff]  ;;  %v3964_v14 = vld [vmem:[#allocation23 + $0x278] sm:$0xff] }
0x1682   :  { %5448 = vmatprep.subr.bf16.mxu0 %v5447_v13  ;;  %v5461_v9 = vpack.c.bf16 %v3994_v34, %v3993_v42  ;;  %v7146_v13 = vrot.slane %v3604_v54, %v6582_v11 }
0x1683   :  { %3709 = vmatmul.mubr.f32.gmra.mrb[60].mxu1 %v7138_v24  ;;  %3798 = vmatmul.mubr.f32.gmra.mrb[48].mxu0 %v7138_v24 }
0x1684   :  { %5412 = vmatprep.subr.bf16.mxu1 %v5411_v59  ;;  %v5429_v59 = vpack.c.bf16 %v3962_v30, %v3961_v18 }
0x1685   :  { %5414 = vmatpush3.bf16.msra.mxu1 %v5413_v47  ;;  %5450 = vmatpush3.bf16.msra.mxu0 %v5449_v53  ;;  %v5431_v47 = vpack.c.bf16 %v3980_v62, %v3979_v52 }
0x1686   :  { %5416 = vmatprep.subr.bf16.mxu1 %v5415_v46  ;;  %5452 = vmatprep.subr.bf16.mxu0 %v5451_v0  ;;  %v5433_v46 = vpack.c.bf16 %v3964_v14, %v3963_v39 }
0x1689   :  { %5418 = vmatpush3.bf16.msra.mxu1 %v5417_v29  ;;  %5454 = vmatpush3.bf16.msra.mxu0 %v5453_v43  ;;  %v7149_v29 = vrot.slane %v3604_v54, %v6585_v12 }
0x168a   :  { %5420 = vmatprep.subr.bf16.mxu1 %v5419_v56  ;;  %5456 = vmatprep.subr.bf16.mxu0 %v5455_v37 }
0x168d   :  { %5422 = vmatpush3.bf16.msra.mxu1 %v5421_v2  ;;  %5458 = vmatpush3.bf16.msra.mxu0 %v5457_v40 }
0x168e   :  { %5424 = vmatprep.subr.bf16.mxu1 %v5423_v51  ;;  %5460 = vmatprep.subr.bf16.mxu0 %v5459_v32 }
0x1691   :  { %5426 = vmatpush3.bf16.msra.mxu1 %v5425_v17  ;;  %5462 = vmatpush3.bf16.msra.mxu0 %v5461_v9 }
0x1692   :  { %5428 = vmatprep.subr.bf16.mxu1 %v5427_v61  ;;  %5464 = vmatprep.subr.bf16.mxu0 %v5463_v26 }
0x1695   :  { %5430 = vmatpush3.bf16.msra.mxu1 %v5429_v59  ;;  %5466 = vmatpush3.bf16.msra.mxu0 %v5465_v33 }
0x1696   :  { %5432 = vmatprep.subr.bf16.mxu1 %v5431_v47 }
0x1699   :  { %5434 = vmatpush3.bf16.msra.mxu1 %v5433_v46 }
0x174a   :  { %v3692_v20 = vpop.f32.mrb[54].mxu1  ;;  %v3781_v53 = vpop.f32.mrb[42].mxu0 }
0x174b   :  { %v3693_v55 = vadd.f32 %v3692_v20, %v7143_v15  ;;  %v3782_v36 = vadd.f32 %v3781_v53, %v7146_v13  ;;  %v3694_v38 = vpop.f32.mrb[55].mxu1  ;;  %v3783_v56 = vpop.f32.mrb[43].mxu0 }
0x174c   :  { %v7158_v8 = vadd.f32 %v3694_v38, %v7149_v29  ;;  %v7161_v11 = vadd.f32 %v3783_v56, %v7153_v63 }
0x174d   :  { %v3820_v12 = vmul.f32 0.044715, %v3693_v55  ;;  %v3822_v58 = vmul.f32 0.044715, %v3782_v36  ;;  %v7199_v26 = vmul.f32 0.5, %v3693_v55 }
0x174e   :  { %v3821_v7 = vmul.f32 0.044715, %v7158_v8  ;;  %v3823_v50 = vmul.f32 0.044715, %v7161_v11  ;;  %v3698_v16 = vpop.f32.mrb[56].mxu1  ;;  %v3787_v1 = vpop.f32.mrb[44].mxu0 }
0x174f   :  { %v3836_v0 = vmul.f32 %v3820_v12, %v3693_v55  ;;  %v3838_v2 = vmul.f32 %v3822_v58, %v3782_v36  ;;  %v3700_v6 = vpop.f32.mrb[57].mxu1  ;;  %v3789_v41 = vpop.f32.mrb[45].mxu0  ;;  %v7168_v19 = vadd.f32 %v3698_v16, %v7143_v15  ;;  %v7178_v44 = vadd.f32 %v3787_v1, %v7146_v13 }
0x1750   :  { %v3837_v22 = vmul.f32 %v3821_v7, %v7158_v8  ;;  %v3839_v43 = vmul.f32 %v3823_v50, %v7161_v11  ;;  %v7171_v25 = vadd.f32 %v3700_v6, %v7149_v29  ;;  %v7174_v37 = vadd.f32 %v3789_v41, %v7153_v63 }
0x1751   :  { %v3852_v23 = vmul.f32 %v3836_v0, %v3693_v55  ;;  %v3854_v51 = vmul.f32 %v3838_v2, %v3782_v36  ;;  %v3824_v27 = vmul.f32 0.044715, %v7168_v19  ;;  %v3826_v47 = vmul.f32 0.044715, %v7178_v44 }
0x1752   :  { %v3704_v5 = vpop.f32.mrb[58].mxu1  ;;  %v3793_v21 = vpop.f32.mrb[46].mxu0  ;;  %v3853_v28 = vmul.f32 %v3837_v22, %v7158_v8  ;;  %v3855_v61 = vmul.f32 %v3839_v43, %v7161_v11  ;;  %v3825_v3 = vmul.f32 0.044715, %v7171_v25  ;;  %v3827_v30 = vmul.f32 0.044715, %v7174_v37 }
0x1753   :  { %v3868_v17 = vadd.f32 %v3852_v23, %v3693_v55  ;;  %v3870_v45 = vadd.f32 %v3854_v51, %v3782_v36  ;;  %v3706_v35 = vpop.f32.mrb[59].mxu1  ;;  %v3795_v40 = vpop.f32.mrb[47].mxu0  ;;  %v7184_v18 = vadd.f32 %v3704_v5, %v7143_v15  ;;  %v7194_v52 = vadd.f32 %v3793_v21, %v7146_v13 }
0x1754   :  { %v7188_v42 = vadd.f32 %v3706_v35, %v7149_v29  ;;  %v7191_v34 = vadd.f32 %v3795_v40, %v7153_v63  ;;  %v3869_v9 = vadd.f32 %v3853_v28, %v7158_v8  ;;  %v3871_v14 = vadd.f32 %v3855_v61, %v7161_v11 }
0x1755   :  { %v3884_v32 = vmul.f32 0.7978846, %v3868_v17  ;;  %v3886_v59 = vmul.f32 0.7978846, %v3870_v45  ;;  %v3828_v60 = vmul.f32 0.044715, %v7184_v18  ;;  %v3840_v46 = vmul.f32 %v3824_v27, %v7168_v19 }
0x1756   :  { %v3710_v62 = vpop.f32.mrb[60].mxu1  ;;  %v3799_v48 = vpop.f32.mrb[48].mxu0  ;;  %v3829_v49 = vmul.f32 0.044715, %v7188_v42  ;;  %v3841_v33 = vmul.f32 %v3825_v3, %v7171_v25  ;;  %v3843_v54 = vmul.f32 %v3827_v30, %v7174_v37  ;;  %v3831_v20 = vmul.f32 0.044715, %v7191_v34 }
0x1757   :  { %v3712_v57 = vpop.f32.mrb[61].mxu1  ;;  %v3801_v39 = vpop.f32.mrb[49].mxu0  ;;  %5686 = vtanh.f32 %v3884_v32  ;;  %v3830_v53 = vmul.f32 0.044715, %v7194_v52  ;;  %v7209_v38 = vadd.f32 %v3710_v62, %v7143_v15  ;;  %v3885_v55 = vmul.f32 0.7978846, %v3869_v9 }
0x1758   :  { %5688 = vtanh.f32 %v3886_v59  ;;  %v3842_v56 = vmul.f32 %v3826_v47, %v7178_v44  ;;  %v7213_v12 = vadd.f32 %v3799_v48, %v7146_v13  ;;  %v7216_v58 = vadd.f32 %v3712_v57, %v7149_v29 }
0x1759   :  { %v3887_v7 = vmul.f32 0.7978846, %v3871_v14  ;;  %v7218_v50 = vmul.f32 0.5, %v3782_v36  ;;  %v3844_v16 = vmul.f32 %v3828_v60, %v7184_v18  ;;  %v3845_v1 = vmul.f32 %v3829_v49, %v7188_v42 }
0x175a   :  { %5690 = vtanh.f32 %v3885_v55  ;;  %v3847_v15 = vmul.f32 %v3831_v20, %v7191_v34  ;;  %v7224_v0 = vadd.f32 %v3801_v39, %v7153_v63  ;;  %v3857_v13 = vmul.f32 %v3841_v33, %v7171_v25 }
0x175b   :  { %5692 = vtanh.f32 %v3887_v7  ;;  %v3846_v2 = vmul.f32 %v3830_v53, %v7194_v52  ;;  %v3832_v29 = vmul.f32 0.044715, %v7209_v38  ;;  %v3859_v36 = vmul.f32 %v3843_v54, %v7174_v37 }
0x175c   :  { %v3856_v6 = vmul.f32 %v3840_v46, %v7168_v19  ;;  %v3834_v41 = vmul.f32 0.044715, %v7213_v12  ;;  %v3833_v22 = vmul.f32 0.044715, %v7216_v58  ;;  %v3873_v43 = vadd.f32 %v3857_v13, %v7171_v25 }
0x175d   :  { %v3858_v63 = vmul.f32 %v3842_v56, %v7178_v44  ;;  %v3805_v23 = vmul.f32 0.5, %v7158_v8  ;;  %v3875_v51 = vadd.f32 %v3859_v36, %v7174_v37  ;;  %v3861_v21 = vmul.f32 %v3845_v1, %v7188_v42 }
0x175e   :  { %v3872_v5 = vadd.f32 %v3856_v6, %v7168_v19  ;;  %v3835_v28 = vmul.f32 0.044715, %v7224_v0  ;;  %v3889_v17 = vmul.f32 0.7978846, %v3873_v43  ;;  %v3863_v35 = vmul.f32 %v3847_v15, %v7191_v34 }
0x175f   :  { %v3874_v45 = vadd.f32 %v3858_v63, %v7178_v44  ;;  %v3848_v61 = vmul.f32 %v3832_v29, %v7209_v38  ;;  %v3891_v27 = vmul.f32 0.7978846, %v3875_v51  ;;  %v3877_v8 = vadd.f32 %v3861_v21, %v7188_v42 }
0x1760   :  { %v3888_v3 = vmul.f32 0.7978846, %v3872_v5  ;;  %v3849_v32 = vmul.f32 %v3833_v22, %v7216_v58  ;;  %5694 = vtanh.f32 %v3889_v17  ;;  %v3879_v59 = vadd.f32 %v3863_v35, %v7191_v34 }
0x1761   :  { %v5687_v40 = vpop.eup %5686  ;;  %v3890_v30 = vmul.f32 0.7978846, %v3874_v45  ;;  %v3807_v48 = vmul.f32 0.5, %v7161_v11  ;;  %5696 = vtanh.f32 %v3891_v27  ;;  %v3893_v9 = vmul.f32 0.7978846, %v3877_v8 }
0x1762   :  { %v5689_v62 = vpop.eup %5688  ;;  %v3860_v47 = vmul.f32 %v3844_v16, %v7184_v18  ;;  %v3851_v57 = vmul.f32 %v3835_v28, %v7224_v0  ;;  %v3916_v39 = vadd.f32 1.0, %v5687_v40  ;;  %5698 = vtanh.f32 %v3888_v3 }
0x1763   :  { %v3895_v14 = vmul.f32 0.7978846, %v3879_v59  ;;  %v3850_v49 = vmul.f32 %v3834_v41, %v7213_v12  ;;  %5700 = vtanh.f32 %v3890_v30  ;;  %v3862_v33 = vmul.f32 %v3846_v2, %v7194_v52 }
0x1764   :  { %v5691_v60 = vpop.eup %5690  ;;  %v3876_v46 = vadd.f32 %v3860_v47, %v7184_v18  ;;  %v3918_v11 = vadd.f32 1.0, %v5689_v62  ;;  %5702 = vtanh.f32 %v3893_v9  ;;  %v3865_v53 = vmul.f32 %v3849_v32, %v7216_v58 }
0x1765   :  { %v5693_v54 = vpop.eup %5692  ;;  %v3917_v20 = vadd.f32 1.0, %v5691_v60  ;;  %5704 = vtanh.f32 %v3895_v14  ;;  %v3878_v7 = vadd.f32 %v3862_v33, %v7194_v52  ;;  %v3932_v1 = vmul.f32 %v3916_v39, %v7199_v26 }
0x1766   :  { %v3919_v55 = vadd.f32 1.0, %v5693_v54  ;;  %v3892_v56 = vmul.f32 0.7978846, %v3876_v46  ;;  %v3881_v15 = vadd.f32 %v3865_v53, %v7216_v58  ;;  %v3867_v13 = vmul.f32 %v3851_v57, %v7224_v0 }
0x1767   :  { %v3933_v16 = vmul.f32 %v3917_v20, %v3805_v23  ;;  %v3894_v2 = vmul.f32 0.7978846, %v3878_v7  ;;  %v3864_v36 = vmul.f32 %v3848_v61, %v7209_v38  ;;  %v3934_v6 = vmul.f32 %v3918_v11, %v7218_v50 }
0x1768   :  { %v3935_v29 = vmul.f32 %v3919_v55, %v3807_v48  ;;  %5706 = vtanh.f32 %v3892_v56  ;;  %v3897_v41 = vmul.f32 0.7978846, %v3881_v15  ;;  %v3883_v22 = vadd.f32 %v3867_v13, %v7224_v0 }
0x1769   :  { %4085 = vmatprep.mubr.f32.mxu1 %v3933_v16  ;;  %v3866_v43 = vmul.f32 %v3850_v49, %v7213_v12  ;;  %5708 = vtanh.f32 %v3894_v2  ;;  %v3880_v26 = vadd.f32 %v3864_v36, %v7209_v38  ;;  %v3809_v21 = vmul.f32 0.5, %v7171_v25 }
0x176a   :  { %4170 = vmatprep.mubr.f32.mxu0 %v3935_v29  ;;  %4086 = vmatmul.mubr.f32.vlgmr.msra.gmra.mrb[62].mxu1 %v3932_v1  ;;  %v5695_v63 = vpop.eup %5694  ;;  %5710 = vtanh.f32 %v3897_v41  ;;  %v3899_v23 = vmul.f32 0.7978846, %v3883_v22  ;;  %v3811_v45 = vmul.f32 0.5, %v7174_v37  ;;  %v3808_v3 = vmul.f32 0.5, %v7168_v19  ;;  %v4352_v22 = vld [vmem:[#allocation25 + $0x1] ss:$0 sm:$0xff] }
0x176b   :  { %4171 = vmatmul.mubr.f32.vlgmr.msra.gmra.mrb[50].mxu0 %v3934_v6  ;;  %v3882_v51 = vadd.f32 %v3866_v43, %v7213_v12  ;;  %v5697_v5 = vpop.eup %5696  ;;  %v3921_v50 = vadd.f32 1.0, %v5695_v63  ;;  %v3896_v28 = vmul.f32 0.7978846, %v3880_v26  ;;  %v3810_v59 = vmul.f32 0.5, %v7178_v44 }
0x176c   :  { %v5699_v17 = vpop.eup %5698  ;;  %v3923_v35 = vadd.f32 1.0, %v5697_v5  ;;  %5712 = vtanh.f32 %v3899_v23  ;;  %v3813_v37 = vmul.f32 0.5, %v7188_v42  ;;  %v3815_v57 = vmul.f32 0.5, %v7191_v34 }
0x176d   :  { %v3898_v40 = vmul.f32 0.7978846, %v3882_v51  ;;  %v5701_v61 = vpop.eup %5700  ;;  %v3937_v27 = vmul.f32 %v3921_v50, %v3809_v21  ;;  %v3920_v8 = vadd.f32 1.0, %v5699_v17  ;;  %5714 = vtanh.f32 %v3896_v28 }
0x176e   :  { %v5703_v32 = vpop.eup %5702  ;;  %v3939_v30 = vmul.f32 %v3923_v35, %v3811_v45  ;;  %v3922_v62 = vadd.f32 1.0, %v5701_v61  ;;  %v3812_v44 = vmul.f32 0.5, %v7184_v18  ;;  %v3814_v42 = vmul.f32 0.5, %v7194_v52 }
0x176f   :  { %5716 = vtanh.f32 %v3898_v40  ;;  %v5705_v25 = vpop.eup %5704  ;;  %4090 = vmatprep.mubr.f32.mxu1 %v3937_v27  ;;  %v3936_v48 = vmul.f32 %v3920_v8, %v3808_v3  ;;  %v3925_v9 = vadd.f32 1.0, %v5703_v32  ;;  %v3817_v11 = vmul.f32 0.5, %v7216_v58 }
0x1770   :  { %4175 = vmatprep.mubr.f32.mxu0 %v3939_v30  ;;  %v3938_v47 = vmul.f32 %v3922_v62, %v3810_v59  ;;  %v3927_v39 = vadd.f32 1.0, %v5705_v25  ;;  %v3819_v16 = vmul.f32 0.5, %v7224_v0  ;;  %v3816_v15 = vmul.f32 0.5, %v7209_v38 }
0x1771   :  { %4091 = vmatmul.mubr.f32.gmra.mrb[64].mxu1 %v3936_v48  ;;  %v3941_v14 = vmul.f32 %v3925_v9, %v3813_v37  ;;  %v3818_v52 = vmul.f32 0.5, %v7213_v12 }
0x1772   :  { %v5707_v19 = vpop.eup %5706  ;;  %4176 = vmatmul.mubr.f32.gmra.mrb[52].mxu0 %v3938_v47  ;;  %v3943_v60 = vmul.f32 %v3927_v39, %v3815_v57 }
0x1773   :  { %v3924_v49 = vadd.f32 1.0, %v5707_v19  ;;  %v5709_v46 = vpop.eup %5708  ;;  %4095 = vmatprep.mubr.f32.mxu1 %v3941_v14 }
0x1774   :  { %v5711_v33 = vpop.eup %5710  ;;  %4180 = vmatprep.mubr.f32.mxu0 %v3943_v60  ;;  %v3926_v20 = vadd.f32 1.0, %v5709_v46 }
0x1775   :  { %v3940_v54 = vmul.f32 %v3924_v49, %v3812_v44  ;;  %v3929_v34 = vadd.f32 1.0, %v5711_v33 }
0x1776   :  { %v5713_v53 = vpop.eup %5712  ;;  %v3942_v55 = vmul.f32 %v3926_v20, %v3814_v42 }
0x1777   :  { %4096 = vmatmul.mubr.f32.gmra.mrb[66].mxu1 %v3940_v54  ;;  %v5715_v56 = vpop.eup %5714  ;;  %v3945_v7 = vmul.f32 %v3929_v34, %v3817_v11  ;;  %v3931_v18 = vadd.f32 1.0, %v5713_v53 }
0x1778   :  { %4181 = vmatmul.mubr.f32.gmra.mrb[54].mxu0 %v3942_v55  ;;  %v3928_v13 = vadd.f32 1.0, %v5715_v56 }
0x1779   :  { %v5717_v1 = vpop.eup %5716  ;;  %4100 = vmatprep.mubr.f32.mxu1 %v3945_v7  ;;  %v3947_v29 = vmul.f32 %v3931_v18, %v3819_v16 }
0x177a   :  { %v3930_v2 = vadd.f32 1.0, %v5717_v1  ;;  %v3944_v58 = vmul.f32 %v3928_v13, %v3816_v15 }
0x177b   :  { %4185 = vmatprep.mubr.f32.mxu0 %v3947_v29 }
0x177c   :  { %v3946_v36 = vmul.f32 %v3930_v2, %v3818_v52  ;;  %4101 = vmatmul.mubr.f32.gmra.mrb[68].mxu1 %v3944_v58  ;;  %v4353_v58 = vld [vmem:[#allocation26 + $0x1] ss:$0 sm:$0xff] }
0x177e   :  { %4186 = vmatmul.mubr.f32.gmra.mrb[56].mxu0 %v3946_v36 }
0x183d   :  { %v4619_v6 = vpop.f32.mrb[62].mxu1 }
0x183e   :  { %v4663_v41 = vpop.f32.mrb[50].mxu0  ;;  %v4620_v0 = vpop.f32.mrb[63].mxu1 }
0x183f   :  { %v4621_v43 = vadd.f32 %v4620_v0, %v4619_v6  ;;  %v4664_v26 = vpop.f32.mrb[51].mxu0 }
0x1840   :  { %v4665_v63 = vadd.f32 %v4664_v26, %v4663_v41  ;;  %v4354_v41 = vld [vmem:[#allocation28 + $0x1] ss:$0 sm:$0xff] }
0x1841   :  { %v4088_v23 = vadd.f32 %v4621_v43, %v4352_v22 }
0x1843   :  { %v4173_v38 = vadd.f32 %v4665_v63, %v4088_v23 }
0x1844   :  { %v4622_v51 = vpop.f32.mrb[64].mxu1 }
0x1845   :  { %v4191_v5 = vadd.f32 %v4173_v38, %v7118_v4  ;;  %v4666_v21 = vpop.f32.mrb[52].mxu0  ;;  %v4623_v12 = vpop.f32.mrb[65].mxu1 }
0x1846   :  { %v4624_v50 = vadd.f32 %v4623_v12, %v4622_v51  ;;  %v4667_v28 = vpop.f32.mrb[53].mxu0 }
0x1847   :  { %4199 = vadd.xlane.f32.xlu0 %v4191_v5  ;;  %v4668_v17 = vadd.f32 %v4667_v28, %v4666_v21 }
0x1848   :  { %v4093_v45 = vadd.f32 %v4624_v50, %v4352_v22 }
0x184a   :  { %v4625_v35 = vpop.f32.mrb[66].mxu1  ;;  %v4178_v40 = vadd.f32 %v4668_v17, %v4093_v45 }
0x184b   :  { %v4626_v61 = vpop.f32.mrb[67].mxu1  ;;  %v4669_v27 = vpop.f32.mrb[54].mxu0 }
0x184c   :  { %v4627_v3 = vadd.f32 %v4626_v61, %v4625_v35  ;;  %v4670_v8 = vpop.f32.mrb[55].mxu0  ;;  %v4192_v32 = vadd.f32 %v4178_v40, %v7125_v31 }
0x184d   :  { %v4671_v59 = vadd.f32 %v4670_v8, %v4669_v27 }
0x184e   :  { %v4098_v30 = vadd.f32 %v4627_v3, %v4352_v22  ;;  %4201 = vadd.xlane.f32.xlu1 %v4192_v32 }
0x184f   :  { %v4628_v4 = vpop.f32.mrb[68].mxu1 }
0x1850   :  { %v4183_v62 = vadd.f32 %v4671_v59, %v4098_v30  ;;  %v4629_v48 = vpop.f32.mrb[69].mxu1 }
0x1851   :  { %v4672_v25 = vpop.f32.mrb[56].mxu0  ;;  %v4630_v37 = vadd.f32 %v4629_v48, %v4628_v4 }
0x1852   :  { %v4673_v9 = vpop.f32.mrb[57].mxu0  ;;  %v4193_v47 = vadd.f32 %v4183_v62, %v7132_v10 }
0x1853   :  { %v4674_v57 = vadd.f32 %v4673_v9, %v4672_v25  ;;  %v4103_v39 = vadd.f32 %v4630_v37, %v4352_v22 }
0x1854   :  { %4203 = vadd.xlane.f32.xlu0 %v4193_v47 }
0x1855   :  { %v4188_v19 = vadd.f32 %v4674_v57, %v4103_v39 }
0x1857   :  { %v4194_v14 = vadd.f32 %v4188_v19, %v7138_v24 }
0x1859   :  { %4205 = vadd.xlane.f32.xlu1 %v4194_v14 }
0x18d4   :  { %v4200_v60 = vpop.xlane.xlu0 %4199 }
0x18d5   :  { %v4207_v31 = vmul.f32 0.0078125, %v4200_v60 }
0x18d7   :  { %v4211_v44 = vsub.f32 %v4191_v5, %v4207_v31 }
0x18d9   :  { %v4215_v49 = vmul.f32 %v4211_v44, %v4211_v44 }
0x18db   :  { %4219 = vadd.xlane.f32.xlu0 %v4215_v49  ;;  %v4202_v46 = vpop.xlane.xlu1 %4201 }
0x18dc   :  { %v4208_v33 = vmul.f32 0.0078125, %v4202_v46 }
0x18de   :  { %v4212_v54 = vsub.f32 %v4192_v32, %v4208_v33 }
0x18e0   :  { %v4216_v20 = vmul.f32 %v4212_v54, %v4212_v54 }
0x18e1   :  { %v4204_v42 = vpop.xlane.xlu0 %4203 }
0x18e2   :  { %v4209_v11 = vmul.f32 0.0078125, %v4204_v42  ;;  %4221 = vadd.xlane.f32.xlu1 %v4216_v20 }
0x18e4   :  { %v4213_v10 = vsub.f32 %v4193_v47, %v4209_v11 }
0x18e6   :  { %v4217_v34 = vmul.f32 %v4213_v10, %v4213_v10  ;;  %v4206_v53 = vpop.xlane.xlu1 %4205 }
0x18e7   :  { %v4210_v55 = vmul.f32 0.0078125, %v4206_v53 }
0x18e8   :  { %4223 = vadd.xlane.f32.xlu0 %v4217_v34 }
0x18e9   :  { %v4214_v56 = vsub.f32 %v4194_v14, %v4210_v55 }
0x18eb   :  { %v4218_v24 = vmul.f32 %v4214_v56, %v4214_v56 }
0x18ed   :  { %4225 = vadd.xlane.f32.xlu1 %v4218_v24 }
0x1968   :  { %v4220_v7 = vpop.xlane.xlu0 %4219 }
0x1969   :  { %v4227_v16 = vmul.f32 0.0078125, %v4220_v7 }
0x196b   :  { %v4231_v18 = vadd.f32 1e-12, %v4227_v16 }
0x196d   :  { %5718 = vrsqrt.f32 %v4231_v18 }
0x196f   :  { %v4222_v1 = vpop.xlane.xlu1 %4221 }
0x1970   :  { %v4228_v15 = vmul.f32 0.0078125, %v4222_v1 }
0x1972   :  { %v4232_v13 = vadd.f32 1e-12, %v4228_v15 }
0x1974   :  { %5720 = vrsqrt.f32 %v4232_v13 }
0x1975   :  { %v4224_v29 = vpop.xlane.xlu0 %4223 }
0x1976   :  { %v4229_v52 = vmul.f32 0.0078125, %v4224_v29 }
0x1977   :  { %v5719_v2 = vpop.eup %5718 }
0x1978   :  { %v4239_v36 = vmul.f32 %v5719_v2, %v4211_v44  ;;  %v4233_v6 = vadd.f32 1e-12, %v4229_v52 }
0x197a   :  { %5722 = vrsqrt.f32 %v4233_v6  ;;  %v4249_v22 = vmul.f32 %v4353_v58, %v4239_v36  ;;  %v4226_v0 = vpop.xlane.xlu1 %4225 }
0x197b   :  { %v4230_v43 = vmul.f32 0.0078125, %v4226_v0 }
0x197c   :  { %v4259_v26 = vadd.f32 %v4354_v41, %v4249_v22 }
0x197d   :  { %v4234_v63 = vadd.f32 1e-12, %v4230_v43 }
0x197e   :  { %4263 = vst [vmem:[#allocation29] sm:$0xff] %v4259_v26  ;;  %v5721_v23 = vpop.eup %5720 }
0x197f   :  { %v4240_v38 = vmul.f32 %v5721_v23, %v4212_v54  ;;  %5724 = vrsqrt.f32 %v4234_v63 }
0x1981   :  { %v4250_v51 = vmul.f32 %v4353_v58, %v4240_v38 }
0x1983   :  { %v4260_v21 = vadd.f32 %v4354_v41, %v4250_v51 }
0x1984   :  { %v5723_v5 = vpop.eup %5722 }
0x1985   :  { %v4241_v12 = vmul.f32 %v5723_v5, %v4213_v10  ;;  %4264 = vst [vmem:[#allocation29 + $0x8] sm:$0xff] %v4260_v21 }
0x1987   :  { %v4251_v50 = vmul.f32 %v4353_v58, %v4241_v12 }
0x1989   :  { %v4261_v28 = vadd.f32 %v4354_v41, %v4251_v50  ;;  %v5725_v17 = vpop.eup %5724 }
0x198a   :  { %v4242_v45 = vmul.f32 %v5725_v17, %v4214_v56 }
0x198b   :  { %4265 = vst [vmem:[#allocation29 + $0x10] sm:$0xff] %v4261_v28 }
0x198c   :  { %v4252_v35 = vmul.f32 %v4353_v58, %v4242_v45 }
0x198e   :  { %v4262_v40 = vadd.f32 %v4354_v41, %v4252_v35 }
0x1990   :  { %4266 = vst [vmem:[#allocation29 + $0x18] sm:$0xff] %v4262_v40 }
0x1991   :  { %6111 = shalt.err (!%p6108_p0)
}
0x1992   :  { %s6112_s30 = scalar_lea.hbm %s7311_s17, 512 }
0x1993   :  { %p6113_p1 = scmp.ne.s32.totalorder %s7311_s17, %s6112_s30  ;;  %p6116_p2 = scmp.lt.u32.totalorder %s6112_s30, %s7311_s17 }
0x1995   :  { %p6118_p3 = pnand %p6116_p2, %p6113_p1 }
0x1997   :  { %6121 = shalt.err (!%p6118_p3)
}
0x1998   :  { %4278 = dma.vmem_to_hbm [thread:$0]  %s4273_s25, 512, %s7311_s17, [#allocation4], %s7321_s5, %s7321_s5, %s6145_s23  }
0x1999   :  { %6140 = dma.done.wait [#allocation4], 512  }
0x199a   :  { %6141 = vsyncadd [#allocation4], 4294966784 }
0x199b   :  { %4282 = vsyncpa [#allocation3], 1 }
0x199c   :  { %4283 = vsyncpa [#allocation6], 1 }
0x199d   :  { %4284 = vsyncpa [#allocation9], 1 }
0x199e   :  { %4285 = vsyncpa [#allocation12], 1 }
0x199f   :  { %4286 = vsyncpa [#allocation15], 1 }
0x19a0   :  { %4287 = vsyncpa [#allocation18], 1 }
0x19a1   :  { %4288 = vsyncpa [#allocation21], 1 }
0x19a2   :  { %4289 = vsyncpa [#allocation24], 1 }
0x19a3   :  { %4290 = vsyncpa [#allocation27], 1 }
0x19a4   :  { %4291 = vsyncpa [#allocation4], 1 }

</bundles_post_ra>
